<compile_context>
chip_gen: v5e
topology: v5e:2x2
jax: 0.10.0
libtpu: 0.0.40
codegen_flags: <defaults>
</compile_context>

<pallas_src>
import functools

import jax
import jax.numpy as jnp
import numpy as np
from jax.experimental import pallas as pl
from jax.experimental.pallas import tpu as pltpu

_LANE = 128


def _hardswish(x):
    # x * hardtanh(x + 3, 0, 6) / 6
    return x * jnp.clip(x + 3.0, 0.0, 6.0) * (1.0 / 6.0)


def _round_up(v, m):
    return (v + m - 1) // m * m


def _vmem_budget_bytes():
    """~60% of per-TensorCore VMEM (headroom for compiler temporaries)."""
    cap = None
    try:
        info = pltpu.get_tpu_info()
        for name in ("vmem_capacity_bytes", "vmem_size_bytes", "vmem_bytes"):
            if hasattr(info, name):
                cap = int(getattr(info, name))
                break
    except Exception:
        cap = None
    if not cap or cap <= 0:
        cap = 64 * 2 ** 20          # conservative fallback (v7x per-core size)
    return min(int(0.6 * cap), 100 * 2 ** 20)


def _dsconv_kernel(x_ref, wdw_ref, b1_ref, wpw_ref, b2_ref, o_ref, *, act):
    # x_ref:   (nb, H, W, Cp)   nb batch elements per grid step (f32 or bf16)
    # wdw_ref: (9, Cp)          depthwise taps [dy*3+dx], BN1 scale folded (f32)
    # b1_ref:  (1, Cp)          folded BN1 bias
    # wpw_ref: (Cp, Cp2)        pointwise weight, BN2 scale folded (bf16)
    # b2_ref:  (1, Cp2)         folded BN2 bias
    nb, H, W, Cp = x_ref.shape
    Cp2 = o_ref.shape[3]
    f32 = jnp.float32

    x = x_ref[...].astype(f32)                                   # (nb,H,W,Cp)

    # ---- depthwise 3x3 (+ folded BN1, Hardswish) on the VPU, f32 ----
    # Two W-shifted slabs built once and reused across all three dy taps
    # (only 2 sublane-misaligned ops per step instead of 6).
    zcol = jnp.zeros((nb, H, 1, Cp), f32)
    s_m = jnp.concatenate([zcol, x[:, :, :W - 1, :]], axis=2)    # s_m[w]=x[w-1]
    s_p = jnp.concatenate([x[:, :, 1:, :], zcol], axis=2)        # s_p[w]=x[w+1]

    w = wdw_ref[...].astype(f32)                                 # (9, Cp)

    def row_partial(dy):
        # P_dy[h] = sum_dx w[dy,dx] * S_dx[h]   (starts from a multiply, no
        # zero-init of the accumulator)
        t = s_m * w[3 * dy + 0].reshape(1, 1, 1, Cp)
        t = t + x * w[3 * dy + 1].reshape(1, 1, 1, Cp)
        t = t + s_p * w[3 * dy + 2].reshape(1, 1, 1, Cp)
        return t

    p_top, p_mid, p_bot = row_partial(0), row_partial(1), row_partial(2)

    # out[h] = P0[h-1] + P1[h] + P2[h+1]   (H is a non-tiled dim: cheap shifts)
    zrow = jnp.zeros((nb, 1, W, Cp), f32)
    acc = (p_mid
           + jnp.concatenate([zrow, p_top[:, :H - 1]], axis=1)
           + jnp.concatenate([p_bot[:, 1:], zrow], axis=1))

    y1 = acc + b1_ref[...].reshape(1, 1, 1, Cp)
    if act:
        y1 = _hardswish(y1)

    # ---- pointwise 1x1 (+ folded BN2, Hardswish): one bf16 MXU matmul ----
    # (nb,H,W,Cp)->(nb*H*W,Cp) is a free sublane collapse when W % 8 == 0.
    y1m = y1.reshape(nb * H * W, Cp).astype(jnp.bfloat16)
    y2 = jnp.dot(y1m, wpw_ref[...], preferred_element_type=jnp.float32)
    y2 = y2 + b2_ref[...]
    if act:
        y2 = _hardswish(y2)

    o_ref[...] = y2.reshape(nb, H, W, Cp2).astype(o_ref.dtype)


def depthsep_conv2d_pallas_nhwc(x_nhwc, params, *, act=True, out_dtype=None):
    """NHWC entry point: x (N, H, W, C) -> (N, H, W, planes).

    Pass a bf16 `x_nhwc` to halve HBM traffic (this kernel is memory-bound at
    small/medium C); the output then stays bf16 unless `out_dtype` overrides.
    """
    N, H, W, C = x_nhwc.shape
    C2 = params["w_pw"].shape[0]
    if params["w_dw"].shape[2:] != (3, 3):
        raise NotImplementedError("only kernel_size=3 is implemented")
    if params.get("stride", 1) != 1:
        raise NotImplementedError("only stride=1 is implemented")
    if H < 2 or W < 2:
        raise NotImplementedError("spatial dims must be >= 2")
    out_dtype = x_nhwc.dtype if out_dtype is None else out_dtype

    Cp = _round_up(C, _LANE)
    Cp2 = _round_up(C2, _LANE)

    s1, b1 = params["scale1"], params["bias1"]
    s2, b2 = params["scale2"], params["bias2"]

    # depthwise weight (C, 1, 3, 3) -> (9, Cp) with BN1 scale folded per channel
    w_dw = jnp.transpose(params["w_dw"][:, 0], (1, 2, 0)) * s1[None, None, :]
    w_dw = jnp.pad(w_dw, ((0, 0), (0, 0), (0, Cp - C))).reshape(9, Cp)
    b1p = jnp.pad(b1, (0, Cp - C)).reshape(1, Cp)

    # pointwise weight (C2, C, 1, 1) -> (Cp, Cp2) bf16 with BN2 scale folded
    w_pw = jnp.transpose(params["w_pw"][:, :, 0, 0], (1, 0)) * s2[None, :]
    w_pw = jnp.pad(w_pw, ((0, Cp - C), (0, Cp2 - C2))).astype(jnp.bfloat16)
    b2p = jnp.pad(b2, (0, Cp2 - C2)).reshape(1, Cp2)

    # lane-dense activations (zero-padded channels contribute exactly zero)
    # TODO(synk): carrying Cp-padded channels between layers avoids this pad
    #             and the final channel slice (each is an HBM round trip).
    x = x_nhwc if Cp == C else jnp.pad(
        x_nhwc, ((0, 0), (0, 0), (0, 0), (0, Cp - C)))

    # ---- batch block: >=1024 matmul rows/step, capped by the VMEM budget ----
    in_bytes = jnp.dtype(x.dtype).itemsize
    out_bytes = jnp.dtype(out_dtype).itemsize
    budget = _vmem_budget_bytes()
    weights_bytes = 2 * (9 * Cp * 4 + Cp * 4 + Cp * Cp2 * 2 + Cp2 * 4)
    per_b = H * W * (2 * Cp * in_bytes          # double-buffered input block
                     + 2 * Cp2 * out_bytes      # double-buffered output block
                     + 6 * Cp * 4 + 2 * Cp2 * 4)  # f32 intermediates (estimate)
    nb_vmem = max(1, (budget - weights_bytes) // per_b)
    nb_rows = -(-1024 // (H * W))               # >= 1024 MXU rows per step
    nb = int(max(1, min(N, nb_rows, nb_vmem)))
    grid = (-(-N // nb),)                       # cdiv; tail block is masked

    out = pl.pallas_call(
        functools.partial(_dsconv_kernel, act=act),
        out_shape=jax.ShapeDtypeStruct((N, H, W, Cp2), out_dtype),
        grid_spec=pltpu.PrefetchScalarGridSpec(
            num_scalar_prefetch=0,
            grid=grid,
            in_specs=[
                pl.BlockSpec((nb, H, W, Cp), lambda n: (n, 0, 0, 0)),
                pl.BlockSpec((9, Cp), lambda n: (0, 0)),
                pl.BlockSpec((1, Cp), lambda n: (0, 0)),
                pl.BlockSpec((Cp, Cp2), lambda n: (0, 0)),
                pl.BlockSpec((1, Cp2), lambda n: (0, 0)),
            ],
            out_specs=pl.BlockSpec((nb, H, W, Cp2), lambda n: (n, 0, 0, 0)),
        ),
        compiler_params=pltpu.CompilerParams(
            dimension_semantics=("parallel",),
            vmem_limit_bytes=int(budget)),
    )(x, w_dw, b1p, w_pw, b2p)

    return out if Cp2 == C2 else out[..., :C2]


def depthsep_conv2d_pallas(x_nchw, params, *, act=True):
    """NCHW wrapper matching the PyTorch module layout.

    If the surrounding model can stay NHWC (and bf16), call
    depthsep_conv2d_pallas_nhwc directly and skip both boundary transposes.
    """
    x = jnp.transpose(x_nchw, (0, 2, 3, 1))               # NCHW -> NHWC
    y = depthsep_conv2d_pallas_nhwc(x, params, act=act)
    return jnp.transpose(y, (0, 3, 1, 2))                 # NHWC -> NCHW


def init_params(key, inplanes, planes):
    """Deterministic synthetic parameters matching the module's shapes."""
    ks = jax.random.split(key, 10)
    eps = 1e-5

    w_dw = jax.random.normal(ks[0], (inplanes, 1, 3, 3), jnp.float32) * (2.0 / 9.0) ** 0.5
    w_pw = jax.random.normal(ks[1], (planes, inplanes, 1, 1), jnp.float32) * (2.0 / inplanes) ** 0.5

    g1 = 1.0 + 0.1 * jax.random.normal(ks[2], (inplanes,), jnp.float32)
    be1 = 0.1 * jax.random.normal(ks[3], (inplanes,), jnp.float32)
    m1 = 0.1 * jax.random.normal(ks[4], (inplanes,), jnp.float32)
    v1 = jnp.abs(jax.random.normal(ks[5], (inplanes,), jnp.float32)) + 0.5

    g2 = 1.0 + 0.1 * jax.random.normal(ks[6], (planes,), jnp.float32)
    be2 = 0.1 * jax.random.normal(ks[7], (planes,), jnp.float32)
    m2 = 0.1 * jax.random.normal(ks[8], (planes,), jnp.float32)
    v2 = jnp.abs(jax.random.normal(ks[9], (planes,), jnp.float32)) + 0.5

    scale1 = g1 / jnp.sqrt(v1 + eps)
    bias1 = be1 - m1 * scale1
    scale2 = g2 / jnp.sqrt(v2 + eps)
    bias2 = be2 - m2 * scale2

    return dict(w_dw=w_dw, w_pw=w_pw, scale1=scale1, bias1=bias1,
                scale2=scale2, bias2=bias2)


def depthsep_ref(x_nchw, params, *, act=True):
    """Plain-JAX reference mirroring the PyTorch forward (eval-mode BN)."""
    C = x_nchw.shape[1]

    y = jax.lax.conv_general_dilated(
        x_nchw, params["w_dw"], (1, 1), ((1, 1), (1, 1)),
        dimension_numbers=("NCHW", "OIHW", "NCHW"), feature_group_count=C)
    y = y * params["scale1"][None, :, None, None] + params["bias1"][None, :, None, None]
    if act:
        y = _hardswish(y)

    y = jax.lax.conv_general_dilated(
        y, params["w_pw"], (1, 1), ((0, 0), (0, 0)),
        dimension_numbers=("NCHW", "OIHW", "NCHW"))
    y = y * params["scale2"][None, :, None, None] + params["bias2"][None, :, None, None]
    if act:
        y = _hardswish(y)
    return y


if __name__ == "__main__":
    key = jax.random.PRNGKey(0)
    kx, kp = jax.random.split(key)

    N, C, H, W = 2, 8, 16, 16       # inplanes = 8
    planes = 16
    x = jax.random.normal(kx, (N, C, H, W), jnp.float32)
    params = init_params(kp, C, planes)

    out = depthsep_conv2d_pallas(x, params, act=True)
    out = jax.block_until_ready(out)

    ref = depthsep_ref(x, params, act=True)
    assert out.shape == ref.shape == (N, planes, H, W)
    np.testing.assert_allclose(np.asarray(out), np.asarray(ref),
                               atol=2e-2, rtol=2e-2)
    print("KERNEL_OK")
</pallas_src>

<mosaic_0001>
module attributes {stable_mosaic.version = 11 : i64} {
  func.func @_dsconv_kernel(%arg0: i32, %arg1: memref<2x16x16x128xf32, #tpu.memory_space<vmem>>, %arg2: memref<9x128xf32, #tpu.memory_space<vmem>>, %arg3: memref<1x128xf32, #tpu.memory_space<vmem>>, %arg4: memref<128x128xbf16, #tpu.memory_space<vmem>>, %arg5: memref<1x128xf32, #tpu.memory_space<vmem>>, %arg6: memref<2x16x16x128xf32, #tpu.memory_space<vmem>>) attributes {dimension_semantics = [#tpu.dimension_semantics<parallel>], iteration_bounds = array<i64: 1>, scalar_prefetch = 0 : i64, scratch_operands = 0 : i64, tpu.core_type = #tpu.core_type<tc>, window_params = [{transform_indices = @transform_0, window_bounds = array<i64: 2, 16, 16, 128>}, {pipeline_mode = #tpu.pipeline_mode<synchronous>, transform_indices = @transform_1, window_bounds = array<i64: 9, 128>}, {pipeline_mode = #tpu.pipeline_mode<synchronous>, transform_indices = @transform_2, window_bounds = array<i64: 1, 128>}, {pipeline_mode = #tpu.pipeline_mode<synchronous>, transform_indices = @transform_3, window_bounds = array<i64: 128, 128>}, {pipeline_mode = #tpu.pipeline_mode<synchronous>, transform_indices = @transform_4, window_bounds = array<i64: 1, 128>}, {transform_indices = @transform_5, window_bounds = array<i64: 2, 16, 16, 128>}]} {
    %c0 = arith.constant 0 : index
    %c0_0 = arith.constant 0 : index
    %c0_1 = arith.constant 0 : index
    %c0_2 = arith.constant 0 : index
    %0 = vector.load %arg1[%c0, %c0_0, %c0_1, %c0_2] : memref<2x16x16x128xf32, #tpu.memory_space<vmem>>, vector<2x16x16x128xf32>
    %cst = arith.constant 0.000000e+00 : f32
    %1 = vector.broadcast %cst : f32 to vector<2x16x1x128xf32>
    %2 = vector.extract_strided_slice %0 {offsets = [0, 0, 0, 0], sizes = [2, 16, 15, 128], strides = [1, 1, 1, 1]} : vector<2x16x16x128xf32> to vector<2x16x15x128xf32>
    %3 = tpu.concatenate %1, %2 in 2 : vector<2x16x1x128xf32>, vector<2x16x15x128xf32> -> vector<2x16x16x128xf32>
    %4 = vector.extract_strided_slice %0 {offsets = [0, 0, 1, 0], sizes = [2, 16, 15, 128], strides = [1, 1, 1, 1]} : vector<2x16x16x128xf32> to vector<2x16x15x128xf32>
    %5 = tpu.concatenate %4, %1 in 2 : vector<2x16x15x128xf32>, vector<2x16x1x128xf32> -> vector<2x16x16x128xf32>
    %c0_3 = arith.constant 0 : index
    %c0_4 = arith.constant 0 : index
    %6 = vector.load %arg2[%c0_3, %c0_4] : memref<9x128xf32, #tpu.memory_space<vmem>>, vector<9x128xf32>
    %7 = vector.extract_strided_slice %6 {offsets = [0, 0], sizes = [1, 128], strides = [1, 1]} : vector<9x128xf32> to vector<1x128xf32>
    %8 = vector.shape_cast %7 : vector<1x128xf32> to vector<128xf32>
    %9 = vector.shape_cast %8 : vector<128xf32> to vector<1x1x1x128xf32>
    %10 = vector.broadcast %9 : vector<1x1x1x128xf32> to vector<2x16x16x128xf32>
    %11 = arith.mulf %3, %10 : vector<2x16x16x128xf32>
    %12 = vector.extract_strided_slice %6 {offsets = [1, 0], sizes = [1, 128], strides = [1, 1]} : vector<9x128xf32> to vector<1x128xf32>
    %13 = vector.shape_cast %12 : vector<1x128xf32> to vector<128xf32>
    %14 = vector.shape_cast %13 : vector<128xf32> to vector<1x1x1x128xf32>
    %15 = vector.broadcast %14 : vector<1x1x1x128xf32> to vector<2x16x16x128xf32>
    %16 = arith.mulf %0, %15 : vector<2x16x16x128xf32>
    %17 = arith.addf %11, %16 : vector<2x16x16x128xf32>
    %18 = vector.extract_strided_slice %6 {offsets = [2, 0], sizes = [1, 128], strides = [1, 1]} : vector<9x128xf32> to vector<1x128xf32>
    %19 = vector.shape_cast %18 : vector<1x128xf32> to vector<128xf32>
    %20 = vector.shape_cast %19 : vector<128xf32> to vector<1x1x1x128xf32>
    %21 = vector.broadcast %20 : vector<1x1x1x128xf32> to vector<2x16x16x128xf32>
    %22 = arith.mulf %5, %21 : vector<2x16x16x128xf32>
    %23 = arith.addf %17, %22 : vector<2x16x16x128xf32>
    %24 = vector.extract_strided_slice %6 {offsets = [3, 0], sizes = [1, 128], strides = [1, 1]} : vector<9x128xf32> to vector<1x128xf32>
    %25 = vector.shape_cast %24 : vector<1x128xf32> to vector<128xf32>
    %26 = vector.shape_cast %25 : vector<128xf32> to vector<1x1x1x128xf32>
    %27 = vector.broadcast %26 : vector<1x1x1x128xf32> to vector<2x16x16x128xf32>
    %28 = arith.mulf %3, %27 : vector<2x16x16x128xf32>
    %29 = vector.extract_strided_slice %6 {offsets = [4, 0], sizes = [1, 128], strides = [1, 1]} : vector<9x128xf32> to vector<1x128xf32>
    %30 = vector.shape_cast %29 : vector<1x128xf32> to vector<128xf32>
    %31 = vector.shape_cast %30 : vector<128xf32> to vector<1x1x1x128xf32>
    %32 = vector.broadcast %31 : vector<1x1x1x128xf32> to vector<2x16x16x128xf32>
    %33 = arith.mulf %0, %32 : vector<2x16x16x128xf32>
    %34 = arith.addf %28, %33 : vector<2x16x16x128xf32>
    %35 = vector.extract_strided_slice %6 {offsets = [5, 0], sizes = [1, 128], strides = [1, 1]} : vector<9x128xf32> to vector<1x128xf32>
    %36 = vector.shape_cast %35 : vector<1x128xf32> to vector<128xf32>
    %37 = vector.shape_cast %36 : vector<128xf32> to vector<1x1x1x128xf32>
    %38 = vector.broadcast %37 : vector<1x1x1x128xf32> to vector<2x16x16x128xf32>
    %39 = arith.mulf %5, %38 : vector<2x16x16x128xf32>
    %40 = arith.addf %34, %39 : vector<2x16x16x128xf32>
    %41 = vector.extract_strided_slice %6 {offsets = [6, 0], sizes = [1, 128], strides = [1, 1]} : vector<9x128xf32> to vector<1x128xf32>
    %42 = vector.shape_cast %41 : vector<1x128xf32> to vector<128xf32>
    %43 = vector.shape_cast %42 : vector<128xf32> to vector<1x1x1x128xf32>
    %44 = vector.broadcast %43 : vector<1x1x1x128xf32> to vector<2x16x16x128xf32>
    %45 = arith.mulf %3, %44 : vector<2x16x16x128xf32>
    %46 = vector.extract_strided_slice %6 {offsets = [7, 0], sizes = [1, 128], strides = [1, 1]} : vector<9x128xf32> to vector<1x128xf32>
    %47 = vector.shape_cast %46 : vector<1x128xf32> to vector<128xf32>
    %48 = vector.shape_cast %47 : vector<128xf32> to vector<1x1x1x128xf32>
    %49 = vector.broadcast %48 : vector<1x1x1x128xf32> to vector<2x16x16x128xf32>
    %50 = arith.mulf %0, %49 : vector<2x16x16x128xf32>
    %51 = arith.addf %45, %50 : vector<2x16x16x128xf32>
    %52 = vector.extract_strided_slice %6 {offsets = [8, 0], sizes = [1, 128], strides = [1, 1]} : vector<9x128xf32> to vector<1x128xf32>
    %53 = vector.shape_cast %52 : vector<1x128xf32> to vector<128xf32>
    %54 = vector.shape_cast %53 : vector<128xf32> to vector<1x1x1x128xf32>
    %55 = vector.broadcast %54 : vector<1x1x1x128xf32> to vector<2x16x16x128xf32>
    %56 = arith.mulf %5, %55 : vector<2x16x16x128xf32>
    %57 = arith.addf %51, %56 : vector<2x16x16x128xf32>
    %cst_5 = arith.constant 0.000000e+00 : f32
    %58 = vector.broadcast %cst_5 : f32 to vector<2x1x16x128xf32>
    %59 = vector.extract_strided_slice %23 {offsets = [0, 0, 0, 0], sizes = [2, 15, 16, 128], strides = [1, 1, 1, 1]} : vector<2x16x16x128xf32> to vector<2x15x16x128xf32>
    %60 = tpu.concatenate %58, %59 in 1 : vector<2x1x16x128xf32>, vector<2x15x16x128xf32> -> vector<2x16x16x128xf32>
    %61 = arith.addf %40, %60 : vector<2x16x16x128xf32>
    %62 = vector.extract_strided_slice %57 {offsets = [0, 1, 0, 0], sizes = [2, 15, 16, 128], strides = [1, 1, 1, 1]} : vector<2x16x16x128xf32> to vector<2x15x16x128xf32>
    %63 = tpu.concatenate %62, %58 in 1 : vector<2x15x16x128xf32>, vector<2x1x16x128xf32> -> vector<2x16x16x128xf32>
    %64 = arith.addf %61, %63 : vector<2x16x16x128xf32>
    %c0_6 = arith.constant 0 : index
    %c0_7 = arith.constant 0 : index
    %65 = vector.load %arg3[%c0_6, %c0_7] : memref<1x128xf32, #tpu.memory_space<vmem>>, vector<1x128xf32>
    %66 = vector.shape_cast %65 : vector<1x128xf32> to vector<1x1x1x128xf32>
    %67 = vector.broadcast %66 : vector<1x1x1x128xf32> to vector<2x16x16x128xf32>
    %68 = arith.addf %64, %67 : vector<2x16x16x128xf32>
    %cst_8 = arith.constant 3.000000e+00 : f32
    %69 = vector.broadcast %cst_8 : f32 to vector<2x16x16x128xf32>
    %70 = arith.addf %68, %69 : vector<2x16x16x128xf32>
    %cst_9 = arith.constant 0.000000e+00 : f32
    %cst_10 = arith.constant 6.000000e+00 : f32
    %71 = vector.broadcast %cst_9 : f32 to vector<2x16x16x128xf32>
    %72 = arith.maximumf %71, %70 : vector<2x16x16x128xf32>
    %73 = vector.broadcast %cst_10 : f32 to vector<2x16x16x128xf32>
    %74 = arith.minimumf %73, %72 : vector<2x16x16x128xf32>
    %75 = arith.mulf %68, %74 : vector<2x16x16x128xf32>
    %cst_11 = arith.constant 0.166666672 : f32
    %76 = vector.broadcast %cst_11 : f32 to vector<2x16x16x128xf32>
    %77 = arith.mulf %75, %76 : vector<2x16x16x128xf32>
    %78 = vector.shape_cast %77 : vector<2x16x16x128xf32> to vector<512x128xf32>
    %79 = arith.truncf %78 : vector<512x128xf32> to vector<512x128xbf16>
    %c0_12 = arith.constant 0 : index
    %c0_13 = arith.constant 0 : index
    %80 = vector.load %arg4[%c0_12, %c0_13] : memref<128x128xbf16, #tpu.memory_space<vmem>>, vector<128x128xbf16>
    %cst_14 = arith.constant dense<0.000000e+00> : vector<512x128xf32>
    %81 = tpu.matmul %79, %80, %cst_14 {dimension_numbers = #tpu.dot_dimension_numbers<[1], [0], [0], [1], [0, 0, 1, 1], [], []>} : vector<512x128xbf16>, vector<128x128xbf16>, vector<512x128xf32> -> vector<512x128xf32>
    %c0_15 = arith.constant 0 : index
    %c0_16 = arith.constant 0 : index
    %82 = vector.load %arg5[%c0_15, %c0_16] : memref<1x128xf32, #tpu.memory_space<vmem>>, vector<1x128xf32>
    %83 = vector.broadcast %82 : vector<1x128xf32> to vector<512x128xf32>
    %84 = arith.addf %81, %83 : vector<512x128xf32>
    %cst_17 = arith.constant 3.000000e+00 : f32
    %85 = vector.broadcast %cst_17 : f32 to vector<512x128xf32>
    %86 = arith.addf %84, %85 : vector<512x128xf32>
    %cst_18 = arith.constant 0.000000e+00 : f32
    %cst_19 = arith.constant 6.000000e+00 : f32
    %87 = vector.broadcast %cst_18 : f32 to vector<512x128xf32>
    %88 = arith.maximumf %87, %86 : vector<512x128xf32>
    %89 = vector.broadcast %cst_19 : f32 to vector<512x128xf32>
    %90 = arith.minimumf %89, %88 : vector<512x128xf32>
    %91 = arith.mulf %84, %90 : vector<512x128xf32>
    %cst_20 = arith.constant 0.166666672 : f32
    %92 = vector.broadcast %cst_20 : f32 to vector<512x128xf32>
    %93 = arith.mulf %91, %92 : vector<512x128xf32>
    %94 = vector.shape_cast %93 : vector<512x128xf32> to vector<2x16x16x128xf32>
    %c0_21 = arith.constant 0 : index
    %c0_22 = arith.constant 0 : index
    %c0_23 = arith.constant 0 : index
    %c0_24 = arith.constant 0 : index
    %95 = vector.load %arg6[%c0_21, %c0_22, %c0_23, %c0_24] : memref<2x16x16x128xf32, #tpu.memory_space<vmem>>, vector<2x16x16x128xf32>
    tpu.vector_store %arg6[%c0_21, %c0_22, %c0_23, %c0_24], %94 {strides = array<i32>} : memref<2x16x16x128xf32, #tpu.memory_space<vmem>>, vector<2x16x16x128xf32>,
    return
  }
  func.func @transform_0(%arg0: i32) -> (i32, i32, i32, i32) {
    %c0_i32 = arith.constant 0 : i32
    %c0_i32_0 = arith.constant 0 : i32
    %c0_i32_1 = arith.constant 0 : i32
    %c0_i32_2 = arith.constant 0 : i32
    return %arg0, %c0_i32, %c0_i32_0, %c0_i32_1 : i32, i32, i32, i32
  }
  func.func @transform_1(%arg0: i32) -> (i32, i32) {
    %c0_i32 = arith.constant 0 : i32
    %c0_i32_0 = arith.constant 0 : i32
    %c0_i32_1 = arith.constant 0 : i32
    return %c0_i32, %c0_i32_0 : i32, i32
  }
  func.func @transform_2(%arg0: i32) -> (i32, i32) {
    %c0_i32 = arith.constant 0 : i32
    %c0_i32_0 = arith.constant 0 : i32
    %c0_i32_1 = arith.constant 0 : i32
    return %c0_i32, %c0_i32_0 : i32, i32
  }
  func.func @transform_3(%arg0: i32) -> (i32, i32) {
    %c0_i32 = arith.constant 0 : i32
    %c0_i32_0 = arith.constant 0 : i32
    %c0_i32_1 = arith.constant 0 : i32
    return %c0_i32, %c0_i32_0 : i32, i32
  }
  func.func @transform_4(%arg0: i32) -> (i32, i32) {
    %c0_i32 = arith.constant 0 : i32
    %c0_i32_0 = arith.constant 0 : i32
    %c0_i32_1 = arith.constant 0 : i32
    return %c0_i32, %c0_i32_0 : i32, i32
  }
  func.func @transform_5(%arg0: i32) -> (i32, i32, i32, i32) {
    %c0_i32 = arith.constant 0 : i32
    %c0_i32_0 = arith.constant 0 : i32
    %c0_i32_1 = arith.constant 0 : i32
    %c0_i32_2 = arith.constant 0 : i32
    return %arg0, %c0_i32, %c0_i32_0, %c0_i32_1 : i32, i32, i32, i32
  }
}

</mosaic_0001>

<bundles_post_ra>
// kernel: tpu_custom_call.1
= control target key start
LH: loop header
LB: loop body
LE: loop exit
PB: predicated region body
PF: predicated region fallthrough
CT: control target
= control target key end

     0   :  { %10 = vsyncpa [#allocation3], 0  ;;  %s4889_s0 = inlined_call_operand.hbm [shape: f32[2,16,16,128], index: 0, kind: input, shape index: {}]   ;;  %s4890_s1 = inlined_call_operand.hbm [shape: f32[9,128], index: 1, kind: input, shape index: {}]   ;;  %s4891_s2 = inlined_call_operand.vmem [shape: f32[1,128], index: 2, kind: input, shape index: {}]   ;;  %s4892_s3 = inlined_call_operand.hbm [shape: bf16[128,128], index: 3, kind: input, shape index: {}]   ;;  %s4893_s4 = inlined_call_operand.vmem [shape: f32[1,128], index: 4, kind: input, shape index: {}]   ;;  %s4894_s5 = inlined_call_operand.hbm [shape: f32[2,16,16,128], index: 5, kind: output, shape index: {}]  }
   0x1   :  { %11 = vsyncpa [#allocation6], 0 }
   0x2   :  { %12 = vsyncpa [#allocation4], 0  ;;  %s30_s20 = sshll.u32 %s4890_s1, 4  ;;  %s2898_s21 = smov [#allocation5]   ;;  %s31_s20 = int_to_ptr.hbm [resolvable:$true] %s30_s20 }
   0x3   :  { %s32_s22 = sshll.u32 %s2898_s21, 4  ;;  %s17_s25 = sshll.u32 %s4889_s0, 4  ;;  %s33_s22 = int_to_ptr.vmem [resolvable:$true] %s32_s22  ;;  %s18_s25 = int_to_ptr.hbm [resolvable:$true] %s17_s25 }
   0x4   :  { %s2899_s26 = smov 128   ;;  %s2900_s27 = smov 8  }
   0x5   :  { %38 = dma.hbm_to_vmem [thread:$0]  %s31_s20, 256, %s33_s22, [#allocation6], %s2899_s26, %s2899_s26, %s2900_s27  }
   0x6   :  { %s2901_s28 = smov [#allocation2]   ;;  %s45_s1 = sshll.u32 %s4892_s3, 4  ;;  %s46_s1 = int_to_ptr.hbm [resolvable:$true] %s45_s1 }
   0x7   :  { %s19_s29 = sshll.u32 %s2901_s28, 4  ;;  %s2902_s0 = smov [#allocation7]   ;;  %s20_s29 = int_to_ptr.vmem [resolvable:$true] %s19_s29 }
   0x8   :  { %25 = dma.hbm_to_vmem [thread:$0]  %s18_s25, 8192, %s20_s29, [#allocation3], %s2899_s26, %s2899_s26, %s2900_s27  }
   0x9   :  { %s47_s7 = sshll.u32 %s2902_s0, 4  ;;  %s2903_s8 = smov 64   ;;  %s48_s7 = int_to_ptr.vmem [resolvable:$true] %s47_s7 }
   0xa   :  { %s2904_s9 = smov 4  }
   0xb   :  { %53 = dma.hbm_to_vmem [thread:$0]  %s46_s1, 1024, %s48_s7, [#allocation6], %s2903_s8, %s2903_s8, %s2904_s9  }
   0xc   :  { %2892 = dma.done.wait [#allocation3], 8192  }
   0xd   :  { %2893 = vsyncadd [#allocation3], 4294959104 }
   0xe   :  { %2894 = dma.done.wait [#allocation6], 1280  }
   0xf   :  { %2895 = vsyncadd [#allocation6], 4294966016  ;;  %v2741_v0 = vld [vmem:[#allocation7 + $0x38] sm:$0xff]  ;;  %v2740_v1 = vld [vmem:[#allocation7 + $0x30] sm:$0xff]  ;;  %vm196_vm0 = vcmask 1040384   ;;  %vm389_vm1 = vcmask 1046528  }
  0x10   :  { %2129 = vmatpush.bf16.msra.mxu0 %v2741_v0  ;;  %2742 = vmatpush.bf16.msra.mxu1 %v2741_v0  ;;  %v2951_v2 = vld [vmem:[#allocation2] sm:$0xff]  ;;  %v2953_v3 = vld [vmem:[#allocation2 + $0x8] sm:$0xff]  ;;  %v2955_v4 = vld [vmem:[#allocation2 + $0x10] sm:$0xff]  ;;  %s2688_s23 = sshll.u32 %s4894_s5, 4  ;;  %s2689_s23 = int_to_ptr.hbm [resolvable:$true] %s2688_s23 }
  0x11   :  { %2743 = vmatpush.bf16.msra.mxu2 %v2741_v0  ;;  %2744 = vmatpush.bf16.msra.mxu3 %v2741_v0  ;;  %v2957_v5 = vld [vmem:[#allocation2 + $0x18] sm:$0xff]  ;;  %v197_v6 = vrot.slane %v2951_v2, 7  ;;  %v390_v7 = vrot.slane %v2951_v2, 1  ;;  %v198_v9 = vrot.slane %v2953_v3, 7  ;;  %v200_v10 = vrot.slane %v2955_v4, 7  ;;  %v2965_v13 = vld [vmem:[#allocation5] sm:$0xff] }
  0x12   :  { %v2739_v8 = vld [vmem:[#allocation7 + $0x28] sm:$0xff]  ;;  %v201_v11 = vrot.slane %v2957_v5, 7  ;;  %v391_v12 = vrot.slane %v2953_v3, 1  ;;  %v393_v15 = vrot.slane %v2955_v4, 1  ;;  %v394_v16 = vrot.slane %v2957_v5, 1  ;;  %v2989_v23 = vld [vmem:[#allocation2 + $0x70] sm:$0xff] }
  0x13   :  { %v2968_v14 = vsel %vm196_vm0, 0.0, %v197_v6  ;;  %v2973_v17 = vperm.slane %v2965_v13, 3  ;;  %v2976_v18 = vsel %vm196_vm0, %v197_v6, %v198_v9  ;;  %v2982_v20 = vsel %vm196_vm0, 0.0, %v200_v10  ;;  %v2987_v22 = vld [vmem:[#allocation5 + $0x8] ss:$0 sm:$0xff]  ;;  %v3002_v28 = vld [vmem:[#allocation2 + $0x78] sm:$0xff] }
  0x14   :  { %2130 = vmatpush.bf16.msra.mxu0 %v2740_v1  ;;  %2745 = vmatpush.bf16.msra.mxu1 %v2740_v1  ;;  %v2979_v19 = vsel %vm196_vm0, %v200_v10, %v201_v11  ;;  %v2985_v21 = vsel %vm389_vm1, %v390_v7, %v391_v12  ;;  %v2992_v24 = vsel %vm389_vm1, %v393_v15, %v394_v16  ;;  %v2995_v25 = vsel %vm389_vm1, %v391_v12, 0.0  ;;  %v3015_v33 = vld [vmem:[#allocation2 + $0x80] sm:$0xff]  ;;  %v2738_v34 = vld [vmem:[#allocation7 + $0x20] sm:$0xff]  ;;  %v3031_v42 = vld [vmem:[#allocation2 + $0x88] sm:$0xff] }
  0x15   :  { %2746 = vmatpush.bf16.msra.mxu2 %v2740_v1  ;;  %2747 = vmatpush.bf16.msra.mxu3 %v2740_v1  ;;  %v2998_v26 = vsel %vm389_vm1, %v394_v16, 0.0  ;;  %v888_v27 = vmul.f32 %v2973_v17, %v2968_v14  ;;  %v889_v29 = vmul.f32 %v2973_v17, %v2976_v18  ;;  %v3007_v30 = vperm.slane %v2965_v13, 4  ;;  %v3033_v43 = vld [vmem:[#allocation2 + $0x90] sm:$0xff]  ;;  %v3035_v44 = vld [vmem:[#allocation2 + $0x98] sm:$0xff]  ;;  %v2737_v58 = vld [vmem:[#allocation7 + $0x18] sm:$0xff] }
  0x16   :  { %v3010_v31 = vperm.slane %v2965_v13, 5  ;;  %v3013_v32 = vperm.slane %v2965_v13, 6  ;;  %v3018_v35 = vperm.slane %v2965_v13, 7  ;;  %v1393_v36 = vmul.f32 %v2987_v22, %v2992_v24  ;;  %5101 = vst [vmem:[#allocation12_spill] sm:$0xff] %v3033_v43 }
  0x17   :  { %v1394_v37 = vmul.f32 %v2987_v22, %v2998_v26  ;;  %v218_v38 = vrot.slane %v2989_v23, 7  ;;  %v953_v39 = vmul.f32 %v3007_v30, %v2951_v2  ;;  %v954_v40 = vmul.f32 %v3007_v30, %v2953_v3  ;;  %5102 = vst [vmem:[#allocation13_spill] sm:$0xff] %v3035_v44 }
  0x18   :  { %2131 = vmatpush.bf16.msra.mxu0 %v2739_v8  ;;  %2748 = vmatpush.bf16.msra.mxu1 %v2739_v8  ;;  %v1082_v41 = vmul.f32 %v3010_v31, %v2985_v21  ;;  %v219_v45 = vrot.slane %v3002_v28, 7  ;;  %v1083_v46 = vmul.f32 %v3010_v31, %v2995_v25  ;;  %v1211_v47 = vmul.f32 %v3013_v32, %v2982_v20 }
  0x19   :  { %2749 = vmatpush.bf16.msra.mxu2 %v2739_v8  ;;  %2750 = vmatpush.bf16.msra.mxu3 %v2739_v8  ;;  %v1212_v48 = vmul.f32 %v3013_v32, %v2979_v19  ;;  %v221_v49 = vrot.slane %v3015_v33, 7  ;;  %v1017_v50 = vadd.f32 %v953_v39, %v888_v27  ;;  %v1018_v51 = vadd.f32 %v954_v40, %v889_v29  ;;  %v3070_v8 = vld [vmem:[%s4891_s2] ss:$0 sm:$0xff] }
  0x1a   :  { %v1272_v52 = vmul.f32 %v3018_v35, %v2955_v4  ;;  %v1273_v53 = vmul.f32 %v3018_v35, %v2957_v5  ;;  %v3050_v54 = vsel %vm196_vm0, %v218_v38, %v219_v45  ;;  %v222_v55 = vrot.slane %v3031_v42, 7  ;;  %v2736_v29 = vld [vmem:[#allocation7 + $0x10] sm:$0xff] }
  0x1b   :  { %5103 = vst [vmem:[#allocation14_spill] sm:$0xff] %v3050_v54  ;;  %v224_v56 = vrot.slane %v3033_v43, 7  ;;  %v225_v57 = vrot.slane %v3035_v44, 7  ;;  %v1146_v59 = vadd.f32 %v1082_v41, %v1017_v50  ;;  %v1147_v60 = vadd.f32 %v1083_v46, %v1018_v51 }
  0x1c   :  { %2132 = vmatpush.bf16.msra.mxu0 %v2738_v34  ;;  %2751 = vmatpush.bf16.msra.mxu1 %v2738_v34  ;;  %v1332_v61 = vadd.f32 %v1272_v52, %v1211_v47  ;;  %v3056_v62 = vsel %vm196_vm0, 0.0, %v218_v38  ;;  %v1333_v63 = vadd.f32 %v1273_v53, %v1212_v48  ;;  %v3059_v0 = vsel %vm196_vm0, %v221_v49, %v222_v55  ;;  %v2735_v55 = vld [vmem:[#allocation7 + $0x8] sm:$0xff] }
  0x1d   :  { %5104 = vst [vmem:[#allocation15_spill] sm:$0xff] %v3056_v62  ;;  %2752 = vmatpush.bf16.msra.mxu2 %v2738_v34  ;;  %2753 = vmatpush.bf16.msra.mxu3 %v2738_v34  ;;  %v3062_v1 = vsel %vm196_vm0, %v224_v56, %v225_v57  ;;  %v3065_v6 = vsel %vm196_vm0, 0.0, %v221_v49  ;;  %v3073_v9 = vsel %vm196_vm0, 0.0, %v224_v56  ;;  %v411_v10 = vrot.slane %v2989_v23, 1 }
  0x1e   :  { %5105 = vst [vmem:[#allocation16_spill] sm:$0xff] %v3059_v0  ;;  %v1453_v7 = vadd.f32 %v1393_v36, %v1332_v61  ;;  %v412_v11 = vrot.slane %v3002_v28, 1  ;;  %v1454_v12 = vadd.f32 %v1394_v37, %v1333_v63  ;;  %v414_v15 = vrot.slane %v3015_v33, 1 }
  0x1f   :  { %5106 = vst [vmem:[#allocation17_spill] sm:$0xff] %v3065_v6  ;;  %v415_v16 = vrot.slane %v3031_v42, 1  ;;  %v417_v27 = vrot.slane %v3033_v43, 1  ;;  %v418_v38 = vrot.slane %v3035_v44, 1  ;;  %v3094_v45 = vperm.slane %v2965_v13, 0 }
  0x20   :  { %2133 = vmatpush.bf16.msra.mxu0 %v2737_v58  ;;  %2754 = vmatpush.bf16.msra.mxu1 %v2737_v58  ;;  %v1577_v34 = vadd.f32 %v1453_v7, %v1146_v59  ;;  %v3081_v36 = vsel %vm389_vm1, %v411_v10, %v412_v11  ;;  %v3085_v39 = vsel %vm389_vm1, %v412_v11, 0.0  ;;  %v1578_v37 = vadd.f32 %v1454_v12, %v1147_v60 }
  0x21   :  { %5107 = vst [vmem:[#allocation18_spill] sm:$0xff] %v3081_v36  ;;  %2755 = vmatpush.bf16.msra.mxu2 %v2737_v58  ;;  %2756 = vmatpush.bf16.msra.mxu3 %v2737_v58  ;;  %v3088_v40 = vsel %vm389_vm1, %v414_v15, %v415_v16  ;;  %v3091_v41 = vsel %vm389_vm1, %v415_v16, 0.0  ;;  %v3098_v47 = vsel %vm389_vm1, %v417_v27, %v418_v38  ;;  %v3101_v48 = vsel %vm389_vm1, %v418_v38, 0.0  ;;  %v2734_v27 = vld [vmem:[#allocation7] sm:$0xff] }
  0x22   :  { %5108 = vst [vmem:[#allocation19_spill] sm:$0xff] %v3085_v39  ;;  %v1645_v46 = vadd.f32 %v3070_v8, %v1577_v34  ;;  %v3104_v49 = vperm.slane %v2965_v13, 1  ;;  %v1646_v50 = vadd.f32 %v3070_v8, %v1578_v37  ;;  %v599_v51 = vmul.f32 %v3094_v45, %v3056_v62 }
  0x23   :  { %5109 = vst [vmem:[#allocation20_spill] sm:$0xff] %v3088_v40  ;;  %v600_v52 = vmul.f32 %v3094_v45, %v3050_v54  ;;  %v3112_v53 = vperm.slane %v2965_v13, 2  ;;  %v904_v59 = vmul.f32 %v2973_v17, %v3065_v6  ;;  %v905_v63 = vmul.f32 %v2973_v17, %v3059_v0 }
  0x24   :  { %5110 = vst [vmem:[#allocation21_spill] sm:$0xff] %v3091_v41  ;;  %2134 = vmatpush.bf16.msra.mxu0 %v2736_v29  ;;  %2757 = vmatpush.bf16.msra.mxu1 %v2736_v29  ;;  %v1709_v56 = vadd.f32 3.0, %v1645_v46  ;;  %v660_v57 = vmul.f32 %v3104_v49, %v2989_v23  ;;  %v661_v58 = vmul.f32 %v3104_v49, %v3002_v28  ;;  %v1710_v60 = vadd.f32 3.0, %v1646_v50 }
  0x25   :  { %5111 = vst [vmem:[#allocation22_spill] sm:$0xff] %v3098_v47  ;;  %2758 = vmatpush.bf16.msra.mxu2 %v2736_v29  ;;  %2759 = vmatpush.bf16.msra.mxu3 %v2736_v29  ;;  %v781_v13 = vmul.f32 %v3112_v53, %v3081_v36  ;;  %v782_v61 = vmul.f32 %v3112_v53, %v3085_v39 }
  0x26   :  { %5112 = vst [vmem:[#allocation23_spill] sm:$0xff] %v3101_v48  ;;  %v1773_v7 = vmax.f32 %v1709_v56, 0.0  ;;  %v720_v23 = vadd.f32 %v660_v57, %v599_v51  ;;  %v721_v10 = vadd.f32 %v661_v58, %v600_v52  ;;  %v969_v28 = vmul.f32 %v3007_v30, %v3015_v33 }
  0x27   :  { %v1774_v11 = vmax.f32 %v1710_v60, 0.0  ;;  %v970_v12 = vmul.f32 %v3007_v30, %v3031_v42  ;;  %v1098_v15 = vmul.f32 %v3010_v31, %v3088_v40  ;;  %v1099_v16 = vmul.f32 %v3010_v31, %v3091_v41 }
  0x28   :  { %2135 = vmatpush.bf16.msra.mxu0 %v2735_v55  ;;  %2760 = vmatpush.bf16.msra.mxu1 %v2735_v55  ;;  %v1837_v29 = vmin.f32 %v1773_v7, 6.0  ;;  %v841_v34 = vadd.f32 %v781_v13, %v720_v23  ;;  %v842_v38 = vadd.f32 %v782_v61, %v721_v10  ;;  %v1033_v37 = vadd.f32 %v969_v28, %v904_v59  ;;  %v3142_v61 = vld [vmem:[#allocation2 + $0x100] sm:$0xff]  ;;  %v3144_v59 = vld [vmem:[#allocation2 + $0x108] sm:$0xff]  ;;  %v3152_v10 = vld [vmem:[#allocation2 + $0x118] sm:$0xff] }
  0x29   :  { %2761 = vmatpush.bf16.msra.mxu2 %v2735_v55  ;;  %2762 = vmatpush.bf16.msra.mxu3 %v2735_v55  ;;  %v1838_v51 = vmin.f32 %v1774_v11, 6.0  ;;  %v1034_v52 = vadd.f32 %v970_v12, %v905_v63  ;;  %v1227_v56 = vmul.f32 %v3013_v32, %v3073_v9  ;;  %v1228_v57 = vmul.f32 %v3013_v32, %v3062_v1 }
  0x2a   :  { %v1901_v58 = vmul.f32 %v1837_v29, %v1645_v46  ;;  %v1162_v60 = vadd.f32 %v1098_v15, %v1033_v37  ;;  %v1288_v39 = vmul.f32 %v3018_v35, %v3033_v43  ;;  %v1289_v13 = vmul.f32 %v3018_v35, %v3035_v44  ;;  %5113 = vst [vmem:[#allocation24_spill] sm:$0xff] %v3142_v61  ;;  %v3150_v46 = vld [vmem:[#allocation2 + $0x110] sm:$0xff] }
  0x2b   :  { %5114 = vst [vmem:[#allocation25_spill] sm:$0xff] %v3144_v59  ;;  %v1902_v55 = vmul.f32 %v1838_v51, %v1646_v50  ;;  %v1163_v63 = vadd.f32 %v1099_v16, %v1034_v52  ;;  %v1409_v7 = vmul.f32 %v2987_v22, %v3098_v47  ;;  %v1410_v23 = vmul.f32 %v2987_v22, %v3101_v48 }
  0x2c   :  { %5115 = vst [vmem:[#allocation26_spill] sm:$0xff] %v3150_v46  ;;  %2136 = vmatpush.bf16.msra.mxu0 %v2734_v27  ;;  %2763 = vmatpush.bf16.msra.mxu1 %v2734_v27  ;;  %v1965_v28 = vmul.f32 0.16666667, %v1901_v58  ;;  %v1348_v11 = vadd.f32 %v1288_v39, %v1227_v56  ;;  %v1349_v12 = vadd.f32 %v1289_v13, %v1228_v57  ;;  %v245_v29 = vrot.slane %v3142_v61, 7 }
  0x2d   :  { %5116 = vst [vmem:[#allocation27_spill] sm:$0xff] %v3152_v10  ;;  %v1529_v15 = vadd.f32 %v1162_v60, %v841_v34  ;;  %2764 = vmatpush.bf16.msra.mxu2 %v2734_v27  ;;  %2765 = vmatpush.bf16.msra.mxu3 %v2734_v27  ;;  %v1966_v50 = vmul.f32 0.16666667, %v1902_v55  ;;  %v1530_v16 = vadd.f32 %v1163_v63, %v842_v38  ;;  %v246_v37 = vrot.slane %v3144_v59, 7 }
  0x2e   :  { %v1469_v51 = vadd.f32 %v1409_v7, %v1348_v11  ;;  %v1470_v52 = vadd.f32 %v1410_v23, %v1349_v12  ;;  %v248_v36 = vrot.slane %v3150_v46, 7  ;;  %v249_v54 = vrot.slane %v3152_v10, 7 }
  0x2f   :  { %v2029_v62 = vpack.c.bf16 %v1966_v50, %v1965_v28  ;;  %v3159_v58 = vsel %vm196_vm0, %v245_v29, %v246_v37  ;;  %v3162_v39 = vsel %vm196_vm0, 0.0, %v245_v29  ;;  %v438_v27 = vrot.slane %v3142_v61, 1 }
  0x30   :  { %5117 = vst [vmem:[#allocation28_spill] sm:$0xff] %v3159_v58  ;;  %v1593_v34 = vadd.f32 %v1529_v15, %v1469_v51  ;;  %v1594_v38 = vadd.f32 %v1530_v16, %v1470_v52  ;;  %v3166_v56 = vsel %vm196_vm0, %v248_v36, %v249_v54  ;;  %v3169_v57 = vsel %vm196_vm0, 0.0, %v248_v36 }
  0x31   :  { %5118 = vst [vmem:[#allocation29_spill] sm:$0xff] %v3162_v39  ;;  %2137 = vmatmul.bf16.vlgmr.msra.gmra.mxu0 %v2029_v62  ;;  %v439_v60 = vrot.slane %v3144_v59, 1  ;;  %v441_v13 = vrot.slane %v3150_v46, 1  ;;  %v442_v55 = vrot.slane %v3152_v10, 1  ;;  %v920_v63 = vmul.f32 %v2973_v17, %v3162_v39 }
  0x32   :  { %5119 = vst [vmem:[#allocation30_spill] sm:$0xff] %v3166_v56  ;;  %v1661_v7 = vadd.f32 %v3070_v8, %v1593_v34  ;;  %v1662_v23 = vadd.f32 %v3070_v8, %v1594_v38  ;;  %v921_v54 = vmul.f32 %v2973_v17, %v3159_v58  ;;  %v985_v36 = vmul.f32 %v3007_v30, %v3142_v61  ;;  %v3218_v61 = vld [vmem:[#allocation2 + $0x198] sm:$0xff] }
  0x33   :  { %5120 = vst [vmem:[#allocation31_spill] sm:$0xff] %v3169_v57  ;;  %v3183_v62 = vsel %vm389_vm1, %v438_v27, %v439_v60  ;;  %v3186_v28 = vsel %vm389_vm1, %v441_v13, %v442_v55  ;;  %v3189_v11 = vsel %vm389_vm1, %v439_v60, 0.0  ;;  %v3192_v12 = vsel %vm389_vm1, %v442_v55, 0.0  ;;  %v114_v55 = vld [vmem:[#allocation2 + $0x170] sm:$0xff] }
  0x34   :  { %5121 = vst [vmem:[#allocation32_spill] sm:$0xff] %v3183_v62  ;;  %v1725_v15 = vadd.f32 3.0, %v1661_v7  ;;  %v1726_v50 = vadd.f32 3.0, %v1662_v23  ;;  %v986_v16 = vmul.f32 %v3007_v30, %v3144_v59  ;;  %v1049_v29 = vadd.f32 %v985_v36, %v920_v63  ;;  %v115_v63 = vld [vmem:[#allocation2 + $0x178] sm:$0xff]  ;;  %v3206_v36 = vld [vmem:[#allocation2 + $0x180] sm:$0xff]  ;;  %v3216_v59 = vld [vmem:[#allocation2 + $0x190] sm:$0xff] }
  0x35   :  { %5122 = vst [vmem:[#allocation33_spill] sm:$0xff] %v3186_v28  ;;  %v1114_v37 = vmul.f32 %v3010_v31, %v3183_v62  ;;  %v1115_v51 = vmul.f32 %v3010_v31, %v3189_v11  ;;  %v1241_v52 = vmul.f32 %v3013_v32, %v3169_v57  ;;  %v1242_v27 = vmul.f32 %v3013_v32, %v3166_v56 }
  0x36   :  { %5123 = vst [vmem:[#allocation34_spill] sm:$0xff] %v3189_v11  ;;  %v1789_v34 = vmax.f32 %v1725_v15, 0.0  ;;  %v1790_v38 = vmax.f32 %v1726_v50, 0.0  ;;  %v1050_v60 = vadd.f32 %v986_v16, %v921_v54  ;;  %v1302_v13 = vmul.f32 %v3018_v35, %v3150_v46  ;;  %v3214_v15 = vld [vmem:[#allocation2 + $0x188] sm:$0xff] }
  0x37   :  { %5124 = vst [vmem:[#allocation35_spill] sm:$0xff] %v3192_v12  ;;  %v1178_v62 = vadd.f32 %v1114_v37, %v1049_v29  ;;  %v1303_v11 = vmul.f32 %v3018_v35, %v3152_v10  ;;  %v1423_v57 = vmul.f32 %v2987_v22, %v3186_v28  ;;  %v1424_v56 = vmul.f32 %v2987_v22, %v3192_v12 }
  0x38   :  { %5125 = vst [vmem:[#allocation36_spill] sm:$0xff] %v3214_v15  ;;  %v1853_v54 = vmin.f32 %v1789_v34, 6.0  ;;  %v1854_v50 = vmin.f32 %v1790_v38, 6.0  ;;  %v1179_v16 = vadd.f32 %v1115_v51, %v1050_v60  ;;  %v1362_v46 = vadd.f32 %v1302_v13, %v1241_v52 }
  0x39   :  { %5126 = vst [vmem:[#allocation37_spill] sm:$0xff] %v3216_v59  ;;  %v1363_v29 = vadd.f32 %v1303_v11, %v1242_v27  ;;  %v266_v37 = vrot.slane %v114_v55, 7  ;;  %v267_v58 = vrot.slane %v115_v63, 7  ;;  %v269_v10 = vrot.slane %v3206_v36, 7 }
  0x3a   :  { %5127 = vst [vmem:[#allocation38_spill] sm:$0xff] %v3218_v61  ;;  %v1917_v39 = vmul.f32 %v1853_v54, %v1661_v7  ;;  %v1918_v28 = vmul.f32 %v1854_v50, %v1662_v23  ;;  %v1483_v48 = vadd.f32 %v1423_v57, %v1362_v46  ;;  %v270_v12 = vrot.slane %v3214_v15, 7 }
  0x3b   :  { %v1484_v47 = vadd.f32 %v1424_v56, %v1363_v29  ;;  %v3223_v34 = vsel %vm196_vm0, %v266_v37, %v267_v58  ;;  %v272_v51 = vrot.slane %v3216_v59, 7  ;;  %v273_v52 = vrot.slane %v3218_v61, 7 }
  0x3c   :  { %5128 = vst [vmem:[#allocation39_spill] sm:$0xff] %v3223_v34  ;;  %v1981_v38 = vmul.f32 0.16666667, %v1917_v39  ;;  %v1982_v60 = vmul.f32 0.16666667, %v1918_v28  ;;  %v1609_v11 = vadd.f32 %v1483_v48, %v1178_v62  ;;  %v3228_v27 = vsel %vm196_vm0, %v269_v10, %v270_v12 }
  0x3d   :  { %5129 = vst [vmem:[#allocation40_spill] sm:$0xff] %v3228_v27  ;;  %v1610_v13 = vadd.f32 %v1484_v47, %v1179_v16  ;;  %v3231_v7 = vsel %vm196_vm0, %v272_v51, %v273_v52  ;;  %v3234_v46 = vsel %vm196_vm0, 0.0, %v266_v37  ;;  %v3237_v58 = vsel %vm196_vm0, 0.0, %v269_v10 }
  0x3e   :  { %5130 = vst [vmem:[#allocation41_spill] sm:$0xff] %v3231_v7  ;;  %v2037_v56 = vpack.c.bf16 %v1982_v60, %v1981_v38  ;;  %v1677_v57 = vadd.f32 %v3070_v8, %v1609_v11  ;;  %v3241_v39 = vsel %vm196_vm0, 0.0, %v272_v51  ;;  %v459_v48 = vrot.slane %v114_v55, 1 }
  0x3f   :  { %5131 = vst [vmem:[#allocation42_spill] sm:$0xff] %v3234_v46  ;;  %v1678_v23 = vadd.f32 %v3070_v8, %v1610_v13  ;;  %v460_v62 = vrot.slane %v115_v63, 1  ;;  %v462_v47 = vrot.slane %v3206_v36, 1  ;;  %v463_v28 = vrot.slane %v3214_v15, 1 }
  0x40   :  { %5132 = vst [vmem:[#allocation43_spill] sm:$0xff] %v3237_v58  ;;  %2177 = vmatmul.bf16.vlgmr.msra.gmra.mxu1 %v2037_v56  ;;  %v1741_v12 = vadd.f32 3.0, %v1677_v57  ;;  %v465_v54 = vrot.slane %v3216_v59, 1  ;;  %v466_v10 = vrot.slane %v3218_v61, 1  ;;  %v629_v50 = vmul.f32 %v3094_v45, %v3234_v46 }
  0x41   :  { %v1742_v16 = vadd.f32 3.0, %v1678_v23  ;;  %v3251_v29 = vsel %vm389_vm1, %v459_v48, %v460_v62  ;;  %v3254_v37 = vsel %vm389_vm1, %v462_v47, %v463_v28  ;;  %v3257_v51 = vsel %vm389_vm1, %v460_v62, 0.0 }
  0x42   :  { %5133 = vst [vmem:[#allocation44_spill] sm:$0xff] %v3251_v29  ;;  %v1805_v52 = vmax.f32 %v1741_v12, 0.0  ;;  %v3260_v38 = vsel %vm389_vm1, %v465_v54, %v466_v10  ;;  %v3263_v60 = vsel %vm389_vm1, %v463_v28, 0.0  ;;  %v3266_v11 = vsel %vm389_vm1, %v466_v10, 0.0 }
  0x43   :  { %5134 = vst [vmem:[#allocation45_spill] sm:$0xff] %v3254_v37  ;;  %v1806_v13 = vmax.f32 %v1742_v16, 0.0  ;;  %v630_v56 = vmul.f32 %v3094_v45, %v3223_v34  ;;  %v690_v48 = vmul.f32 %v3104_v49, %v114_v55  ;;  %v691_v47 = vmul.f32 %v3104_v49, %v115_v63 }
  0x44   :  { %5135 = vst [vmem:[#allocation46_spill] sm:$0xff] %v3257_v51  ;;  %v1869_v62 = vmin.f32 %v1805_v52, 6.0  ;;  %v811_v12 = vmul.f32 %v3112_v53, %v3251_v29  ;;  %v812_v54 = vmul.f32 %v3112_v53, %v3257_v51  ;;  %v936_v28 = vmul.f32 %v2973_v17, %v3237_v58 }
  0x45   :  { %5136 = vst [vmem:[#allocation47_spill] sm:$0xff] %v3263_v60  ;;  %v1870_v10 = vmin.f32 %v1806_v13, 6.0  ;;  %v750_v46 = vadd.f32 %v690_v48, %v629_v50  ;;  %v751_v16 = vadd.f32 %v691_v47, %v630_v56  ;;  %v937_v34 = vmul.f32 %v2973_v17, %v3228_v27  ;;  %v3290_v47 = vld [vmem:[#allocation2 + $0x20] sm:$0xff] }
  0x46   :  { %5137 = vst [vmem:[#allocation48_spill] sm:$0xff] %v3266_v11  ;;  %v1933_v44 = vmul.f32 %v1869_v62, %v1677_v57  ;;  %v1001_v55 = vmul.f32 %v3007_v30, %v3206_v36  ;;  %v1002_v63 = vmul.f32 %v3007_v30, %v3214_v15  ;;  %v1130_v52 = vmul.f32 %v3010_v31, %v3254_v37 }
  0x47   :  { %v1934_v51 = vmul.f32 %v1870_v10, %v1678_v23  ;;  %v871_v29 = vadd.f32 %v811_v12, %v750_v46  ;;  %v872_v43 = vadd.f32 %v812_v54, %v751_v16  ;;  %v1131_v50 = vmul.f32 %v3010_v31, %v3263_v60  ;;  %v3298_v12 = vld [vmem:[#allocation2 + $0x28] sm:$0xff] }
  0x48   :  { %v1997_v13 = vmul.f32 0.16666667, %v1933_v44  ;;  %v1065_v56 = vadd.f32 %v1001_v55, %v936_v28  ;;  %v1066_v48 = vadd.f32 %v1002_v63, %v937_v34  ;;  %v1257_v57 = vmul.f32 %v3013_v32, %v3241_v39 }
  0x49   :  { %v1998_v62 = vmul.f32 0.16666667, %v1934_v51  ;;  %v1258_v15 = vmul.f32 %v3013_v32, %v3231_v7  ;;  %v1318_v23 = vmul.f32 %v3018_v35, %v3216_v59  ;;  %v1319_v46 = vmul.f32 %v3018_v35, %v3218_v61 }
  0x4a   :  { %v1194_v44 = vadd.f32 %v1130_v52, %v1065_v56  ;;  %v1195_v54 = vadd.f32 %v1131_v50, %v1066_v48  ;;  %v1439_v34 = vmul.f32 %v2987_v22, %v3260_v38  ;;  %v1440_v28 = vmul.f32 %v2987_v22, %v3266_v11 }
  0x4b   :  { %v2045_v51 = vpack.c.bf16 %v1998_v62, %v1997_v13  ;;  %v1378_v10 = vadd.f32 %v1318_v23, %v1257_v57  ;;  %v1379_v16 = vadd.f32 %v1319_v46, %v1258_v15  ;;  %v203_v55 = vrot.slane %v3290_v47, 7 }
  0x4c   :  { %v1561_v63 = vadd.f32 %v1194_v44, %v871_v29  ;;  %v1562_v59 = vadd.f32 %v1195_v54, %v872_v43  ;;  %v204_v7 = vrot.slane %v3298_v12, 7  ;;  %v396_v61 = vrot.slane %v3290_v47, 1 }
  0x4d   :  { %2217 = vmatmul.bf16.vlgmr.msra.gmra.mxu2 %v2045_v51  ;;  %v1499_v52 = vadd.f32 %v1439_v34, %v1378_v10  ;;  %v1500_v50 = vadd.f32 %v1440_v28, %v1379_v16  ;;  %v3308_v56 = vsel %vm196_vm0, 0.0, %v203_v55  ;;  %v397_v48 = vrot.slane %v3298_v12, 1 }
  0x4e   :  { %v3312_v13 = vsel %vm196_vm0, %v203_v55, %v204_v7  ;;  %v585_v15 = vmul.f32 %v3094_v45, %v2968_v14  ;;  %v586_v43 = vmul.f32 %v3094_v45, %v2976_v18  ;;  %v646_v29 = vmul.f32 %v3104_v49, %v2951_v2 }
  0x4f   :  { %v1625_v57 = vadd.f32 %v1561_v63, %v1499_v52  ;;  %v1626_v62 = vadd.f32 %v1562_v59, %v1500_v50  ;;  %v3321_v23 = vsel %vm389_vm1, %v396_v61, %v397_v48  ;;  %v3324_v46 = vsel %vm389_vm1, %v397_v48, 0.0 }
  0x50   :  { %5138 = vst [vmem:[#allocation49_spill] sm:$0xff] %v3321_v23  ;;  %v647_v7 = vmul.f32 %v3104_v49, %v2953_v3  ;;  %v706_v44 = vadd.f32 %v646_v29, %v585_v15  ;;  %v767_v14 = vmul.f32 %v3112_v53, %v2985_v21  ;;  %v768_v18 = vmul.f32 %v3112_v53, %v2995_v25 }
  0x51   :  { %v1693_v2 = vadd.f32 %v3070_v8, %v1625_v57  ;;  %v1694_v59 = vadd.f32 %v3070_v8, %v1626_v62  ;;  %v890_v61 = vmul.f32 %v2973_v17, %v2982_v20  ;;  %v891_v54 = vmul.f32 %v2973_v17, %v2979_v19 }
  0x52   :  { %v707_v34 = vadd.f32 %v647_v7, %v586_v43  ;;  %v827_v28 = vadd.f32 %v767_v14, %v706_v44  ;;  %v955_v3 = vmul.f32 %v3007_v30, %v2955_v4  ;;  %v956_v21 = vmul.f32 %v3007_v30, %v2957_v5  ;;  %v3352_v43 = vld [vmem:[#allocation2 + $0xa0] sm:$0xff]  ;;  %v3358_v44 = vld [vmem:[#allocation2 + $0xa8] sm:$0xff] }
  0x53   :  { %v1757_v51 = vadd.f32 3.0, %v1693_v2  ;;  %v1758_v25 = vadd.f32 3.0, %v1694_v59  ;;  %v1084_v10 = vmul.f32 %v3010_v31, %v2992_v24  ;;  %v1085_v16 = vmul.f32 %v3010_v31, %v2998_v26  ;;  %5139 = vst [vmem:[#allocation50_spill] sm:$0xff] %v3352_v43 }
  0x54   :  { %v828_v55 = vadd.f32 %v768_v18, %v707_v34  ;;  %v1019_v63 = vadd.f32 %v955_v3, %v890_v61  ;;  %v1020_v52 = vadd.f32 %v956_v21, %v891_v54  ;;  %v1213_v50 = vmul.f32 %v3013_v32, %v3308_v56  ;;  %5140 = vst [vmem:[#allocation51_spill] sm:$0xff] %v3358_v44 }
  0x55   :  { %v1821_v48 = vmax.f32 %v1757_v51, 0.0  ;;  %v1822_v15 = vmax.f32 %v1758_v25, 0.0  ;;  %v1214_v4 = vmul.f32 %v3013_v32, %v3312_v13  ;;  %v1274_v5 = vmul.f32 %v3018_v35, %v3290_v47 }
  0x56   :  { %v1148_v29 = vadd.f32 %v1084_v10, %v1019_v63  ;;  %v1149_v57 = vadd.f32 %v1085_v16, %v1020_v52  ;;  %v1275_v62 = vmul.f32 %v3018_v35, %v3298_v12  ;;  %v1395_v7 = vmul.f32 %v2987_v22, %v3321_v23 }
  0x57   :  { %v1885_v14 = vmin.f32 %v1821_v48, 6.0  ;;  %v1886_v18 = vmin.f32 %v1822_v15, 6.0  ;;  %v1334_v61 = vadd.f32 %v1274_v5, %v1213_v50  ;;  %v1396_v54 = vmul.f32 %v2987_v22, %v3324_v46 }
  0x58   :  { %v1335_v34 = vadd.f32 %v1275_v62, %v1214_v4  ;;  %v1515_v3 = vadd.f32 %v1148_v29, %v827_v28  ;;  %v1516_v21 = vadd.f32 %v1149_v57, %v828_v55  ;;  %v227_v51 = vrot.slane %v3352_v43, 7 }
  0x59   :  { %v1949_v25 = vmul.f32 %v1885_v14, %v1693_v2  ;;  %v1950_v10 = vmul.f32 %v1886_v18, %v1694_v59  ;;  %v1455_v16 = vadd.f32 %v1395_v7, %v1334_v61  ;;  %v228_v63 = vrot.slane %v3358_v44, 7 }
  0x5a   :  { %v1456_v52 = vadd.f32 %v1396_v54, %v1335_v34  ;;  %v3365_v23 = vsel %vm196_vm0, 0.0, %v227_v51  ;;  %v420_v48 = vrot.slane %v3352_v43, 1  ;;  %v421_v50 = vrot.slane %v3358_v44, 1 }
  0x5b   :  { %5141 = vst [vmem:[#allocation52_spill] sm:$0xff] %v3365_v23  ;;  %v2013_v15 = vmul.f32 0.16666667, %v1949_v25  ;;  %v2014_v5 = vmul.f32 0.16666667, %v1950_v10  ;;  %v1579_v4 = vadd.f32 %v1515_v3, %v1455_v16  ;;  %v3370_v28 = vsel %vm196_vm0, %v227_v51, %v228_v63  ;;  %v5145_v16 = vld [vmem:[#allocation12_spill] sm:$0xff] }
  0x5c   :  { %5142 = vst [vmem:[#allocation53_spill] sm:$0xff] %v3370_v28  ;;  %v1580_v55 = vadd.f32 %v1516_v21, %v1456_v52  ;;  %v3373_v2 = vsel %vm389_vm1, %v420_v48, %v421_v50  ;;  %v3376_v59 = vsel %vm389_vm1, %v421_v50, 0.0  ;;  %v601_v29 = vmul.f32 %v3094_v45, %v3065_v6  ;;  %v5146_v63 = vld [vmem:[#allocation13_spill] sm:$0xff] }
  0x5d   :  { %5143 = vst [vmem:[#allocation54_spill] sm:$0xff] %v3373_v2  ;;  %v2053_v57 = vpack.c.bf16 %v2014_v5, %v2013_v15  ;;  %v1647_v62 = vadd.f32 %v3070_v8, %v1579_v4  ;;  %v602_v7 = vmul.f32 %v3094_v45, %v3059_v0  ;;  %v662_v14 = vmul.f32 %v3104_v49, %v3015_v33  ;;  %v5147_v15 = vld [vmem:[#allocation22_spill] sm:$0xff]  ;;  %v5148_v4 = vld [vmem:[#allocation23_spill] sm:$0xff] }
  0x5e   :  { %5144 = vst [vmem:[#allocation55_spill] sm:$0xff] %v3376_v59  ;;  %v1648_v18 = vadd.f32 %v3070_v8, %v1580_v55  ;;  %v663_v61 = vmul.f32 %v3104_v49, %v3031_v42  ;;  %v783_v54 = vmul.f32 %v3112_v53, %v3088_v40  ;;  %v784_v34 = vmul.f32 %v3112_v53, %v3091_v41 }
  0x5f   :  { %2257 = vmatmul.bf16.vlgmr.msra.gmra.mxu3 %v2053_v57  ;;  %v1711_v3 = vadd.f32 3.0, %v1647_v62  ;;  %v722_v21 = vadd.f32 %v662_v14, %v601_v29  ;;  %v906_v51 = vmul.f32 %v2973_v17, %v3073_v9  ;;  %v907_v33 = vmul.f32 %v2973_v17, %v3062_v1 }
  0x60   :  { %v1712_v25 = vadd.f32 3.0, %v1648_v18  ;;  %v723_v10 = vadd.f32 %v663_v61, %v602_v7  ;;  %v971_v42 = vmul.f32 %v3007_v30, %v5145_v16  ;;  %v972_v52 = vmul.f32 %v3007_v30, %v5146_v63 }
  0x61   :  { %v1775_v48 = vmax.f32 %v1711_v3, 0.0  ;;  %v843_v50 = vadd.f32 %v783_v54, %v722_v21  ;;  %v1100_v5 = vmul.f32 %v3010_v31, %v5147_v15  ;;  %v1101_v55 = vmul.f32 %v3010_v31, %v5148_v4 }
  0x62   :  { %v1776_v29 = vmax.f32 %v1712_v25, 0.0  ;;  %v844_v57 = vadd.f32 %v784_v34, %v723_v10  ;;  %v1035_v14 = vadd.f32 %v971_v42, %v906_v51  ;;  %v1036_v41 = vadd.f32 %v972_v52, %v907_v33  ;;  %v3412_v25 = vld [vmem:[#allocation2 + $0x120] sm:$0xff]  ;;  %v3414_v34 = vld [vmem:[#allocation2 + $0x128] sm:$0xff] }
  0x63   :  { %v1839_v40 = vmin.f32 %v1775_v48, 6.0  ;;  %v1229_v7 = vmul.f32 %v3013_v32, %v3365_v23  ;;  %v1230_v61 = vmul.f32 %v3013_v32, %v3370_v28  ;;  %v1290_v54 = vmul.f32 %v3018_v35, %v3352_v43  ;;  %5149 = vst [vmem:[#allocation12_spill] sm:$0xff] %v3412_v25 }
  0x64   :  { %v1840_v3 = vmin.f32 %v1776_v29, 6.0  ;;  %v1164_v21 = vadd.f32 %v1100_v5, %v1035_v14  ;;  %v1165_v16 = vadd.f32 %v1101_v55, %v1036_v41  ;;  %v1291_v63 = vmul.f32 %v3018_v35, %v3358_v44  ;;  %5150 = vst [vmem:[#allocation13_spill] sm:$0xff] %v3414_v34 }
  0x65   :  { %v1903_v51 = vmul.f32 %v1839_v40, %v1647_v62  ;;  %v1350_v33 = vadd.f32 %v1290_v54, %v1229_v7  ;;  %v1411_v10 = vmul.f32 %v2987_v22, %v3373_v2  ;;  %v1412_v42 = vmul.f32 %v2987_v22, %v3376_v59 }
  0x66   :  { %v1904_v52 = vmul.f32 %v1840_v3, %v1648_v18  ;;  %v1351_v48 = vadd.f32 %v1291_v63, %v1230_v61  ;;  %v1531_v29 = vadd.f32 %v1164_v21, %v843_v50  ;;  %v1532_v5 = vadd.f32 %v1165_v16, %v844_v57  ;;  %v5153_v50 = vld [vmem:[#allocation29_spill] sm:$0xff] }
  0x67   :  { %v1967_v41 = vmul.f32 0.16666667, %v1903_v51  ;;  %v1471_v55 = vadd.f32 %v1411_v10, %v1350_v33  ;;  %v251_v14 = vrot.slane %v3412_v25, 7  ;;  %v252_v0 = vrot.slane %v3414_v34, 7  ;;  %v5155_v51 = vld [vmem:[#allocation28_spill] sm:$0xff] }
  0x68   :  { %v1968_v6 = vmul.f32 0.16666667, %v1904_v52  ;;  %v1472_v44 = vadd.f32 %v1412_v42, %v1351_v48  ;;  %v444_v40 = vrot.slane %v3412_v25, 1  ;;  %v445_v62 = vrot.slane %v3414_v34, 1  ;;  %v5156_v33 = vld [vmem:[#allocation24_spill] sm:$0xff]  ;;  %v5157_v42 = vld [vmem:[#allocation25_spill] sm:$0xff] }
  0x69   :  { %v1595_v7 = vadd.f32 %v1531_v29, %v1471_v55  ;;  %v3425_v54 = vsel %vm196_vm0, %v251_v14, %v252_v0  ;;  %v3428_v18 = vsel %vm196_vm0, 0.0, %v251_v14  ;;  %v615_v57 = vmul.f32 %v3094_v45, %v5153_v50  ;;  %v5159_v29 = vld [vmem:[#allocation34_spill] sm:$0xff] }
  0x6a   :  { %5151 = vst [vmem:[#allocation22_spill] sm:$0xff] %v3425_v54  ;;  %v2030_v61 = vpack.c.bf16 %v1968_v6, %v1967_v41  ;;  %v1596_v3 = vadd.f32 %v1532_v5, %v1472_v44  ;;  %v3433_v21 = vsel %vm389_vm1, %v444_v40, %v445_v62  ;;  %v3436_v16 = vsel %vm389_vm1, %v445_v62, 0.0  ;;  %v5158_v44 = vld [vmem:[#allocation32_spill] sm:$0xff]  ;;  %v5160_v41 = vld [vmem:[#allocation31_spill] sm:$0xff] }
  0x6b   :  { %5152 = vst [vmem:[#allocation23_spill] sm:$0xff] %v3428_v18  ;;  %v1663_v63 = vadd.f32 %v3070_v8, %v1595_v7  ;;  %v616_v0 = vmul.f32 %v3094_v45, %v5155_v51  ;;  %v676_v10 = vmul.f32 %v3104_v49, %v5156_v33  ;;  %v677_v52 = vmul.f32 %v3104_v49, %v5157_v42  ;;  %v5161_v7 = vld [vmem:[#allocation30_spill] sm:$0xff] }
  0x6c   :  { %5154 = vst [vmem:[#allocation29_spill] sm:$0xff] %v3436_v16  ;;  %2142 = vmatmul.bf16.gmra.mxu0 %v2030_v61  ;;  %v1664_v6 = vadd.f32 %v3070_v8, %v1596_v3  ;;  %v797_v48 = vmul.f32 %v3112_v53, %v5158_v44  ;;  %v798_v5 = vmul.f32 %v3112_v53, %v5159_v29  ;;  %v5162_v33 = vld [vmem:[#allocation26_spill] sm:$0xff]  ;;  %v5163_v3 = vld [vmem:[#allocation27_spill] sm:$0xff]  ;;  %v5164_v44 = vld [vmem:[#allocation33_spill] sm:$0xff] }
  0x6d   :  { %v922_v55 = vmul.f32 %v2973_v17, %v5160_v41  ;;  %v1727_v14 = vadd.f32 3.0, %v1663_v63  ;;  %v736_v40 = vadd.f32 %v676_v10, %v615_v57  ;;  %v737_v62 = vadd.f32 %v677_v52, %v616_v0  ;;  %v5165_v41 = vld [vmem:[#allocation35_spill] sm:$0xff] }
  0x6e   :  { %v923_v50 = vmul.f32 %v2973_v17, %v5161_v7  ;;  %v1728_v51 = vadd.f32 3.0, %v1664_v6  ;;  %v987_v61 = vmul.f32 %v3007_v30, %v5162_v33  ;;  %v988_v42 = vmul.f32 %v3007_v30, %v5163_v3 }
  0x6f   :  { %v1116_v59 = vmul.f32 %v3010_v31, %v5164_v44  ;;  %v1791_v29 = vmax.f32 %v1727_v14, 0.0  ;;  %v857_v2 = vadd.f32 %v797_v48, %v736_v40  ;;  %v858_v43 = vadd.f32 %v798_v5, %v737_v62  ;;  %v3470_v5 = vld [vmem:[#allocation2 + $0x1a0] sm:$0xff] }
  0x70   :  { %v1117_v57 = vmul.f32 %v3010_v31, %v5165_v41  ;;  %v1792_v0 = vmax.f32 %v1728_v51, 0.0  ;;  %v1051_v10 = vadd.f32 %v987_v61, %v922_v55  ;;  %v1052_v52 = vadd.f32 %v988_v42, %v923_v50  ;;  %5166 = vst [vmem:[#allocation28_spill] sm:$0xff] %v3470_v5  ;;  %v3474_v50 = vld [vmem:[#allocation2 + $0x1a8] sm:$0xff] }
  0x71   :  { %v1243_v7 = vmul.f32 %v3013_v32, %v3428_v18  ;;  %v1855_v28 = vmin.f32 %v1791_v29, 6.0  ;;  %v1244_v33 = vmul.f32 %v3013_v32, %v3425_v54  ;;  %v1304_v3 = vmul.f32 %v3018_v35, %v3412_v25  ;;  %5167 = vst [vmem:[#allocation24_spill] sm:$0xff] %v3474_v50 }
  0x72   :  { %v1305_v48 = vmul.f32 %v3018_v35, %v3414_v34  ;;  %v1856_v14 = vmin.f32 %v1792_v0, 6.0  ;;  %v1180_v40 = vadd.f32 %v1116_v59, %v1051_v10  ;;  %v1181_v62 = vadd.f32 %v1117_v57, %v1052_v52 }
  0x73   :  { %v1425_v55 = vmul.f32 %v2987_v22, %v3433_v21  ;;  %v1919_v51 = vmul.f32 %v1855_v28, %v1663_v63  ;;  %v1364_v61 = vadd.f32 %v1304_v3, %v1243_v7  ;;  %v1426_v29 = vmul.f32 %v2987_v22, %v3436_v16 }
  0x74   :  { %v1365_v42 = vadd.f32 %v1305_v48, %v1244_v33  ;;  %v1920_v25 = vmul.f32 %v1856_v14, %v1664_v6  ;;  %v1547_v54 = vadd.f32 %v1180_v40, %v857_v2  ;;  %v1548_v18 = vadd.f32 %v1181_v62, %v858_v43 }
  0x75   :  { %v275_v34 = vrot.slane %v3470_v5, 7  ;;  %v1983_v41 = vmul.f32 0.16666667, %v1919_v51  ;;  %v1485_v0 = vadd.f32 %v1425_v55, %v1364_v61  ;;  %v276_v57 = vrot.slane %v3474_v50, 7  ;;  %v5173_v51 = vld [vmem:[#allocation41_spill] sm:$0xff] }
  0x76   :  { %v1486_v59 = vadd.f32 %v1426_v29, %v1365_v42  ;;  %v1984_v10 = vmul.f32 0.16666667, %v1920_v25  ;;  %v468_v28 = vrot.slane %v3470_v5, 1  ;;  %v469_v63 = vrot.slane %v3474_v50, 1 }
  0x77   :  { %v3481_v52 = vsel %vm196_vm0, 0.0, %v275_v34  ;;  %v1611_v7 = vadd.f32 %v1547_v54, %v1485_v0  ;;  %v3486_v2 = vsel %vm196_vm0, %v275_v34, %v276_v57  ;;  %v631_v43 = vmul.f32 %v3094_v45, %v3237_v58 }
  0x78   :  { %5168 = vst [vmem:[#allocation25_spill] sm:$0xff] %v3481_v52  ;;  %v1612_v33 = vadd.f32 %v1548_v18, %v1486_v59  ;;  %v2038_v6 = vpack.c.bf16 %v1984_v10, %v1983_v41  ;;  %v3491_v3 = vsel %vm389_vm1, %v468_v28, %v469_v63  ;;  %v3494_v25 = vsel %vm389_vm1, %v469_v63, 0.0  ;;  %v5172_v18 = vld [vmem:[#allocation36_spill] sm:$0xff]  ;;  %v5174_v59 = vld [vmem:[#allocation37_spill] sm:$0xff]  ;;  %v5175_v10 = vld [vmem:[#allocation38_spill] sm:$0xff] }
  0x79   :  { %5169 = vst [vmem:[#allocation32_spill] sm:$0xff] %v3486_v2  ;;  %v632_v48 = vmul.f32 %v3094_v45, %v3228_v27  ;;  %v1679_v14 = vadd.f32 %v3070_v8, %v1611_v7  ;;  %v692_v34 = vmul.f32 %v3104_v49, %v3206_v36  ;;  %v693_v40 = vmul.f32 %v3104_v49, %v5172_v18 }
  0x7a   :  { %5170 = vst [vmem:[#allocation34_spill] sm:$0xff] %v3491_v3  ;;  %v1680_v54 = vadd.f32 %v3070_v8, %v1612_v33  ;;  %2182 = vmatmul.bf16.gmra.mxu1 %v2038_v6  ;;  %v813_v41 = vmul.f32 %v3112_v53, %v3254_v37  ;;  %v814_v62 = vmul.f32 %v3112_v53, %v3263_v60 }
  0x7b   :  { %5171 = vst [vmem:[#allocation33_spill] sm:$0xff] %v3494_v25  ;;  %v938_v55 = vmul.f32 %v2973_v17, %v3241_v39  ;;  %v939_v61 = vmul.f32 %v2973_v17, %v5173_v51  ;;  %v1743_v42 = vadd.f32 3.0, %v1679_v14  ;;  %v752_v0 = vadd.f32 %v692_v34, %v631_v43 }
  0x7c   :  { %v1744_v29 = vadd.f32 3.0, %v1680_v54  ;;  %v753_v36 = vadd.f32 %v693_v40, %v632_v48  ;;  %v1003_v57 = vmul.f32 %v3007_v30, %v5174_v59  ;;  %v1004_v28 = vmul.f32 %v3007_v30, %v5175_v10 }
  0x7d   :  { %v1132_v63 = vmul.f32 %v3010_v31, %v3260_v38  ;;  %v1133_v7 = vmul.f32 %v3010_v31, %v3266_v11  ;;  %v1807_v33 = vmax.f32 %v1743_v42, 0.0  ;;  %v873_v18 = vadd.f32 %v813_v41, %v752_v0  ;;  %v3528_v42 = vld [vmem:[#allocation2 + $0x30] sm:$0xff]  ;;  %v3530_v41 = vld [vmem:[#allocation2 + $0x38] sm:$0xff] }
  0x7e   :  { %v1808_v6 = vmax.f32 %v1744_v29, 0.0  ;;  %v874_v60 = vadd.f32 %v814_v62, %v753_v36  ;;  %v1067_v37 = vadd.f32 %v1003_v57, %v938_v55  ;;  %v1068_v27 = vadd.f32 %v1004_v28, %v939_v61 }
  0x7f   :  { %v1259_v43 = vmul.f32 %v3013_v32, %v3481_v52  ;;  %v1260_v48 = vmul.f32 %v3013_v32, %v3486_v2  ;;  %v1871_v34 = vmin.f32 %v1807_v33, 6.0  ;;  %v1320_v58 = vmul.f32 %v3018_v35, %v3470_v5 }
  0x80   :  { %v1872_v40 = vmin.f32 %v1808_v6, 6.0  ;;  %v1321_v11 = vmul.f32 %v3018_v35, %v3474_v50  ;;  %v1196_v62 = vadd.f32 %v1132_v63, %v1067_v37  ;;  %v1197_v55 = vadd.f32 %v1133_v7, %v1068_v27 }
  0x81   :  { %v1441_v61 = vmul.f32 %v2987_v22, %v3491_v3  ;;  %v1442_v29 = vmul.f32 %v2987_v22, %v3494_v25  ;;  %v1935_v0 = vmul.f32 %v1871_v34, %v1679_v14  ;;  %v1380_v57 = vadd.f32 %v1320_v58, %v1259_v43  ;;  %v2778_v34 = vld [vmem:[#allocation2 + $0x18] sm:$0xff] }
  0x82   :  { %v1936_v36 = vmul.f32 %v1872_v40, %v1680_v54  ;;  %v1381_v28 = vadd.f32 %v1321_v11, %v1260_v48  ;;  %v1563_v33 = vadd.f32 %v1196_v62, %v873_v18  ;;  %v1564_v6 = vadd.f32 %v1197_v55, %v874_v60 }
  0x83   :  { %v206_v50 = vrot.slane %v3528_v42, 7  ;;  %v207_v5 = vrot.slane %v3530_v41, 7  ;;  %v1999_v2 = vmul.f32 0.16666667, %v1935_v0  ;;  %v1501_v37 = vadd.f32 %v1441_v61, %v1380_v57 }
  0x84   :  { %v2000_v52 = vmul.f32 0.16666667, %v1936_v36  ;;  %v1502_v27 = vadd.f32 %v1442_v29, %v1381_v28  ;;  %v399_v22 = vrot.slane %v3528_v42, 1  ;;  %v400_v58 = vrot.slane %v3530_v41, 1  ;;  %v5177_v28 = vld [vmem:[#allocation49_spill] sm:$0xff] }
  0x85   :  { %v3539_v63 = vsel %vm196_vm0, %v206_v50, %v207_v5  ;;  %v3542_v7 = vsel %vm196_vm0, 0.0, %v206_v50  ;;  %v1627_v60 = vadd.f32 %v1563_v33, %v1501_v37  ;;  %v587_v54 = vmul.f32 %v3094_v45, %v2982_v20  ;;  %v2777_v50 = vld [vmem:[#allocation2 + $0x10] sm:$0xff] }
  0x86   :  { %v2046_v11 = vpack.c.bf16 %v2000_v52, %v1999_v2  ;;  %v1628_v14 = vadd.f32 %v1564_v6, %v1502_v27  ;;  %v3549_v18 = vsel %vm389_vm1, %v399_v22, %v400_v58  ;;  %v3552_v43 = vsel %vm389_vm1, %v400_v58, 0.0 }
  0x87   :  { %5176 = vst [vmem:[#allocation36_spill] sm:$0xff] %v3549_v18  ;;  %v588_v5 = vmul.f32 %v3094_v45, %v2979_v19  ;;  %v648_v48 = vmul.f32 %v2777_v50, %v3104_v49  ;;  %v1695_v52 = vadd.f32 %v3070_v8, %v1627_v60  ;;  %v649_v20 = vmul.f32 %v2778_v34, %v3104_v49  ;;  %v3584_v34 = vld [vmem:[#allocation2 + $0xb0] sm:$0xff] }
  0x88   :  { %2222 = vmatmul.bf16.gmra.mxu2 %v2046_v11  ;;  %v1696_v2 = vadd.f32 %v3070_v8, %v1628_v14  ;;  %v769_v40 = vmul.f32 %v3112_v53, %v2992_v24  ;;  %v770_v55 = vmul.f32 %v3112_v53, %v2998_v26  ;;  %v892_v19 = vmul.f32 %v2973_v17, %v3308_v56 }
  0x89   :  { %v708_v62 = vadd.f32 %v648_v48, %v587_v54  ;;  %v893_v61 = vmul.f32 %v2973_v17, %v3312_v13  ;;  %v1759_v29 = vadd.f32 3.0, %v1695_v52  ;;  %v709_v36 = vadd.f32 %v649_v20, %v588_v5  ;;  %5178 = vst [vmem:[#allocation41_spill] sm:$0xff] %v3584_v34  ;;  %v3586_v20 = vld [vmem:[#allocation2 + $0xb8] sm:$0xff] }
  0x8a   :  { %v1760_v0 = vadd.f32 3.0, %v1696_v2  ;;  %v957_v8 = vmul.f32 %v3007_v30, %v3290_v47  ;;  %v958_v24 = vmul.f32 %v3007_v30, %v3298_v12  ;;  %v1086_v33 = vmul.f32 %v3010_v31, %v5177_v28  ;;  %5179 = vst [vmem:[#allocation37_spill] sm:$0xff] %v3586_v20 }
  0x8b   :  { %v829_v57 = vadd.f32 %v769_v40, %v708_v62  ;;  %v1087_v26 = vmul.f32 %v3010_v31, %v3324_v46  ;;  %v1823_v6 = vmax.f32 %v1759_v29, 0.0  ;;  %v830_v27 = vadd.f32 %v770_v55, %v709_v36  ;;  %v3588_v55 = vld [vmem:[#allocation5 + $0x8] ss:$0 sm:$0xff] }
  0x8c   :  { %v1824_v37 = vmax.f32 %v1760_v0, 0.0  ;;  %v1021_v22 = vadd.f32 %v957_v8, %v892_v19  ;;  %v1022_v58 = vadd.f32 %v958_v24, %v893_v61  ;;  %v1215_v11 = vmul.f32 %v3013_v32, %v3542_v7 }
  0x8d   :  { %v1216_v60 = vmul.f32 %v3013_v32, %v3539_v63  ;;  %v1276_v14 = vmul.f32 %v3018_v35, %v3528_v42  ;;  %v1887_v54 = vmin.f32 %v1823_v6, 6.0  ;;  %v1277_v48 = vmul.f32 %v3018_v35, %v3530_v41 }
  0x8e   :  { %v1888_v5 = vmin.f32 %v1824_v37, 6.0  ;;  %v1150_v50 = vadd.f32 %v1086_v33, %v1021_v22  ;;  %v1151_v40 = vadd.f32 %v1087_v26, %v1022_v58  ;;  %v1397_v19 = vmul.f32 %v3588_v55, %v3549_v18 }
  0x8f   :  { %v1336_v62 = vadd.f32 %v1276_v14, %v1215_v11  ;;  %v1398_v61 = vmul.f32 %v3588_v55, %v3552_v43  ;;  %v1951_v29 = vmul.f32 %v1887_v54, %v1695_v52  ;;  %v1337_v36 = vadd.f32 %v1277_v48, %v1216_v60 }
  0x90   :  { %v1952_v0 = vmul.f32 %v1888_v5, %v1696_v2  ;;  %v1517_v8 = vadd.f32 %v1150_v50, %v829_v57  ;;  %v1518_v33 = vadd.f32 %v1151_v40, %v830_v27  ;;  %v230_v6 = vrot.slane %v3584_v34, 7  ;;  %v3611_v5 = vld [vmem:[%s4891_s2] ss:$0 sm:$0xff] }
  0x91   :  { %v1457_v24 = vadd.f32 %v1397_v19, %v1336_v62  ;;  %v231_v37 = vrot.slane %v3586_v20, 7  ;;  %v2015_v26 = vmul.f32 0.16666667, %v1951_v29  ;;  %v1458_v58 = vadd.f32 %v1398_v61, %v1337_v36  ;;  %v2781_v62 = vld [vmem:[#allocation2 + $0x90] sm:$0xff] }
  0x92   :  { %v2016_v22 = vmul.f32 0.16666667, %v1952_v0  ;;  %v423_v11 = vrot.slane %v3584_v34, 1  ;;  %v3601_v52 = vsel %vm196_vm0, 0.0, %v230_v6  ;;  %v424_v2 = vrot.slane %v3586_v20, 1 }
  0x93   :  { %v1581_v14 = vadd.f32 %v1517_v8, %v1457_v24  ;;  %v3598_v18 = vsel %vm196_vm0, %v230_v6, %v231_v37  ;;  %5181 = vst [vmem:[#allocation49_spill] sm:$0xff] %v3601_v52  ;;  %v1582_v27 = vadd.f32 %v1518_v33, %v1458_v58  ;;  %v603_v60 = vmul.f32 %v3094_v45, %v3073_v9  ;;  %v5184_v33 = vld [vmem:[#allocation53_spill] sm:$0xff] }
  0x94   :  { %5180 = vst [vmem:[#allocation38_spill] sm:$0xff] %v3598_v18  ;;  %v2054_v57 = vpack.c.bf16 %v2016_v22, %v2015_v26  ;;  %v604_v54 = vmul.f32 %v3094_v45, %v3062_v1  ;;  %v3615_v48 = vsel %vm389_vm1, %v423_v11, %v424_v2  ;;  %v3618_v40 = vsel %vm389_vm1, %v424_v2, 0.0  ;;  %v2782_v1 = vld [vmem:[#allocation2 + $0x98] sm:$0xff]  ;;  %v5185_v22 = vld [vmem:[#allocation50_spill] sm:$0xff]  ;;  %v5186_v11 = vld [vmem:[#allocation51_spill] sm:$0xff] }
  0x95   :  { %v1649_v50 = vadd.f32 %v3611_v5, %v1581_v14  ;;  %5182 = vst [vmem:[#allocation56_spill] sm:$0xff] %v3615_v48  ;;  %v664_v19 = vmul.f32 %v2781_v62, %v3104_v49  ;;  %v1650_v9 = vadd.f32 %v3611_v5, %v1582_v27  ;;  %v665_v61 = vmul.f32 %v2782_v1, %v3104_v49  ;;  %v5188_v27 = vld [vmem:[#allocation55_spill] sm:$0xff] }
  0x96   :  { %5183 = vst [vmem:[#allocation57_spill] sm:$0xff] %v3618_v40  ;;  %2262 = vmatmul.bf16.gmra.mxu3 %v2054_v57  ;;  %v785_v29 = vmul.f32 %v3112_v53, %v5147_v15  ;;  %v786_v0 = vmul.f32 %v3112_v53, %v5148_v4  ;;  %v908_v24 = vmul.f32 %v2973_v17, %v3365_v23  ;;  %v5187_v57 = vld [vmem:[#allocation54_spill] sm:$0xff] }
  0x97   :  { %v1713_v36 = vadd.f32 3.0, %v1649_v50  ;;  %v724_v8 = vadd.f32 %v664_v19, %v603_v60  ;;  %v909_v6 = vmul.f32 %v2973_v17, %v5184_v33  ;;  %v1714_v37 = vadd.f32 3.0, %v1650_v9 }
  0x98   :  { %v725_v26 = vadd.f32 %v665_v61, %v604_v54  ;;  %v973_v58 = vmul.f32 %v3007_v30, %v5185_v22  ;;  %v974_v14 = vmul.f32 %v3007_v30, %v5186_v11  ;;  %v1102_v4 = vmul.f32 %v3010_v31, %v5187_v57 }
  0x99   :  { %v1777_v15 = vmax.f32 %v1713_v36, 0.0  ;;  %v845_v2 = vadd.f32 %v785_v29, %v724_v8  ;;  %v1103_v60 = vmul.f32 %v3010_v31, %v5188_v27  ;;  %v1778_v62 = vmax.f32 %v1714_v37, 0.0  ;;  %v3647_v37 = vld [vmem:[#allocation2 + $0x130] sm:$0xff] }
  0x9a   :  { %v846_v19 = vadd.f32 %v786_v0, %v725_v26  ;;  %v1037_v1 = vadd.f32 %v973_v58, %v908_v24  ;;  %v1038_v33 = vadd.f32 %v974_v14, %v909_v6  ;;  %v1231_v54 = vmul.f32 %v3013_v32, %v3601_v52  ;;  %5189 = vst [vmem:[#allocation50_spill] sm:$0xff] %v3647_v37  ;;  %v3649_v0 = vld [vmem:[#allocation2 + $0x138] sm:$0xff] }
  0x9b   :  { %v1841_v23 = vmin.f32 %v1777_v15, 6.0  ;;  %v1232_v61 = vmul.f32 %v3013_v32, %v3598_v18  ;;  %v1292_v29 = vmul.f32 %v3018_v35, %v3584_v34  ;;  %v1842_v36 = vmin.f32 %v1778_v62, 6.0  ;;  %5190 = vst [vmem:[#allocation51_spill] sm:$0xff] %v3649_v0 }
  0x9c   :  { %v1166_v8 = vadd.f32 %v1102_v4, %v1037_v1  ;;  %v1167_v57 = vadd.f32 %v1103_v60, %v1038_v33  ;;  %v1293_v27 = vmul.f32 %v3018_v35, %v3586_v20  ;;  %v1413_v26 = vmul.f32 %v3588_v55, %v3615_v48 }
  0x9d   :  { %v1905_v24 = vmul.f32 %v1841_v23, %v1649_v50  ;;  %v1352_v6 = vadd.f32 %v1292_v29, %v1231_v54  ;;  %v1414_v58 = vmul.f32 %v3588_v55, %v3618_v40  ;;  %v1906_v14 = vmul.f32 %v1842_v36, %v1650_v9 }
  0x9e   :  { %v1353_v15 = vadd.f32 %v1293_v27, %v1232_v61  ;;  %v1533_v62 = vadd.f32 %v1166_v8, %v845_v2  ;;  %v1534_v4 = vadd.f32 %v1167_v57, %v846_v19  ;;  %v254_v1 = vrot.slane %v3647_v37, 7  ;;  %v5193_v2 = vld [vmem:[#allocation31_spill] sm:$0xff] }
  0x9f   :  { %v1969_v33 = vmul.f32 0.16666667, %v1905_v24  ;;  %v1473_v60 = vadd.f32 %v1413_v26, %v1352_v6  ;;  %v255_v20 = vrot.slane %v3649_v0, 7  ;;  %v1970_v34 = vmul.f32 0.16666667, %v1906_v14  ;;  %v5195_v24 = vld [vmem:[#allocation30_spill] sm:$0xff] }
  0xa0   :  { %v1474_v18 = vadd.f32 %v1414_v58, %v1353_v15  ;;  %v447_v23 = vrot.slane %v3647_v37, 1  ;;  %v448_v50 = vrot.slane %v3649_v0, 1  ;;  %v3663_v9 = vsel %vm196_vm0, 0.0, %v254_v1  ;;  %v5196_v6 = vld [vmem:[#allocation26_spill] sm:$0xff]  ;;  %v5197_v58 = vld [vmem:[#allocation27_spill] sm:$0xff] }
  0xa1   :  { %v1597_v54 = vadd.f32 %v1533_v62, %v1473_v60  ;;  %v3660_v29 = vsel %vm196_vm0, %v254_v1, %v255_v20  ;;  %5192 = vst [vmem:[#allocation59_spill] sm:$0xff] %v3663_v9  ;;  %v617_v57 = vmul.f32 %v3094_v45, %v5193_v2  ;;  %v2031_v27 = vpack.c.bf16 %v1970_v34, %v1969_v33  ;;  %v5198_v15 = vld [vmem:[#allocation35_spill] sm:$0xff] }
  0xa2   :  { %5191 = vst [vmem:[#allocation58_spill] sm:$0xff] %v3660_v29  ;;  %v1598_v19 = vadd.f32 %v1534_v4, %v1474_v18  ;;  %v3668_v61 = vsel %vm389_vm1, %v447_v23, %v448_v50  ;;  %v3671_v36 = vsel %vm389_vm1, %v448_v50, 0.0  ;;  %v618_v20 = vmul.f32 %v3094_v45, %v5195_v24  ;;  %v5199_v4 = vld [vmem:[#allocation23_spill] sm:$0xff]  ;;  %v5200_v50 = vld [vmem:[#allocation22_spill] sm:$0xff]  ;;  %v5201_v24 = vld [vmem:[#allocation12_spill] sm:$0xff] }
  0xa3   :  { %5194 = vst [vmem:[#allocation31_spill] sm:$0xff] %v3671_v36  ;;  %v1665_v8 = vadd.f32 %v3611_v5, %v1597_v54  ;;  %v678_v26 = vmul.f32 %v3104_v49, %v5196_v6  ;;  %v679_v14 = vmul.f32 %v3104_v49, %v5197_v58  ;;  %2147 = vmatmul.bf16.gmra.mxu0 %v2031_v27 }
  0xa4   :  { %v1666_v18 = vadd.f32 %v3611_v5, %v1598_v19  ;;  %v799_v34 = vmul.f32 %v3112_v53, %v5164_v44  ;;  %v800_v62 = vmul.f32 %v3112_v53, %v5198_v15  ;;  %v924_v33 = vmul.f32 %v2973_v17, %v5199_v4  ;;  %v5202_v19 = vld [vmem:[#allocation13_spill] sm:$0xff] }
  0xa5   :  { %v1729_v60 = vadd.f32 3.0, %v1665_v8  ;;  %v738_v1 = vadd.f32 %v678_v26, %v617_v57  ;;  %v739_v23 = vadd.f32 %v679_v14, %v618_v20  ;;  %v925_v54 = vmul.f32 %v2973_v17, %v5200_v50 }
  0xa6   :  { %v1730_v2 = vadd.f32 3.0, %v1666_v18  ;;  %v989_v27 = vmul.f32 %v3007_v30, %v5201_v24  ;;  %v990_v6 = vmul.f32 %v3007_v30, %v5202_v19  ;;  %v1118_v44 = vmul.f32 %v3010_v31, %v3433_v21 }
  0xa7   :  { %v1793_v58 = vmax.f32 %v1729_v60, 0.0  ;;  %v859_v15 = vadd.f32 %v799_v34, %v738_v1  ;;  %v860_v40 = vadd.f32 %v800_v62, %v739_v23  ;;  %v1119_v57 = vmul.f32 %v3010_v31, %v3436_v16  ;;  %v3705_v62 = vld [vmem:[#allocation2 + $0x1b0] sm:$0xff] }
  0xa8   :  { %v1794_v20 = vmax.f32 %v1730_v2, 0.0  ;;  %v1053_v26 = vadd.f32 %v989_v27, %v924_v33  ;;  %v1054_v14 = vadd.f32 %v990_v6, %v925_v54  ;;  %v1245_v50 = vmul.f32 %v3013_v32, %v3663_v9  ;;  %5203 = vst [vmem:[#allocation30_spill] sm:$0xff] %v3705_v62  ;;  %v3709_v54 = vld [vmem:[#allocation2 + $0x1b8] sm:$0xff] }
  0xa9   :  { %v1857_v4 = vmin.f32 %v1793_v58, 6.0  ;;  %v1246_v24 = vmul.f32 %v3013_v32, %v3660_v29  ;;  %v1306_v19 = vmul.f32 %v3018_v35, %v3647_v37  ;;  %v1307_v34 = vmul.f32 %v3018_v35, %v3649_v0  ;;  %5204 = vst [vmem:[#allocation26_spill] sm:$0xff] %v3709_v54 }
  0xaa   :  { %v1858_v60 = vmin.f32 %v1794_v20, 6.0  ;;  %v1182_v1 = vadd.f32 %v1118_v44, %v1053_v26  ;;  %v1183_v23 = vadd.f32 %v1119_v57, %v1054_v14  ;;  %v1427_v33 = vmul.f32 %v3588_v55, %v3668_v61 }
  0xab   :  { %v1921_v2 = vmul.f32 %v1857_v4, %v1665_v8  ;;  %v1366_v27 = vadd.f32 %v1306_v19, %v1245_v50  ;;  %v1367_v6 = vadd.f32 %v1307_v34, %v1246_v24  ;;  %v1428_v58 = vmul.f32 %v3588_v55, %v3671_v36 }
  0xac   :  { %v1922_v37 = vmul.f32 %v1858_v60, %v1666_v18  ;;  %v1549_v29 = vadd.f32 %v1182_v1, %v859_v15  ;;  %v1550_v9 = vadd.f32 %v1183_v23, %v860_v40  ;;  %v278_v0 = vrot.slane %v3705_v62, 7  ;;  %v5210_v23 = vld [vmem:[#allocation25_spill] sm:$0xff] }
  0xad   :  { %v1985_v16 = vmul.f32 0.16666667, %v1921_v2  ;;  %v1487_v20 = vadd.f32 %v1427_v33, %v1366_v27  ;;  %v1488_v44 = vadd.f32 %v1428_v58, %v1367_v6  ;;  %v279_v57 = vrot.slane %v3709_v54, 7  ;;  %v5211_v33 = vld [vmem:[#allocation32_spill] sm:$0xff] }
  0xae   :  { %v1986_v26 = vmul.f32 0.16666667, %v1922_v37  ;;  %v3716_v14 = vsel %vm196_vm0, 0.0, %v278_v0  ;;  %v471_v8 = vrot.slane %v3705_v62, 1  ;;  %v472_v4 = vrot.slane %v3709_v54, 1 }
  0xaf   :  { %5205 = vst [vmem:[#allocation27_spill] sm:$0xff] %v3716_v14  ;;  %v1613_v50 = vadd.f32 %v1549_v29, %v1487_v20  ;;  %v1614_v24 = vadd.f32 %v1550_v9, %v1488_v44  ;;  %v3721_v18 = vsel %vm196_vm0, %v278_v0, %v279_v57  ;;  %v633_v40 = vmul.f32 %v3094_v45, %v3241_v39  ;;  %v5209_v9 = vld [vmem:[#allocation48_spill] sm:$0xff] }
  0xb0   :  { %5206 = vst [vmem:[#allocation35_spill] sm:$0xff] %v3721_v18  ;;  %v2039_v19 = vpack.c.bf16 %v1986_v26, %v1985_v16  ;;  %v3726_v15 = vsel %vm389_vm1, %v471_v8, %v472_v4  ;;  %v3729_v37 = vsel %vm389_vm1, %v472_v4, 0.0  ;;  %v634_v34 = vmul.f32 %v3094_v45, %v5173_v51  ;;  %v5212_v20 = vld [vmem:[#allocation28_spill] sm:$0xff] }
  0xb1   :  { %5207 = vst [vmem:[#allocation60_spill] sm:$0xff] %v3726_v15  ;;  %v1681_v60 = vadd.f32 %v3611_v5, %v1613_v50  ;;  %v1682_v29 = vadd.f32 %v3611_v5, %v1614_v24  ;;  %v694_v0 = vmul.f32 %v3104_v49, %v5174_v59  ;;  %v695_v39 = vmul.f32 %v3104_v49, %v5175_v10  ;;  %v5213_v44 = vld [vmem:[#allocation24_spill] sm:$0xff] }
  0xb2   :  { %5208 = vst [vmem:[#allocation61_spill] sm:$0xff] %v3729_v37  ;;  %2187 = vmatmul.bf16.gmra.mxu1 %v2039_v19  ;;  %v815_v16 = vmul.f32 %v3112_v53, %v3260_v38  ;;  %v816_v1 = vmul.f32 %v3112_v53, %v5209_v9  ;;  %v940_v51 = vmul.f32 %v2973_v17, %v5210_v23 }
  0xb3   :  { %v941_v2 = vmul.f32 %v2973_v17, %v5211_v33  ;;  %v1745_v27 = vadd.f32 3.0, %v1681_v60  ;;  %v1746_v6 = vadd.f32 3.0, %v1682_v29  ;;  %v754_v58 = vadd.f32 %v694_v0, %v633_v40 }
  0xb4   :  { %v755_v59 = vadd.f32 %v695_v39, %v634_v34  ;;  %v1005_v10 = vmul.f32 %v3007_v30, %v5212_v20  ;;  %v1006_v57 = vmul.f32 %v3007_v30, %v5213_v44  ;;  %v1134_v38 = vmul.f32 %v3010_v31, %v3491_v3 }
  0xb5   :  { %v1135_v26 = vmul.f32 %v3010_v31, %v3494_v25  ;;  %v1809_v8 = vmax.f32 %v1745_v27, 0.0  ;;  %v1810_v4 = vmax.f32 %v1746_v6, 0.0  ;;  %v875_v50 = vadd.f32 %v815_v16, %v754_v58  ;;  %v3763_v27 = vld [vmem:[#allocation2 + $0x40] sm:$0xff]  ;;  %v3765_v16 = vld [vmem:[#allocation2 + $0x48] sm:$0xff] }
  0xb6   :  { %v876_v24 = vadd.f32 %v816_v1, %v755_v59  ;;  %v1069_v19 = vadd.f32 %v1005_v10, %v940_v51  ;;  %v1070_v9 = vadd.f32 %v1006_v57, %v941_v2  ;;  %v1261_v40 = vmul.f32 %v3013_v32, %v3716_v14 }
  0xb7   :  { %v1262_v34 = vmul.f32 %v3013_v32, %v3721_v18  ;;  %v1873_v0 = vmin.f32 %v1809_v8, 6.0  ;;  %v1874_v39 = vmin.f32 %v1810_v4, 6.0  ;;  %v1322_v3 = vmul.f32 %v3018_v35, %v3705_v62 }
  0xb8   :  { %v1323_v25 = vmul.f32 %v3018_v35, %v3709_v54  ;;  %v1198_v1 = vadd.f32 %v1134_v38, %v1069_v19  ;;  %v1199_v51 = vadd.f32 %v1135_v26, %v1070_v9  ;;  %v1443_v2 = vmul.f32 %v3588_v55, %v3726_v15 }
  0xb9   :  { %v1444_v6 = vmul.f32 %v3588_v55, %v3729_v37  ;;  %v1937_v58 = vmul.f32 %v1873_v0, %v1681_v60  ;;  %v1938_v59 = vmul.f32 %v1874_v39, %v1682_v29  ;;  %v1382_v10 = vadd.f32 %v1322_v3, %v1261_v40 }
  0xba   :  { %v1383_v57 = vadd.f32 %v1323_v25, %v1262_v34  ;;  %v1565_v8 = vadd.f32 %v1198_v1, %v875_v50  ;;  %v1566_v4 = vadd.f32 %v1199_v51, %v876_v24  ;;  %v209_v54 = vrot.slane %v3763_v27, 7 }
  0xbb   :  { %v210_v62 = vrot.slane %v3765_v16, 7  ;;  %v2001_v18 = vmul.f32 0.16666667, %v1937_v58  ;;  %v2002_v14 = vmul.f32 0.16666667, %v1938_v59  ;;  %v1503_v38 = vadd.f32 %v1443_v2, %v1382_v10  ;;  %v5214_v59 = vld [vmem:[#allocation36_spill] sm:$0xff] }
  0xbc   :  { %v1504_v26 = vadd.f32 %v1444_v6, %v1383_v57  ;;  %v3777_v9 = vsel %vm196_vm0, 0.0, %v209_v54  ;;  %v402_v60 = vrot.slane %v3763_v27, 1  ;;  %v403_v3 = vrot.slane %v3765_v16, 1 }
  0xbd   :  { %v3774_v19 = vsel %vm196_vm0, %v209_v54, %v210_v62  ;;  %v2047_v25 = vpack.c.bf16 %v2002_v14, %v2001_v18  ;;  %v1629_v29 = vadd.f32 %v1565_v8, %v1503_v38  ;;  %v589_v24 = vmul.f32 %v3094_v45, %v3308_v56 }
  0xbe   :  { %v1630_v50 = vadd.f32 %v1566_v4, %v1504_v26  ;;  %v3784_v40 = vsel %vm389_vm1, %v402_v60, %v403_v3  ;;  %v3787_v34 = vsel %vm389_vm1, %v403_v3, 0.0  ;;  %v590_v62 = vmul.f32 %v3094_v45, %v3312_v13 }
  0xbf   :  { %v650_v54 = vmul.f32 %v3104_v49, %v3290_v47  ;;  %2227 = vmatmul.bf16.gmra.mxu2 %v2047_v25  ;;  %v1697_v14 = vadd.f32 %v3611_v5, %v1629_v29  ;;  %v651_v56 = vmul.f32 %v3104_v49, %v3298_v12  ;;  %v771_v0 = vmul.f32 %v3112_v53, %v5177_v28 }
  0xc0   :  { %v1698_v18 = vadd.f32 %v3611_v5, %v1630_v50  ;;  %v772_v1 = vmul.f32 %v3112_v53, %v3324_v46  ;;  %v894_v13 = vmul.f32 %v2973_v17, %v3542_v7  ;;  %v895_v47 = vmul.f32 %v2973_v17, %v3539_v63 }
  0xc1   :  { %v710_v39 = vadd.f32 %v650_v54, %v589_v24  ;;  %v1761_v51 = vadd.f32 3.0, %v1697_v14  ;;  %v711_v6 = vadd.f32 %v651_v56, %v590_v62  ;;  %v959_v58 = vmul.f32 %v3007_v30, %v3528_v42  ;;  %v3821_v54 = vld [vmem:[#allocation2 + $0xc0] sm:$0xff]  ;;  %v3823_v56 = vld [vmem:[#allocation2 + $0xc8] sm:$0xff] }
  0xc2   :  { %v1762_v2 = vadd.f32 3.0, %v1698_v18  ;;  %v960_v28 = vmul.f32 %v3007_v30, %v3530_v41  ;;  %v1088_v10 = vmul.f32 %v3010_v31, %v5214_v59  ;;  %v1089_v46 = vmul.f32 %v3010_v31, %v3552_v43  ;;  %5215 = vst [vmem:[#allocation48_spill] sm:$0xff] %v3821_v54 }
  0xc3   :  { %v831_v12 = vadd.f32 %v771_v0, %v710_v39  ;;  %v1825_v57 = vmax.f32 %v1761_v51, 0.0  ;;  %v832_v4 = vadd.f32 %v772_v1, %v711_v6  ;;  %v1023_v38 = vadd.f32 %v959_v58, %v894_v13  ;;  %5216 = vst [vmem:[#allocation25_spill] sm:$0xff] %v3823_v56 }
  0xc4   :  { %v1826_v8 = vmax.f32 %v1762_v2, 0.0  ;;  %v1024_v26 = vadd.f32 %v960_v28, %v895_v47  ;;  %v1217_v60 = vmul.f32 %v3013_v32, %v3777_v9  ;;  %v1218_v3 = vmul.f32 %v3013_v32, %v3774_v19 }
  0xc5   :  { %v1278_v25 = vmul.f32 %v3018_v35, %v3763_v27  ;;  %v1889_v29 = vmin.f32 %v1825_v57, 6.0  ;;  %v1152_v24 = vadd.f32 %v1088_v10, %v1023_v38  ;;  %v1279_v62 = vmul.f32 %v3018_v35, %v3765_v16 }
  0xc6   :  { %v1890_v50 = vmin.f32 %v1826_v8, 6.0  ;;  %v1153_v0 = vadd.f32 %v1089_v46, %v1024_v26  ;;  %v1399_v1 = vmul.f32 %v3588_v55, %v3784_v40  ;;  %v1400_v13 = vmul.f32 %v3588_v55, %v3787_v34 }
  0xc7   :  { %v1338_v39 = vadd.f32 %v1278_v25, %v1217_v60  ;;  %v1953_v47 = vmul.f32 %v1889_v29, %v1697_v14  ;;  %v1339_v2 = vadd.f32 %v1279_v62, %v1218_v3  ;;  %v1519_v6 = vadd.f32 %v1152_v24, %v831_v12  ;;  %v5218_v3 = vld [vmem:[#allocation52_spill] sm:$0xff] }
  0xc8   :  { %v1954_v51 = vmul.f32 %v1890_v50, %v1698_v18  ;;  %v1520_v28 = vadd.f32 %v1153_v0, %v832_v4  ;;  %v233_v10 = vrot.slane %v3821_v54, 7  ;;  %v234_v57 = vrot.slane %v3823_v56, 7  ;;  %v5219_v50 = vld [vmem:[#allocation53_spill] sm:$0xff] }
  0xc9   :  { %v1459_v58 = vadd.f32 %v1399_v1, %v1338_v39  ;;  %v2017_v8 = vmul.f32 0.16666667, %v1953_v47  ;;  %v1460_v46 = vadd.f32 %v1400_v13, %v1339_v2  ;;  %v426_v26 = vrot.slane %v3821_v54, 1 }
  0xca   :  { %v2018_v38 = vmul.f32 0.16666667, %v1954_v51  ;;  %v3833_v25 = vsel %vm196_vm0, %v233_v10, %v234_v57  ;;  %v3836_v14 = vsel %vm196_vm0, 0.0, %v233_v10  ;;  %v427_v18 = vrot.slane %v3823_v56, 1  ;;  %v5221_v51 = vld [vmem:[#allocation54_spill] sm:$0xff] }
  0xcb   :  { %v1583_v60 = vadd.f32 %v1519_v6, %v1459_v58  ;;  %5217 = vst [vmem:[#allocation32_spill] sm:$0xff] %v3833_v25  ;;  %v1584_v4 = vadd.f32 %v1520_v28, %v1460_v46  ;;  %v605_v29 = vmul.f32 %v3094_v45, %v5218_v3  ;;  %v606_v24 = vmul.f32 %v3094_v45, %v5219_v50  ;;  %v5222_v6 = vld [vmem:[#allocation55_spill] sm:$0xff] }
  0xcc   :  { %v2055_v12 = vpack.c.bf16 %v2018_v38, %v2017_v8  ;;  %v3845_v0 = vsel %vm389_vm1, %v426_v26, %v427_v18  ;;  %v3848_v39 = vsel %vm389_vm1, %v427_v18, 0.0  ;;  %v666_v1 = vmul.f32 %v3104_v49, %v5185_v22  ;;  %v5223_v8 = vld [vmem:[#allocation38_spill] sm:$0xff]  ;;  %v5224_v26 = vld [vmem:[#allocation41_spill] sm:$0xff] }
  0xcd   :  { %v1651_v62 = vadd.f32 %v3611_v5, %v1583_v60  ;;  %5220 = vst [vmem:[#allocation28_spill] sm:$0xff] %v3848_v39  ;;  %v1652_v13 = vadd.f32 %v3611_v5, %v1584_v4  ;;  %v667_v47 = vmul.f32 %v3104_v49, %v5186_v11  ;;  %v787_v2 = vmul.f32 %v3112_v53, %v5221_v51  ;;  %v5225_v11 = vld [vmem:[#allocation37_spill] sm:$0xff] }
  0xce   :  { %2267 = vmatmul.bf16.gmra.mxu3 %v2055_v12  ;;  %v788_v58 = vmul.f32 %v3112_v53, %v5222_v6  ;;  %v726_v10 = vadd.f32 %v666_v1, %v605_v29  ;;  %v910_v57 = vmul.f32 %v2973_v17, %v3601_v52  ;;  %v911_v22 = vmul.f32 %v2973_v17, %v5223_v8  ;;  %v5226_v29 = vld [vmem:[#allocation57_spill] sm:$0xff] }
  0xcf   :  { %v1715_v28 = vadd.f32 3.0, %v1651_v62  ;;  %v1716_v38 = vadd.f32 3.0, %v1652_v13  ;;  %v727_v46 = vadd.f32 %v667_v47, %v606_v24  ;;  %v975_v60 = vmul.f32 %v3007_v30, %v5224_v26 }
  0xd0   :  { %v976_v18 = vmul.f32 %v3007_v30, %v5225_v11  ;;  %v847_v4 = vadd.f32 %v787_v2, %v726_v10  ;;  %v1104_v3 = vmul.f32 %v3010_v31, %v3615_v48  ;;  %v1105_v50 = vmul.f32 %v3010_v31, %v5226_v29 }
  0xd1   :  { %v1779_v12 = vmax.f32 %v1715_v28, 0.0  ;;  %v1780_v1 = vmax.f32 %v1716_v38, 0.0  ;;  %v848_v51 = vadd.f32 %v788_v58, %v727_v46  ;;  %v1039_v6 = vadd.f32 %v975_v60, %v910_v57  ;;  %v3879_v38 = vld [vmem:[#allocation2 + $0x140] sm:$0xff]  ;;  %v3881_v58 = vld [vmem:[#allocation2 + $0x148] sm:$0xff] }
  0xd2   :  { %v1040_v8 = vadd.f32 %v976_v18, %v911_v22  ;;  %v1233_v24 = vmul.f32 %v3013_v32, %v3836_v14  ;;  %v1234_v47 = vmul.f32 %v3013_v32, %v3833_v25  ;;  %v1294_v2 = vmul.f32 %v3018_v35, %v3821_v54  ;;  %5227 = vst [vmem:[#allocation24_spill] sm:$0xff] %v3879_v38 }
  0xd3   :  { %v1843_v52 = vmin.f32 %v1779_v12, 6.0  ;;  %v1844_v28 = vmin.f32 %v1780_v1, 6.0  ;;  %v1168_v10 = vadd.f32 %v1104_v3, %v1039_v6  ;;  %v1295_v29 = vmul.f32 %v3018_v35, %v3823_v56  ;;  %5228 = vst [vmem:[#allocation36_spill] sm:$0xff] %v3881_v58 }
  0xd4   :  { %v1169_v48 = vadd.f32 %v1105_v50, %v1040_v8  ;;  %v1354_v22 = vadd.f32 %v1294_v2, %v1233_v24  ;;  %v1415_v46 = vmul.f32 %v3588_v55, %v3845_v0  ;;  %v1416_v60 = vmul.f32 %v3588_v55, %v3848_v39 }
  0xd5   :  { %v1907_v57 = vmul.f32 %v1843_v52, %v1651_v62  ;;  %v1908_v18 = vmul.f32 %v1844_v28, %v1652_v13  ;;  %v1355_v12 = vadd.f32 %v1295_v29, %v1234_v47  ;;  %v1535_v1 = vadd.f32 %v1168_v10, %v847_v4 }
  0xd6   :  { %v1536_v3 = vadd.f32 %v1169_v48, %v848_v51  ;;  %v1475_v50 = vadd.f32 %v1415_v46, %v1354_v22  ;;  %v257_v6 = vrot.slane %v3879_v38, 7  ;;  %v258_v56 = vrot.slane %v3881_v58, 7  ;;  %v5231_v48 = vld [vmem:[#allocation23_spill] sm:$0xff]  ;;  %v5234_v22 = vld [vmem:[#allocation12_spill] sm:$0xff] }
  0xd7   :  { %v1971_v8 = vmul.f32 0.16666667, %v1907_v57  ;;  %v1972_v54 = vmul.f32 0.16666667, %v1908_v18  ;;  %v1476_v25 = vadd.f32 %v1416_v60, %v1355_v12  ;;  %v450_v52 = vrot.slane %v3879_v38, 1  ;;  %v5233_v57 = vld [vmem:[#allocation22_spill] sm:$0xff] }
  0xd8   :  { %v451_v62 = vrot.slane %v3881_v58, 1  ;;  %v1599_v24 = vadd.f32 %v1535_v1, %v1475_v50  ;;  %v3892_v2 = vsel %vm196_vm0, %v257_v6, %v258_v56  ;;  %v3895_v13 = vsel %vm196_vm0, 0.0, %v257_v6  ;;  %v5235_v60 = vld [vmem:[#allocation13_spill] sm:$0xff] }
  0xd9   :  { %5229 = vst [vmem:[#allocation52_spill] sm:$0xff] %v3892_v2  ;;  %v619_v4 = vmul.f32 %v3094_v45, %v5231_v48  ;;  %v2032_v29 = vpack.c.bf16 %v1972_v54, %v1971_v8  ;;  %v1600_v51 = vadd.f32 %v1536_v3, %v1476_v25  ;;  %v620_v56 = vmul.f32 %v3094_v45, %v5233_v57  ;;  %v5236_v12 = vld [vmem:[#allocation29_spill] sm:$0xff]  ;;  %v5237_v3 = vld [vmem:[#allocation59_spill] sm:$0xff]  ;;  %v5239_v57 = vld [vmem:[#allocation50_spill] sm:$0xff] }
  0xda   :  { %5230 = vst [vmem:[#allocation53_spill] sm:$0xff] %v3895_v13  ;;  %v3900_v47 = vsel %vm389_vm1, %v450_v52, %v451_v62  ;;  %v3903_v28 = vsel %vm389_vm1, %v451_v62, 0.0  ;;  %v1667_v10 = vadd.f32 %v3611_v5, %v1599_v24  ;;  %v680_v46 = vmul.f32 %v3104_v49, %v5234_v22  ;;  %v5238_v62 = vld [vmem:[#allocation58_spill] sm:$0xff] }
  0xdb   :  { %5232 = vst [vmem:[#allocation54_spill] sm:$0xff] %v3903_v28  ;;  %v681_v18 = vmul.f32 %v3104_v49, %v5235_v60  ;;  %2152 = vmatmul.bf16.gmra.mxu0 %v2032_v29  ;;  %v1668_v54 = vadd.f32 %v3611_v5, %v1600_v51  ;;  %v801_v25 = vmul.f32 %v3112_v53, %v3433_v21  ;;  %v5240_v51 = vld [vmem:[#allocation51_spill] sm:$0xff] }
  0xdc   :  { %v802_v1 = vmul.f32 %v3112_v53, %v5236_v12  ;;  %v926_v8 = vmul.f32 %v2973_v17, %v5237_v3  ;;  %v1731_v50 = vadd.f32 3.0, %v1667_v10  ;;  %v740_v6 = vadd.f32 %v680_v46, %v619_v4 }
  0xdd   :  { %v741_v52 = vadd.f32 %v681_v18, %v620_v56  ;;  %v927_v24 = vmul.f32 %v2973_v17, %v5238_v62  ;;  %v1732_v48 = vadd.f32 3.0, %v1668_v54  ;;  %v991_v29 = vmul.f32 %v3007_v30, %v5239_v57 }
  0xde   :  { %v992_v22 = vmul.f32 %v3007_v30, %v5240_v51  ;;  %v1120_v21 = vmul.f32 %v3010_v31, %v3668_v61  ;;  %v1795_v60 = vmax.f32 %v1731_v50, 0.0  ;;  %v861_v12 = vadd.f32 %v801_v25, %v740_v6 }
  0xdf   :  { %v862_v39 = vadd.f32 %v802_v1, %v741_v52  ;;  %v1121_v4 = vmul.f32 %v3010_v31, %v3671_v36  ;;  %v1796_v56 = vmax.f32 %v1732_v48, 0.0  ;;  %v1055_v46 = vadd.f32 %v991_v29, %v926_v8  ;;  %v3937_v1 = vld [vmem:[#allocation2 + $0x1c0] sm:$0xff] }
  0xe0   :  { %v1056_v18 = vadd.f32 %v992_v22, %v927_v24  ;;  %v1247_v62 = vmul.f32 %v3013_v32, %v3895_v13  ;;  %v1859_v3 = vmin.f32 %v1795_v60, 6.0  ;;  %v1248_v57 = vmul.f32 %v3013_v32, %v3892_v2  ;;  %5241 = vst [vmem:[#allocation55_spill] sm:$0xff] %v3937_v1  ;;  %v3941_v24 = vld [vmem:[#allocation2 + $0x1c8] sm:$0xff] }
  0xe1   :  { %v1308_v51 = vmul.f32 %v3018_v35, %v3879_v38  ;;  %v1309_v25 = vmul.f32 %v3018_v35, %v3881_v58  ;;  %v1860_v50 = vmin.f32 %v1796_v56, 6.0  ;;  %v1184_v6 = vadd.f32 %v1120_v21, %v1055_v46  ;;  %5242 = vst [vmem:[#allocation41_spill] sm:$0xff] %v3941_v24 }
  0xe2   :  { %v1185_v52 = vadd.f32 %v1121_v4, %v1056_v18  ;;  %v1429_v8 = vmul.f32 %v3588_v55, %v3900_v47  ;;  %v1923_v48 = vmul.f32 %v1859_v3, %v1667_v10  ;;  %v1430_v60 = vmul.f32 %v3588_v55, %v3903_v28 }
  0xe3   :  { %v1368_v29 = vadd.f32 %v1308_v51, %v1247_v62  ;;  %v1369_v22 = vadd.f32 %v1309_v25, %v1248_v57  ;;  %v1924_v38 = vmul.f32 %v1860_v50, %v1668_v54  ;;  %v1551_v2 = vadd.f32 %v1184_v6, %v861_v12  ;;  %v5248_v6 = vld [vmem:[#allocation33_spill] sm:$0xff] }
  0xe4   :  { %v1552_v13 = vadd.f32 %v1185_v52, %v862_v39  ;;  %v281_v58 = vrot.slane %v3937_v1, 7  ;;  %v1987_v36 = vmul.f32 0.16666667, %v1923_v48  ;;  %v282_v4 = vrot.slane %v3941_v24, 7  ;;  %v5250_v48 = vld [vmem:[#allocation35_spill] sm:$0xff] }
  0xe5   :  { %v1489_v56 = vadd.f32 %v1429_v8, %v1368_v29  ;;  %v1490_v21 = vadd.f32 %v1430_v60, %v1369_v22  ;;  %v1988_v46 = vmul.f32 0.16666667, %v1924_v38  ;;  %v474_v10 = vrot.slane %v3937_v1, 1  ;;  %v5249_v8 = vld [vmem:[#allocation27_spill] sm:$0xff] }
  0xe6   :  { %v3948_v18 = vsel %vm196_vm0, 0.0, %v281_v58  ;;  %v475_v3 = vrot.slane %v3941_v24, 1  ;;  %v3953_v54 = vsel %vm196_vm0, %v281_v58, %v282_v4  ;;  %v635_v39 = vmul.f32 %v3094_v45, %v5210_v23  ;;  %v5252_v4 = vld [vmem:[#allocation26_spill] sm:$0xff] }
  0xe7   :  { %5243 = vst [vmem:[#allocation37_spill] sm:$0xff] %v3948_v18  ;;  %v1615_v62 = vadd.f32 %v1551_v2, %v1489_v56  ;;  %v1616_v57 = vadd.f32 %v1552_v13, %v1490_v21  ;;  %v2040_v51 = vpack.c.bf16 %v1988_v46, %v1987_v36  ;;  %v636_v25 = vmul.f32 %v3094_v45, %v5211_v33  ;;  %v5247_v36 = vld [vmem:[#allocation34_spill] sm:$0xff] }
  0xe8   :  { %5244 = vst [vmem:[#allocation23_spill] sm:$0xff] %v3953_v54  ;;  %v3958_v12 = vsel %vm389_vm1, %v474_v10, %v475_v3  ;;  %v3961_v38 = vsel %vm389_vm1, %v475_v3, 0.0  ;;  %v696_v58 = vmul.f32 %v3104_v49, %v5212_v20  ;;  %v697_v23 = vmul.f32 %v3104_v49, %v5213_v44  ;;  %v5251_v21 = vld [vmem:[#allocation30_spill] sm:$0xff] }
  0xe9   :  { %5245 = vst [vmem:[#allocation22_spill] sm:$0xff] %v3958_v12  ;;  %v1683_v50 = vadd.f32 %v3611_v5, %v1615_v62  ;;  %v1684_v2 = vadd.f32 %v3611_v5, %v1616_v57  ;;  %2192 = vmatmul.bf16.gmra.mxu1 %v2040_v51  ;;  %v817_v13 = vmul.f32 %v3112_v53, %v5247_v36 }
  0xea   :  { %5246 = vst [vmem:[#allocation12_spill] sm:$0xff] %v3961_v38  ;;  %v818_v52 = vmul.f32 %v3112_v53, %v5248_v6  ;;  %v942_v33 = vmul.f32 %v2973_v17, %v5249_v8  ;;  %v943_v29 = vmul.f32 %v2973_v17, %v5250_v48  ;;  %v756_v56 = vadd.f32 %v696_v58, %v635_v39 }
  0xeb   :  { %v1747_v22 = vadd.f32 3.0, %v1683_v50  ;;  %v1748_v60 = vadd.f32 3.0, %v1684_v2  ;;  %v757_v20 = vadd.f32 %v697_v23, %v636_v25  ;;  %v1007_v44 = vmul.f32 %v3007_v30, %v5251_v21 }
  0xec   :  { %v1008_v46 = vmul.f32 %v3007_v30, %v5252_v4  ;;  %v1136_v10 = vmul.f32 %v3010_v31, %v3726_v15  ;;  %v1137_v3 = vmul.f32 %v3010_v31, %v3729_v37  ;;  %v877_v51 = vadd.f32 %v817_v13, %v756_v56  ;;  %v3997_v13 = vld [vmem:[#allocation2 + $0x58] sm:$0xff] }
  0xed   :  { %v1811_v62 = vmax.f32 %v1747_v22, 0.0  ;;  %v1812_v57 = vmax.f32 %v1748_v60, 0.0  ;;  %v878_v36 = vadd.f32 %v818_v52, %v757_v20  ;;  %v1071_v6 = vadd.f32 %v1007_v44, %v942_v33  ;;  %v3995_v22 = vld [vmem:[#allocation2 + $0x50] sm:$0xff] }
  0xee   :  { %v1072_v48 = vadd.f32 %v1008_v46, %v943_v29  ;;  %v1263_v39 = vmul.f32 %v3013_v32, %v3948_v18  ;;  %v1264_v25 = vmul.f32 %v3013_v32, %v3953_v54  ;;  %v1324_v15 = vmul.f32 %v3018_v35, %v3937_v1 }
  0xef   :  { %v1875_v58 = vmin.f32 %v1811_v62, 6.0  ;;  %v1876_v23 = vmin.f32 %v1812_v57, 6.0  ;;  %v1325_v37 = vmul.f32 %v3018_v35, %v3941_v24  ;;  %v1200_v52 = vadd.f32 %v1136_v10, %v1071_v6 }
  0xf0   :  { %v1201_v33 = vadd.f32 %v1137_v3, %v1072_v48  ;;  %v1445_v29 = vmul.f32 %v3588_v55, %v3958_v12  ;;  %v1446_v60 = vmul.f32 %v3588_v55, %v3961_v38  ;;  %v1384_v44 = vadd.f32 %v1324_v15, %v1263_v39 }
  0xf1   :  { %v1939_v56 = vmul.f32 %v1875_v58, %v1683_v50  ;;  %v1940_v20 = vmul.f32 %v1876_v23, %v1684_v2  ;;  %v1385_v46 = vadd.f32 %v1325_v37, %v1264_v25  ;;  %v1567_v62 = vadd.f32 %v1200_v52, %v877_v51 }
  0xf2   :  { %v1568_v57 = vadd.f32 %v1201_v33, %v878_v36  ;;  %v212_v24 = vrot.slane %v3995_v22, 7  ;;  %v213_v1 = vrot.slane %v3997_v13, 7  ;;  %v1505_v10 = vadd.f32 %v1445_v29, %v1384_v44 }
  0xf3   :  { %v2003_v54 = vmul.f32 0.16666667, %v1939_v56  ;;  %v2004_v18 = vmul.f32 0.16666667, %v1940_v20  ;;  %v1506_v48 = vadd.f32 %v1446_v60, %v1385_v46  ;;  %v405_v50 = vrot.slane %v3995_v22, 1 }
  0xf4   :  { %v4006_v3 = vsel %vm196_vm0, %v212_v24, %v213_v1  ;;  %v4009_v6 = vsel %vm196_vm0, 0.0, %v212_v24  ;;  %v406_v15 = vrot.slane %v3997_v13, 1  ;;  %v1631_v2 = vadd.f32 %v1567_v62, %v1505_v10 }
  0xf5   :  { %v2048_v37 = vpack.c.bf16 %v2004_v18, %v2003_v54  ;;  %v1632_v51 = vadd.f32 %v1568_v57, %v1506_v48  ;;  %v591_v36 = vmul.f32 %v3094_v45, %v3542_v7  ;;  %v592_v1 = vmul.f32 %v3094_v45, %v3539_v63 }
  0xf6   :  { %v4016_v39 = vsel %vm389_vm1, %v405_v50, %v406_v15  ;;  %v4019_v25 = vsel %vm389_vm1, %v406_v15, 0.0  ;;  %v652_v24 = vmul.f32 %v3104_v49, %v3528_v42  ;;  %v1699_v18 = vadd.f32 %v3611_v5, %v1631_v2 }
  0xf7   :  { %2232 = vmatmul.bf16.gmra.mxu2 %v2048_v37  ;;  %v1700_v54 = vadd.f32 %v3611_v5, %v1632_v51  ;;  %v653_v7 = vmul.f32 %v3104_v49, %v3530_v41  ;;  %v773_v58 = vmul.f32 %v3112_v53, %v5214_v59  ;;  %v774_v52 = vmul.f32 %v3112_v53, %v3552_v43 }
  0xf8   :  { %v712_v23 = vadd.f32 %v652_v24, %v591_v36  ;;  %v896_v63 = vmul.f32 %v2973_v17, %v3777_v9  ;;  %v897_v42 = vmul.f32 %v2973_v17, %v3774_v19  ;;  %v1763_v33 = vadd.f32 3.0, %v1699_v18  ;;  %v4055_v24 = vld [vmem:[#allocation2 + $0xd8] sm:$0xff] }
  0xf9   :  { %v1764_v29 = vadd.f32 3.0, %v1700_v54  ;;  %v713_v60 = vadd.f32 %v653_v7, %v592_v1  ;;  %v961_v56 = vmul.f32 %v3007_v30, %v3763_v27  ;;  %v962_v59 = vmul.f32 %v3007_v30, %v3765_v16  ;;  %v4053_v1 = vld [vmem:[#allocation2 + $0xd0] sm:$0xff]  ;;  %5254 = vst [vmem:[#allocation29_spill] sm:$0xff] %v4055_v24 }
  0xfa   :  { %v833_v41 = vadd.f32 %v773_v58, %v712_v23  ;;  %v1090_v20 = vmul.f32 %v3010_v31, %v3784_v40  ;;  %v1091_v43 = vmul.f32 %v3010_v31, %v3787_v34  ;;  %v1827_v44 = vmax.f32 %v1763_v33, 0.0  ;;  %5253 = vst [vmem:[#allocation13_spill] sm:$0xff] %v4053_v1 }
  0xfb   :  { %v1828_v46 = vmax.f32 %v1764_v29, 0.0  ;;  %v834_v62 = vadd.f32 %v774_v52, %v713_v60  ;;  %v1025_v57 = vadd.f32 %v961_v56, %v896_v63  ;;  %v1026_v10 = vadd.f32 %v962_v59, %v897_v42 }
  0xfc   :  { %v1219_v48 = vmul.f32 %v3013_v32, %v4009_v6  ;;  %v1220_v50 = vmul.f32 %v3013_v32, %v4006_v3  ;;  %v1280_v15 = vmul.f32 %v3018_v35, %v3995_v22  ;;  %v1891_v37 = vmin.f32 %v1827_v44, 6.0 }
  0xfd   :  { %v1892_v2 = vmin.f32 %v1828_v46, 6.0  ;;  %v1154_v51 = vadd.f32 %v1090_v20, %v1025_v57  ;;  %v1281_v36 = vmul.f32 %v3018_v35, %v3997_v13  ;;  %v1155_v7 = vadd.f32 %v1091_v43, %v1026_v10 }
  0xfe   :  { %v1340_v58 = vadd.f32 %v1280_v15, %v1219_v48  ;;  %v1401_v23 = vmul.f32 %v3588_v55, %v4016_v39  ;;  %v1402_v52 = vmul.f32 %v3588_v55, %v4019_v25  ;;  %v1955_v63 = vmul.f32 %v1891_v37, %v1699_v18  ;;  %v5258_v15 = vld [vmem:[#allocation38_spill] sm:$0xff] }
  0xff   :  { %v1956_v42 = vmul.f32 %v1892_v2, %v1700_v54  ;;  %v1341_v33 = vadd.f32 %v1281_v36, %v1220_v50  ;;  %v1521_v29 = vadd.f32 %v1154_v51, %v833_v41  ;;  %v1522_v56 = vadd.f32 %v1155_v7, %v834_v62  ;;  %v5257_v62 = vld [vmem:[#allocation49_spill] sm:$0xff] }
 0x100   :  { %v1461_v60 = vadd.f32 %v1401_v23, %v1340_v58  ;;  %v236_v59 = vrot.slane %v4053_v1, 7  ;;  %v237_v20 = vrot.slane %v4055_v24, 7  ;;  %v2019_v44 = vmul.f32 0.16666667, %v1955_v63 }
 0x101   :  { %v2020_v46 = vmul.f32 0.16666667, %v1956_v42  ;;  %v1462_v43 = vadd.f32 %v1402_v52, %v1341_v33  ;;  %v429_v57 = vrot.slane %v4053_v1, 1  ;;  %v430_v18 = vrot.slane %v4055_v24, 1  ;;  %v5261_v52 = vld [vmem:[#allocation56_spill] sm:$0xff]  ;;  %v5262_v42 = vld [vmem:[#allocation57_spill] sm:$0xff] }
 0x102   :  { %v1585_v10 = vadd.f32 %v1521_v29, %v1461_v60  ;;  %v4065_v48 = vsel %vm196_vm0, %v236_v59, %v237_v20  ;;  %v4068_v55 = vsel %vm196_vm0, 0.0, %v236_v59  ;;  %v607_v50 = vmul.f32 %v3094_v45, %v5257_v62  ;;  %v5263_v59 = vld [vmem:[#allocation32_spill] sm:$0xff] }
 0x103   :  { %5255 = vst [vmem:[#allocation34_spill] sm:$0xff] %v4065_v48  ;;  %v2056_v54 = vpack.c.bf16 %v2020_v46, %v2019_v44  ;;  %v1586_v41 = vadd.f32 %v1522_v56, %v1462_v43  ;;  %v608_v37 = vmul.f32 %v3094_v45, %v5258_v15  ;;  %v4077_v51 = vsel %vm389_vm1, %v429_v57, %v430_v18 }
 0x104   :  { %5256 = vst [vmem:[#allocation33_spill] sm:$0xff] %v4068_v55  ;;  %v1653_v2 = vadd.f32 %v3611_v5, %v1585_v10  ;;  %v4080_v36 = vsel %vm389_vm1, %v430_v18, 0.0  ;;  %v668_v7 = vmul.f32 %v3104_v49, %v5224_v26  ;;  %v669_v23 = vmul.f32 %v3104_v49, %v5225_v11  ;;  %v5265_v11 = vld [vmem:[#allocation25_spill] sm:$0xff] }
 0x105   :  { %5259 = vst [vmem:[#allocation27_spill] sm:$0xff] %v4077_v51  ;;  %2272 = vmatmul.bf16.gmra.mxu3 %v2056_v54  ;;  %v1654_v58 = vadd.f32 %v3611_v5, %v1586_v41  ;;  %v789_v63 = vmul.f32 %v3112_v53, %v5261_v52  ;;  %v790_v33 = vmul.f32 %v3112_v53, %v5262_v42  ;;  %v5264_v5 = vld [vmem:[#allocation48_spill] sm:$0xff] }
 0x106   :  { %5260 = vst [vmem:[#allocation30_spill] sm:$0xff] %v4080_v36  ;;  %v1717_v29 = vadd.f32 3.0, %v1653_v2  ;;  %v728_v60 = vadd.f32 %v668_v7, %v607_v50  ;;  %v912_v56 = vmul.f32 %v2973_v17, %v3836_v14  ;;  %v913_v26 = vmul.f32 %v2973_v17, %v5263_v59  ;;  %v5266_v54 = vld [vmem:[#allocation28_spill] sm:$0xff] }
 0x107   :  { %v1718_v20 = vadd.f32 3.0, %v1654_v58  ;;  %v729_v44 = vadd.f32 %v669_v23, %v608_v37  ;;  %v977_v46 = vmul.f32 %v3007_v30, %v5264_v5  ;;  %v978_v43 = vmul.f32 %v3007_v30, %v5265_v11 }
 0x108   :  { %v1781_v57 = vmax.f32 %v1717_v29, 0.0  ;;  %v849_v10 = vadd.f32 %v789_v63, %v728_v60  ;;  %v1106_v18 = vmul.f32 %v3010_v31, %v3845_v0  ;;  %v1107_v41 = vmul.f32 %v3010_v31, %v5266_v54 }
 0x109   :  { %v1782_v62 = vmax.f32 %v1718_v20, 0.0  ;;  %v850_v50 = vadd.f32 %v790_v33, %v729_v44  ;;  %v1041_v15 = vadd.f32 %v977_v46, %v912_v56  ;;  %v1042_v7 = vadd.f32 %v978_v43, %v913_v26  ;;  %v4111_v20 = vld [vmem:[#allocation2 + $0x150] sm:$0xff]  ;;  %v4113_v33 = vld [vmem:[#allocation2 + $0x158] sm:$0xff]  ;;  %v4115_v44 = vld [vmem:[#allocation5 + $0x8] ss:$0 sm:$0xff] }
 0x10a   :  { %v1845_v52 = vmin.f32 %v1781_v57, 6.0  ;;  %v1235_v37 = vmul.f32 %v3013_v32, %v4068_v55  ;;  %v1236_v23 = vmul.f32 %v3013_v32, %v4065_v48  ;;  %v1296_v63 = vmul.f32 %v3018_v35, %v4053_v1  ;;  %5267 = vst [vmem:[#allocation26_spill] sm:$0xff] %v4111_v20 }
 0x10b   :  { %v1846_v42 = vmin.f32 %v1782_v62, 6.0  ;;  %v1170_v29 = vadd.f32 %v1106_v18, %v1041_v15  ;;  %v1171_v60 = vadd.f32 %v1107_v41, %v1042_v7  ;;  %v1297_v54 = vmul.f32 %v3018_v35, %v4055_v24  ;;  %5268 = vst [vmem:[#allocation49_spill] sm:$0xff] %v4113_v33 }
 0x10c   :  { %v1909_v56 = vmul.f32 %v1845_v52, %v1653_v2  ;;  %v1356_v26 = vadd.f32 %v1296_v63, %v1235_v37  ;;  %v1417_v46 = vmul.f32 %v4115_v44, %v4077_v51  ;;  %v1418_v43 = vmul.f32 %v4115_v44, %v4080_v36 }
 0x10d   :  { %v1910_v57 = vmul.f32 %v1846_v42, %v1654_v58  ;;  %v1357_v18 = vadd.f32 %v1297_v54, %v1236_v23  ;;  %v1537_v41 = vadd.f32 %v1170_v29, %v849_v10  ;;  %v1538_v62 = vadd.f32 %v1171_v60, %v850_v50  ;;  %v5271_v10 = vld [vmem:[#allocation59_spill] sm:$0xff]  ;;  %v4142_v60 = vld [vmem:[%s4891_s2] ss:$0 sm:$0xff] }
 0x10e   :  { %v1973_v15 = vmul.f32 0.16666667, %v1909_v56  ;;  %v1477_v7 = vadd.f32 %v1417_v46, %v1356_v26  ;;  %v260_v24 = vrot.slane %v4111_v20, 7  ;;  %v261_v1 = vrot.slane %v4113_v33, 7  ;;  %v5274_v26 = vld [vmem:[#allocation50_spill] sm:$0xff] }
 0x10f   :  { %v1974_v2 = vmul.f32 0.16666667, %v1910_v57  ;;  %v1478_v52 = vadd.f32 %v1418_v43, %v1357_v18  ;;  %v453_v37 = vrot.slane %v4111_v20, 1  ;;  %v454_v63 = vrot.slane %v4113_v33, 1  ;;  %v5275_v43 = vld [vmem:[#allocation51_spill] sm:$0xff] }
 0x110   :  { %v1601_v51 = vadd.f32 %v1537_v41, %v1477_v7  ;;  %v4126_v48 = vsel %vm196_vm0, %v260_v24, %v261_v1  ;;  %v4129_v58 = vsel %vm196_vm0, 0.0, %v260_v24  ;;  %v621_v54 = vmul.f32 %v3094_v45, %v5271_v10  ;;  %v5273_v24 = vld [vmem:[#allocation58_spill] sm:$0xff]  ;;  %v5277_v7 = vld [vmem:[#allocation53_spill] sm:$0xff] }
 0x111   :  { %5269 = vst [vmem:[#allocation38_spill] sm:$0xff] %v4126_v48  ;;  %v2033_v50 = vpack.c.bf16 %v1974_v2, %v1973_v15  ;;  %v1602_v23 = vadd.f32 %v1538_v62, %v1478_v52  ;;  %v4134_v42 = vsel %vm389_vm1, %v453_v37, %v454_v63  ;;  %v4137_v29 = vsel %vm389_vm1, %v454_v63, 0.0  ;;  %v5276_v62 = vld [vmem:[#allocation31_spill] sm:$0xff]  ;;  %v5278_v63 = vld [vmem:[#allocation52_spill] sm:$0xff] }
 0x112   :  { %5270 = vst [vmem:[#allocation56_spill] sm:$0xff] %v4129_v58  ;;  %v1669_v1 = vadd.f32 %v4142_v60, %v1601_v51  ;;  %v622_v56 = vmul.f32 %v3094_v45, %v5273_v24  ;;  %v682_v46 = vmul.f32 %v3104_v49, %v5274_v26  ;;  %v683_v57 = vmul.f32 %v3104_v49, %v5275_v43  ;;  %v5279_v26 = vld [vmem:[#allocation24_spill] sm:$0xff] }
 0x113   :  { %5272 = vst [vmem:[#allocation57_spill] sm:$0xff] %v4137_v29  ;;  %2157 = vmatmul.bf16.gmra.mxu0 %v2033_v50  ;;  %v1670_v18 = vadd.f32 %v4142_v60, %v1602_v23  ;;  %v803_v41 = vmul.f32 %v3112_v53, %v3668_v61  ;;  %v804_v15 = vmul.f32 %v3112_v53, %v5276_v62  ;;  %v5280_v23 = vld [vmem:[#allocation36_spill] sm:$0xff] }
 0x114   :  { %v928_v51 = vmul.f32 %v2973_v17, %v5277_v7  ;;  %v1733_v2 = vadd.f32 3.0, %v1669_v1  ;;  %v742_v52 = vadd.f32 %v682_v46, %v621_v54  ;;  %v743_v37 = vadd.f32 %v683_v57, %v622_v56 }
 0x115   :  { %v929_v10 = vmul.f32 %v2973_v17, %v5278_v63  ;;  %v1734_v24 = vadd.f32 3.0, %v1670_v18  ;;  %v993_v50 = vmul.f32 %v3007_v30, %v5279_v26  ;;  %v994_v43 = vmul.f32 %v3007_v30, %v5280_v23 }
 0x116   :  { %v1122_v61 = vmul.f32 %v3010_v31, %v3900_v47  ;;  %v1797_v62 = vmax.f32 %v1733_v2, 0.0  ;;  %v863_v36 = vadd.f32 %v803_v41, %v742_v52  ;;  %v864_v55 = vadd.f32 %v804_v15, %v743_v37  ;;  %v4176_v15 = vld [vmem:[#allocation2 + $0x1d0] sm:$0xff] }
 0x117   :  { %v1123_v54 = vmul.f32 %v3010_v31, %v3903_v28  ;;  %v1798_v56 = vmax.f32 %v1734_v24, 0.0  ;;  %v1057_v46 = vadd.f32 %v993_v50, %v928_v51  ;;  %v1058_v57 = vadd.f32 %v994_v43, %v929_v10  ;;  %5281 = vst [vmem:[#allocation32_spill] sm:$0xff] %v4176_v15  ;;  %v4180_v10 = vld [vmem:[#allocation2 + $0x1d8] sm:$0xff] }
 0x118   :  { %v1249_v63 = vmul.f32 %v3013_v32, %v4129_v58  ;;  %v1861_v7 = vmin.f32 %v1797_v62, 6.0  ;;  %v1250_v26 = vmul.f32 %v3013_v32, %v4126_v48  ;;  %v1310_v23 = vmul.f32 %v3018_v35, %v4111_v20  ;;  %5282 = vst [vmem:[#allocation48_spill] sm:$0xff] %v4180_v10 }
 0x119   :  { %v1311_v41 = vmul.f32 %v3018_v35, %v4113_v33  ;;  %v1862_v2 = vmin.f32 %v1798_v56, 6.0  ;;  %v1186_v52 = vadd.f32 %v1122_v61, %v1057_v46  ;;  %v1187_v37 = vadd.f32 %v1123_v54, %v1058_v57 }
 0x11a   :  { %v1431_v51 = vmul.f32 %v4115_v44, %v4134_v42  ;;  %v1925_v24 = vmul.f32 %v1861_v7, %v1669_v1  ;;  %v1370_v50 = vadd.f32 %v1310_v23, %v1249_v63  ;;  %v1432_v62 = vmul.f32 %v4115_v44, %v4137_v29 }
 0x11b   :  { %v1371_v43 = vadd.f32 %v1311_v41, %v1250_v26  ;;  %v1926_v20 = vmul.f32 %v1862_v2, %v1670_v18  ;;  %v1553_v48 = vadd.f32 %v1186_v52, %v863_v36  ;;  %v1554_v58 = vadd.f32 %v1187_v37, %v864_v55  ;;  %v5287_v41 = vld [vmem:[#allocation35_spill] sm:$0xff]  ;;  %v5289_v37 = vld [vmem:[#allocation61_spill] sm:$0xff] }
 0x11c   :  { %v284_v33 = vrot.slane %v4176_v15, 7  ;;  %v1989_v28 = vmul.f32 0.16666667, %v1925_v24  ;;  %v1491_v56 = vadd.f32 %v1431_v51, %v1370_v50  ;;  %v285_v54 = vrot.slane %v4180_v10, 7  ;;  %v5290_v24 = vld [vmem:[#allocation37_spill] sm:$0xff] }
 0x11d   :  { %v1492_v61 = vadd.f32 %v1432_v62, %v1371_v43  ;;  %v1990_v46 = vmul.f32 0.16666667, %v1926_v20  ;;  %v477_v1 = vrot.slane %v4176_v15, 1  ;;  %v478_v7 = vrot.slane %v4180_v10, 1  ;;  %v5291_v43 = vld [vmem:[#allocation23_spill] sm:$0xff] }
 0x11e   :  { %v4187_v57 = vsel %vm196_vm0, 0.0, %v284_v33  ;;  %v1617_v63 = vadd.f32 %v1553_v48, %v1491_v56  ;;  %v4192_v36 = vsel %vm196_vm0, %v284_v33, %v285_v54  ;;  %v637_v55 = vmul.f32 %v3094_v45, %v5249_v8 }
 0x11f   :  { %5283 = vst [vmem:[#allocation25_spill] sm:$0xff] %v4187_v57  ;;  %v1618_v26 = vadd.f32 %v1554_v58, %v1492_v61  ;;  %v2041_v18 = vpack.c.bf16 %v1990_v46, %v1989_v28  ;;  %v4197_v23 = vsel %vm389_vm1, %v477_v1, %v478_v7  ;;  %v4200_v20 = vsel %vm389_vm1, %v478_v7, 0.0  ;;  %v5288_v28 = vld [vmem:[#allocation60_spill] sm:$0xff]  ;;  %v5292_v46 = vld [vmem:[#allocation55_spill] sm:$0xff]  ;;  %v5293_v1 = vld [vmem:[#allocation41_spill] sm:$0xff] }
 0x120   :  { %5284 = vst [vmem:[#allocation59_spill] sm:$0xff] %v4192_v36  ;;  %v638_v2 = vmul.f32 %v3094_v45, %v5287_v41  ;;  %v1685_v52 = vadd.f32 %v4142_v60, %v1617_v63  ;;  %v698_v33 = vmul.f32 %v3104_v49, %v5251_v21  ;;  %v699_v8 = vmul.f32 %v3104_v49, %v5252_v4 }
 0x121   :  { %5285 = vst [vmem:[#allocation58_spill] sm:$0xff] %v4197_v23  ;;  %v1686_v48 = vadd.f32 %v4142_v60, %v1618_v26  ;;  %2197 = vmatmul.bf16.gmra.mxu1 %v2041_v18  ;;  %v819_v58 = vmul.f32 %v3112_v53, %v5288_v28  ;;  %v820_v51 = vmul.f32 %v3112_v53, %v5289_v37 }
 0x122   :  { %5286 = vst [vmem:[#allocation50_spill] sm:$0xff] %v4200_v20  ;;  %v944_v50 = vmul.f32 %v2973_v17, %v5290_v24  ;;  %v945_v62 = vmul.f32 %v2973_v17, %v5291_v43  ;;  %v1749_v56 = vadd.f32 3.0, %v1685_v52  ;;  %v758_v54 = vadd.f32 %v698_v33, %v637_v55 }
 0x123   :  { %v1750_v61 = vadd.f32 3.0, %v1686_v48  ;;  %v759_v21 = vadd.f32 %v699_v8, %v638_v2  ;;  %v1009_v4 = vmul.f32 %v3007_v30, %v5292_v46  ;;  %v1010_v7 = vmul.f32 %v3007_v30, %v5293_v1 }
 0x124   :  { %v1138_v63 = vmul.f32 %v3010_v31, %v3958_v12  ;;  %v1139_v26 = vmul.f32 %v3010_v31, %v3961_v38  ;;  %v1813_v18 = vmax.f32 %v1749_v56, 0.0  ;;  %v879_v28 = vadd.f32 %v819_v58, %v758_v54  ;;  %v4234_v56 = vld [vmem:[#allocation2 + $0x60] sm:$0xff]  ;;  %v4236_v58 = vld [vmem:[#allocation2 + $0x68] sm:$0xff] }
 0x125   :  { %v1814_v41 = vmax.f32 %v1750_v61, 0.0  ;;  %v880_v37 = vadd.f32 %v820_v51, %v759_v21  ;;  %v1073_v43 = vadd.f32 %v1009_v4, %v944_v50  ;;  %v1074_v24 = vadd.f32 %v1010_v7, %v945_v62 }
 0x126   :  { %v1265_v55 = vmul.f32 %v3013_v32, %v4187_v57  ;;  %v1266_v2 = vmul.f32 %v3013_v32, %v4192_v36  ;;  %v1877_v33 = vmin.f32 %v1813_v18, 6.0  ;;  %v1326_v12 = vmul.f32 %v3018_v35, %v4176_v15 }
 0x127   :  { %v1878_v8 = vmin.f32 %v1814_v41, 6.0  ;;  %v1327_v38 = vmul.f32 %v3018_v35, %v4180_v10  ;;  %v1202_v51 = vadd.f32 %v1138_v63, %v1073_v43  ;;  %v1203_v50 = vadd.f32 %v1139_v26, %v1074_v24 }
 0x128   :  { %v1447_v62 = vmul.f32 %v4115_v44, %v4197_v23  ;;  %v1448_v61 = vmul.f32 %v4115_v44, %v4200_v20  ;;  %v1941_v54 = vmul.f32 %v1877_v33, %v1685_v52  ;;  %v1386_v4 = vadd.f32 %v1326_v12, %v1265_v55 }
 0x129   :  { %v1942_v21 = vmul.f32 %v1878_v8, %v1686_v48  ;;  %v1387_v7 = vadd.f32 %v1327_v38, %v1266_v2  ;;  %v1569_v18 = vadd.f32 %v1202_v51, %v879_v28  ;;  %v1570_v41 = vadd.f32 %v1203_v50, %v880_v37 }
 0x12a   :  { %v215_v10 = vrot.slane %v4234_v56, 7  ;;  %v216_v15 = vrot.slane %v4236_v58, 7  ;;  %v2005_v36 = vmul.f32 0.16666667, %v1941_v54  ;;  %v1507_v43 = vadd.f32 %v1447_v62, %v1386_v4 }
 0x12b   :  { %v2006_v57 = vmul.f32 0.16666667, %v1942_v21  ;;  %v1508_v24 = vadd.f32 %v1448_v61, %v1387_v7  ;;  %v408_v52 = vrot.slane %v4234_v56, 1  ;;  %v409_v12 = vrot.slane %v4236_v58, 1 }
 0x12c   :  { %v4245_v63 = vsel %vm196_vm0, %v215_v10, %v216_v15  ;;  %v4248_v26 = vsel %vm196_vm0, 0.0, %v215_v10  ;;  %v1633_v48 = vadd.f32 %v1569_v18, %v1507_v43  ;;  %v593_v37 = vmul.f32 %v3094_v45, %v3777_v9 }
 0x12d   :  { %v2049_v38 = vpack.c.bf16 %v2006_v57, %v2005_v36  ;;  %v1634_v28 = vadd.f32 %v1570_v41, %v1508_v24  ;;  %v4255_v55 = vsel %vm389_vm1, %v408_v52, %v409_v12  ;;  %v4258_v2 = vsel %vm389_vm1, %v409_v12, 0.0 }
 0x12e   :  { %v594_v15 = vmul.f32 %v3094_v45, %v3774_v19  ;;  %v654_v10 = vmul.f32 %v3104_v49, %v3763_v27  ;;  %v1701_v57 = vadd.f32 %v4142_v60, %v1633_v48  ;;  %v655_v9 = vmul.f32 %v3104_v49, %v3765_v16 }
 0x12f   :  { %2237 = vmatmul.bf16.gmra.mxu2 %v2049_v38  ;;  %v1702_v36 = vadd.f32 %v4142_v60, %v1634_v28  ;;  %v775_v33 = vmul.f32 %v3112_v53, %v3784_v40  ;;  %v776_v51 = vmul.f32 %v3112_v53, %v3787_v34  ;;  %v898_v19 = vmul.f32 %v2973_v17, %v4009_v6 }
 0x130   :  { %v714_v8 = vadd.f32 %v654_v10, %v593_v37  ;;  %v899_v27 = vmul.f32 %v2973_v17, %v4006_v3  ;;  %v1765_v50 = vadd.f32 3.0, %v1701_v57  ;;  %v715_v61 = vadd.f32 %v655_v9, %v594_v15  ;;  %v4292_v15 = vld [vmem:[#allocation2 + $0xe0] sm:$0xff]  ;;  %v4294_v10 = vld [vmem:[#allocation2 + $0xe8] sm:$0xff] }
 0x131   :  { %v1766_v62 = vadd.f32 3.0, %v1702_v36  ;;  %v963_v54 = vmul.f32 %v3007_v30, %v3995_v22  ;;  %v964_v40 = vmul.f32 %v3007_v30, %v3997_v13  ;;  %v1092_v21 = vmul.f32 %v3010_v31, %v4016_v39  ;;  %5294 = vst [vmem:[#allocation51_spill] sm:$0xff] %v4292_v15 }
 0x132   :  { %v835_v16 = vadd.f32 %v775_v33, %v714_v8  ;;  %v1093_v34 = vmul.f32 %v3010_v31, %v4019_v25  ;;  %v1829_v4 = vmax.f32 %v1765_v50, 0.0  ;;  %v836_v18 = vadd.f32 %v776_v51, %v715_v61  ;;  %5295 = vst [vmem:[#allocation31_spill] sm:$0xff] %v4294_v10 }
 0x133   :  { %v1830_v7 = vmax.f32 %v1766_v62, 0.0  ;;  %v1027_v41 = vadd.f32 %v963_v54, %v898_v19  ;;  %v1028_v43 = vadd.f32 %v964_v40, %v899_v27  ;;  %v1221_v24 = vmul.f32 %v3013_v32, %v4248_v26 }
 0x134   :  { %v1222_v52 = vmul.f32 %v3013_v32, %v4245_v63  ;;  %v1282_v12 = vmul.f32 %v3018_v35, %v4234_v56  ;;  %v1893_v38 = vmin.f32 %v1829_v4, 6.0  ;;  %v1283_v37 = vmul.f32 %v3018_v35, %v4236_v58 }
 0x135   :  { %v1894_v48 = vmin.f32 %v1830_v7, 6.0  ;;  %v1156_v28 = vadd.f32 %v1092_v21, %v1027_v41  ;;  %v1157_v9 = vadd.f32 %v1093_v34, %v1028_v43  ;;  %v1403_v8 = vmul.f32 %v4115_v44, %v4255_v55 }
 0x136   :  { %v1342_v33 = vadd.f32 %v1282_v12, %v1221_v24  ;;  %v1404_v51 = vmul.f32 %v4115_v44, %v4258_v2  ;;  %v1957_v19 = vmul.f32 %v1893_v38, %v1701_v57  ;;  %v1343_v50 = vadd.f32 %v1283_v37, %v1222_v52 }
 0x137   :  { %v1958_v27 = vmul.f32 %v1894_v48, %v1702_v36  ;;  %v1523_v62 = vadd.f32 %v1156_v28, %v835_v16  ;;  %v1524_v54 = vadd.f32 %v1157_v9, %v836_v18  ;;  %v239_v40 = vrot.slane %v4292_v15, 7 }
 0x138   :  { %v1463_v61 = vadd.f32 %v1403_v8, %v1342_v33  ;;  %v240_v21 = vrot.slane %v4294_v10, 7  ;;  %v2021_v4 = vmul.f32 0.16666667, %v1957_v19  ;;  %v1464_v34 = vadd.f32 %v1404_v51, %v1343_v50  ;;  %v5298_v33 = vld [vmem:[#allocation28_spill] sm:$0xff] }
 0x139   :  { %v2022_v7 = vmul.f32 0.16666667, %v1958_v27  ;;  %v432_v41 = vrot.slane %v4292_v15, 1  ;;  %v4307_v57 = vsel %vm196_vm0, 0.0, %v239_v40  ;;  %v433_v36 = vrot.slane %v4294_v10, 1  ;;  %v5299_v27 = vld [vmem:[#allocation33_spill] sm:$0xff] }
 0x13a   :  { %v1587_v43 = vadd.f32 %v1523_v62, %v1463_v61  ;;  %v4304_v24 = vsel %vm196_vm0, %v239_v40, %v240_v21  ;;  %v1588_v18 = vadd.f32 %v1524_v54, %v1464_v34  ;;  %v609_v52 = vmul.f32 %v3094_v45, %v3836_v14  ;;  %v5300_v62 = vld [vmem:[#allocation34_spill] sm:$0xff]  ;;  %v5301_v40 = vld [vmem:[#allocation13_spill] sm:$0xff]  ;;  %v5303_v34 = vld [vmem:[#allocation27_spill] sm:$0xff] }
 0x13b   :  { %5296 = vst [vmem:[#allocation35_spill] sm:$0xff] %v4304_v24  ;;  %v2057_v16 = vpack.c.bf16 %v2022_v7, %v2021_v4  ;;  %v610_v12 = vmul.f32 %v3094_v45, %v5263_v59  ;;  %v4316_v48 = vsel %vm389_vm1, %v432_v41, %v433_v36  ;;  %v4319_v28 = vsel %vm389_vm1, %v433_v36, 0.0 }
 0x13c   :  { %v1655_v38 = vadd.f32 %v4142_v60, %v1587_v43  ;;  %5297 = vst [vmem:[#allocation60_spill] sm:$0xff] %v4319_v28  ;;  %v670_v37 = vmul.f32 %v3104_v49, %v5264_v5  ;;  %v1656_v9 = vadd.f32 %v4142_v60, %v1588_v18  ;;  %v671_v14 = vmul.f32 %v3104_v49, %v5265_v11  ;;  %v5302_v11 = vld [vmem:[#allocation29_spill] sm:$0xff]  ;;  %v5304_v43 = vld [vmem:[#allocation30_spill] sm:$0xff] }
 0x13d   :  { %2277 = vmatmul.bf16.gmra.mxu3 %v2057_v16  ;;  %v791_v59 = vmul.f32 %v3112_v53, %v3845_v0  ;;  %v792_v8 = vmul.f32 %v3112_v53, %v5298_v33  ;;  %v914_v50 = vmul.f32 %v2973_v17, %v5299_v27  ;;  %v915_v5 = vmul.f32 %v2973_v17, %v5300_v62 }
 0x13e   :  { %v1719_v51 = vadd.f32 3.0, %v1655_v38  ;;  %v730_v19 = vadd.f32 %v670_v37, %v609_v52  ;;  %v1720_v61 = vadd.f32 3.0, %v1656_v9  ;;  %v731_v54 = vadd.f32 %v671_v14, %v610_v12 }
 0x13f   :  { %v979_v21 = vmul.f32 %v3007_v30, %v5301_v40  ;;  %v980_v4 = vmul.f32 %v3007_v30, %v5302_v11  ;;  %v1108_v41 = vmul.f32 %v3010_v31, %v5303_v34  ;;  %v1109_v36 = vmul.f32 %v3010_v31, %v5304_v43 }
 0x140   :  { %v1783_v0 = vmax.f32 %v1719_v51, 0.0  ;;  %v851_v7 = vadd.f32 %v791_v59, %v730_v19  ;;  %v1784_v16 = vmax.f32 %v1720_v61, 0.0  ;;  %v852_v18 = vadd.f32 %v792_v8, %v731_v54  ;;  %v4350_v61 = vld [vmem:[#allocation2 + $0x160] sm:$0xff]  ;;  %v4352_v8 = vld [vmem:[#allocation2 + $0x168] sm:$0xff] }
 0x141   :  { %v1043_v52 = vadd.f32 %v979_v21, %v914_v50  ;;  %v1044_v37 = vadd.f32 %v980_v4, %v915_v5  ;;  %v1237_v12 = vmul.f32 %v3013_v32, %v4307_v57  ;;  %v1238_v14 = vmul.f32 %v3013_v32, %v4304_v24  ;;  %5305 = vst [vmem:[#allocation61_spill] sm:$0xff] %v4350_v61 }
 0x142   :  { %v1847_v33 = vmin.f32 %v1783_v0, 6.0  ;;  %v1298_v59 = vmul.f32 %v3018_v35, %v4292_v15  ;;  %v1848_v51 = vmin.f32 %v1784_v16, 6.0  ;;  %v1299_v43 = vmul.f32 %v3018_v35, %v4294_v10  ;;  %5306 = vst [vmem:[#allocation55_spill] sm:$0xff] %v4352_v8 }
 0x143   :  { %v1172_v19 = vadd.f32 %v1108_v41, %v1043_v52  ;;  %v1173_v34 = vadd.f32 %v1109_v36, %v1044_v37  ;;  %v1419_v54 = vmul.f32 %v4115_v44, %v4316_v48  ;;  %v1420_v21 = vmul.f32 %v4115_v44, %v4319_v28 }
 0x144   :  { %v1911_v50 = vmul.f32 %v1847_v33, %v1655_v38  ;;  %v1358_v5 = vadd.f32 %v1298_v59, %v1237_v12  ;;  %v1912_v4 = vmul.f32 %v1848_v51, %v1656_v9  ;;  %v1359_v0 = vadd.f32 %v1299_v43, %v1238_v14 }
 0x145   :  { %v1539_v16 = vadd.f32 %v1172_v19, %v851_v7  ;;  %v1540_v41 = vadd.f32 %v1173_v34, %v852_v18  ;;  %v263_v37 = vrot.slane %v4350_v61, 7  ;;  %v264_v10 = vrot.slane %v4352_v8, 7  ;;  %v5309_v7 = vld [vmem:[#allocation53_spill] sm:$0xff] }
 0x146   :  { %v1975_v36 = vmul.f32 0.16666667, %v1911_v50  ;;  %v1479_v52 = vadd.f32 %v1419_v54, %v1358_v5  ;;  %v1976_v15 = vmul.f32 0.16666667, %v1912_v4  ;;  %v1480_v24 = vadd.f32 %v1420_v21, %v1359_v0  ;;  %v5312_v50 = vld [vmem:[#allocation52_spill] sm:$0xff]  ;;  %v5315_v0 = vld [vmem:[#allocation54_spill] sm:$0xff] }
 0x147   :  { %v456_v38 = vrot.slane %v4350_v61, 1  ;;  %v457_v33 = vrot.slane %v4352_v8, 1  ;;  %v4363_v59 = vsel %vm196_vm0, %v263_v37, %v264_v10  ;;  %v4366_v9 = vsel %vm196_vm0, 0.0, %v263_v37  ;;  %v5313_v5 = vld [vmem:[#allocation24_spill] sm:$0xff] }
 0x148   :  { %v1603_v12 = vadd.f32 %v1539_v16, %v1479_v52  ;;  %5307 = vst [vmem:[#allocation41_spill] sm:$0xff] %v4363_v59  ;;  %v623_v34 = vmul.f32 %v3094_v45, %v5309_v7  ;;  %v2034_v43 = vpack.c.bf16 %v1976_v15, %v1975_v36  ;;  %v1604_v18 = vadd.f32 %v1540_v41, %v1480_v24  ;;  %v5314_v21 = vld [vmem:[#allocation36_spill] sm:$0xff] }
 0x149   :  { %5308 = vst [vmem:[#allocation28_spill] sm:$0xff] %v4366_v9  ;;  %v4371_v14 = vsel %vm389_vm1, %v456_v38, %v457_v33  ;;  %v4374_v51 = vsel %vm389_vm1, %v457_v33, 0.0  ;;  %v624_v10 = vmul.f32 %v3094_v45, %v5312_v50  ;;  %v684_v54 = vmul.f32 %v3104_v49, %v5313_v5  ;;  %v5316_v41 = vld [vmem:[#allocation56_spill] sm:$0xff]  ;;  %v5317_v33 = vld [vmem:[#allocation38_spill] sm:$0xff] }
 0x14a   :  { %5310 = vst [vmem:[#allocation33_spill] sm:$0xff] %v4371_v14  ;;  %v1671_v19 = vadd.f32 %v4142_v60, %v1603_v12  ;;  %v685_v4 = vmul.f32 %v3104_v49, %v5314_v21  ;;  %2162 = vmatmul.bf16.gmra.mxu0 %v2034_v43  ;;  %v1672_v15 = vadd.f32 %v4142_v60, %v1604_v18  ;;  %v5318_v50 = vld [vmem:[#allocation26_spill] sm:$0xff]  ;;  %v5319_v18 = vld [vmem:[#allocation49_spill] sm:$0xff] }
 0x14b   :  { %5311 = vst [vmem:[#allocation34_spill] sm:$0xff] %v4374_v51  ;;  %v805_v24 = vmul.f32 %v3112_v53, %v3900_v47  ;;  %v806_v16 = vmul.f32 %v3112_v53, %v5315_v0  ;;  %v930_v36 = vmul.f32 %v2973_v17, %v5316_v41  ;;  %v744_v37 = vadd.f32 %v684_v54, %v623_v34 }
 0x14c   :  { %v1735_v52 = vadd.f32 3.0, %v1671_v19  ;;  %v745_v38 = vadd.f32 %v685_v4, %v624_v10  ;;  %v931_v12 = vmul.f32 %v2973_v17, %v5317_v33  ;;  %v1736_v7 = vadd.f32 3.0, %v1672_v15 }
 0x14d   :  { %v995_v43 = vmul.f32 %v3007_v30, %v5318_v50  ;;  %v996_v5 = vmul.f32 %v3007_v30, %v5319_v18  ;;  %v1124_v47 = vmul.f32 %v3010_v31, %v4134_v42  ;;  %v865_v0 = vadd.f32 %v805_v24, %v744_v37 }
 0x14e   :  { %v1799_v21 = vmax.f32 %v1735_v52, 0.0  ;;  %v866_v28 = vadd.f32 %v806_v16, %v745_v38  ;;  %v1125_v34 = vmul.f32 %v3010_v31, %v4137_v29  ;;  %v1800_v10 = vmax.f32 %v1736_v7, 0.0  ;;  %v4408_v16 = vld [vmem:[#allocation2 + $0x1e0] sm:$0xff] }
 0x14f   :  { %v1059_v54 = vadd.f32 %v995_v43, %v930_v36  ;;  %v1060_v4 = vadd.f32 %v996_v5, %v931_v12  ;;  %v1251_v33 = vmul.f32 %v3013_v32, %v4366_v9  ;;  %v1252_v50 = vmul.f32 %v3013_v32, %v4363_v59  ;;  %v4412_v12 = vld [vmem:[#allocation2 + $0x1e8] sm:$0xff] }
 0x150   :  { %v1863_v41 = vmin.f32 %v1799_v21, 6.0  ;;  %v1312_v18 = vmul.f32 %v3018_v35, %v4350_v61  ;;  %v1313_v24 = vmul.f32 %v3018_v35, %v4352_v8  ;;  %v1864_v52 = vmin.f32 %v1800_v10, 6.0 }
 0x151   :  { %v1188_v37 = vadd.f32 %v1124_v47, %v1059_v54  ;;  %v1189_v38 = vadd.f32 %v1125_v34, %v1060_v4  ;;  %v1433_v36 = vmul.f32 %v4115_v44, %v4371_v14  ;;  %v1434_v21 = vmul.f32 %v4115_v44, %v4374_v51 }
 0x152   :  { %v1927_v7 = vmul.f32 %v1863_v41, %v1671_v19  ;;  %v1372_v43 = vadd.f32 %v1312_v18, %v1251_v33  ;;  %v1373_v5 = vadd.f32 %v1313_v24, %v1252_v50  ;;  %v1928_v61 = vmul.f32 %v1864_v52, %v1672_v15  ;;  %v5322_v52 = vld [vmem:[#allocation23_spill] sm:$0xff] }
 0x153   :  { %v1555_v59 = vadd.f32 %v1188_v37, %v865_v0  ;;  %v1556_v9 = vadd.f32 %v1189_v38, %v866_v28  ;;  %v287_v8 = vrot.slane %v4408_v16, 7  ;;  %v288_v34 = vrot.slane %v4412_v12, 7  ;;  %v5320_v28 = vld [vmem:[#allocation37_spill] sm:$0xff] }
 0x154   :  { %v1991_v29 = vmul.f32 0.16666667, %v1927_v7  ;;  %v1493_v10 = vadd.f32 %v1433_v36, %v1372_v43  ;;  %v1494_v47 = vadd.f32 %v1434_v21, %v1373_v5  ;;  %v1992_v54 = vmul.f32 0.16666667, %v1928_v61  ;;  %v5324_v7 = vld [vmem:[#allocation12_spill] sm:$0xff]  ;;  %v5325_v5 = vld [vmem:[#allocation25_spill] sm:$0xff] }
 0x155   :  { %v4419_v4 = vsel %vm196_vm0, 0.0, %v287_v8  ;;  %v480_v19 = vrot.slane %v4408_v16, 1  ;;  %v481_v41 = vrot.slane %v4412_v12, 1  ;;  %v4424_v15 = vsel %vm196_vm0, %v287_v8, %v288_v34 }
 0x156   :  { %v1619_v33 = vadd.f32 %v1555_v59, %v1493_v10  ;;  %v1620_v50 = vadd.f32 %v1556_v9, %v1494_v47  ;;  %v639_v18 = vmul.f32 %v3094_v45, %v5320_v28  ;;  %v2042_v0 = vpack.c.bf16 %v1992_v54, %v1991_v29  ;;  %v5323_v29 = vld [vmem:[#allocation22_spill] sm:$0xff]  ;;  %v5326_v10 = vld [vmem:[#allocation59_spill] sm:$0xff] }
 0x157   :  { %v4429_v24 = vsel %vm389_vm1, %v480_v19, %v481_v41  ;;  %v4432_v61 = vsel %vm389_vm1, %v481_v41, 0.0  ;;  %v640_v37 = vmul.f32 %v3094_v45, %v5322_v52  ;;  %v700_v8 = vmul.f32 %v3104_v49, %v5292_v46  ;;  %v5327_v41 = vld [vmem:[#allocation32_spill] sm:$0xff] }
 0x158   :  { %5321 = vst [vmem:[#allocation13_spill] sm:$0xff] %v4429_v24  ;;  %v1687_v38 = vadd.f32 %v4142_v60, %v1619_v33  ;;  %v1688_v59 = vadd.f32 %v4142_v60, %v1620_v50  ;;  %v701_v9 = vmul.f32 %v3104_v49, %v5293_v1  ;;  %2202 = vmatmul.bf16.gmra.mxu1 %v2042_v0  ;;  %v5328_v33 = vld [vmem:[#allocation48_spill] sm:$0xff] }
 0x159   :  { %v821_v36 = vmul.f32 %v3112_v53, %v5323_v29  ;;  %v822_v43 = vmul.f32 %v3112_v53, %v5324_v7  ;;  %v946_v21 = vmul.f32 %v2973_v17, %v5325_v5  ;;  %v947_v47 = vmul.f32 %v2973_v17, %v5326_v10 }
 0x15a   :  { %v1751_v34 = vadd.f32 3.0, %v1687_v38  ;;  %v1752_v54 = vadd.f32 3.0, %v1688_v59  ;;  %v760_v19 = vadd.f32 %v700_v8, %v639_v18  ;;  %v761_v46 = vadd.f32 %v701_v9, %v640_v37 }
 0x15b   :  { %v1011_v1 = vmul.f32 %v3007_v30, %v5327_v41  ;;  %v1012_v50 = vmul.f32 %v3007_v30, %v5328_v33  ;;  %v1140_v28 = vmul.f32 %v3010_v31, %v4197_v23  ;;  %v1141_v0 = vmul.f32 %v3010_v31, %v4200_v20 }
 0x15c   :  { %v1815_v52 = vmax.f32 %v1751_v34, 0.0  ;;  %v1816_v29 = vmax.f32 %v1752_v54, 0.0  ;;  %v881_v7 = vadd.f32 %v821_v36, %v760_v19  ;;  %v882_v10 = vadd.f32 %v822_v43, %v761_v46 }
 0x15d   :  { %v1075_v5 = vadd.f32 %v1011_v1, %v946_v21  ;;  %v1076_v51 = vadd.f32 %v1012_v50, %v947_v47  ;;  %v1267_v18 = vmul.f32 %v3013_v32, %v4419_v4  ;;  %v1268_v37 = vmul.f32 %v3013_v32, %v4424_v15 }
 0x15e   :  { %v1879_v8 = vmin.f32 %v1815_v52, 6.0  ;;  %v1880_v9 = vmin.f32 %v1816_v29, 6.0  ;;  %v1328_v23 = vmul.f32 %v3018_v35, %v4408_v16  ;;  %v1329_v20 = vmul.f32 %v3018_v35, %v4412_v12 }
 0x15f   :  { %v1204_v34 = vadd.f32 %v1140_v28, %v1075_v5  ;;  %v1205_v54 = vadd.f32 %v1141_v0, %v1076_v51  ;;  %v1449_v36 = vmul.f32 %v4115_v44, %v4429_v24  ;;  %v1450_v43 = vmul.f32 %v4115_v44, %v4432_v61 }
 0x160   :  { %v1943_v21 = vmul.f32 %v1879_v8, %v1687_v38  ;;  %v1944_v47 = vmul.f32 %v1880_v9, %v1688_v59  ;;  %v1388_v19 = vadd.f32 %v1328_v23, %v1267_v18  ;;  %v1389_v46 = vadd.f32 %v1329_v20, %v1268_v37 }
 0x161   :  { %v1571_v1 = vadd.f32 %v1204_v34, %v881_v7  ;;  %v1572_v50 = vadd.f32 %v1205_v54, %v882_v10  ;;  %v595_v52 = vmul.f32 %v3094_v45, %v4009_v6  ;;  %v596_v29 = vmul.f32 %v3094_v45, %v4006_v3 }
 0x162   :  { %v2007_v5 = vmul.f32 0.16666667, %v1943_v21  ;;  %v2008_v51 = vmul.f32 0.16666667, %v1944_v47  ;;  %v1509_v28 = vadd.f32 %v1449_v36, %v1388_v19  ;;  %v1510_v0 = vadd.f32 %v1450_v43, %v1389_v46  ;;  %v5329_v47 = vld [vmem:[#allocation15_spill] sm:$0xff] }
 0x163   :  { %v656_v24 = vmul.f32 %v3104_v49, %v3995_v22  ;;  %v657_v38 = vmul.f32 %v3104_v49, %v3997_v13  ;;  %v777_v23 = vmul.f32 %v3112_v53, %v4016_v39  ;;  %v778_v20 = vmul.f32 %v3112_v53, %v4019_v25 }
 0x164   :  { %v2050_v6 = vpack.c.bf16 %v2008_v51, %v2007_v5  ;;  %v1635_v59 = vadd.f32 %v1571_v1, %v1509_v28  ;;  %v1636_v10 = vadd.f32 %v1572_v50, %v1510_v0  ;;  %v900_v3 = vmul.f32 %v2973_v17, %v4248_v26  ;;  %v5330_v1 = vld [vmem:[#allocation14_spill] sm:$0xff]  ;;  %v4504_v5 = vld [vmem:[#allocation2 + $0x78] sm:$0xff]  ;;  %v4508_v28 = vld [vmem:[#allocation2 + $0xf0] sm:$0xff] }
 0x165   :  { %v716_v7 = vadd.f32 %v656_v24, %v595_v52  ;;  %v717_v18 = vadd.f32 %v657_v38, %v596_v29  ;;  %v901_v22 = vmul.f32 %v2973_v17, %v4245_v63  ;;  %v965_v13 = vmul.f32 %v3007_v30, %v4234_v56  ;;  %v4500_v52 = vld [vmem:[#allocation2 + $0x70] sm:$0xff]  ;;  %5331 = vst [vmem:[#allocation29_spill] sm:$0xff] %v4504_v5 }
 0x166   :  { %2242 = vmatmul.bf16.gmra.mxu2 %v2050_v6  ;;  %v1703_v39 = vadd.f32 %v4142_v60, %v1635_v59  ;;  %v1704_v37 = vadd.f32 %v4142_v60, %v1636_v10  ;;  %v966_v25 = vmul.f32 %v3007_v30, %v4236_v58  ;;  %v1094_v8 = vmul.f32 %v3010_v31, %v4255_v55  ;;  %v4512_v59 = vld [vmem:[#allocation2 + $0xf8] sm:$0xff] }
 0x167   :  { %v837_v9 = vadd.f32 %v777_v23, %v716_v7  ;;  %v838_v24 = vadd.f32 %v778_v20, %v717_v18  ;;  %v1029_v34 = vadd.f32 %v965_v13, %v900_v3  ;;  %v1095_v54 = vmul.f32 %v3010_v31, %v4258_v2  ;;  %5332 = vst [vmem:[#allocation53_spill] sm:$0xff] %v4508_v28  ;;  %v5333_v20 = vld [vmem:[#allocation18_spill] sm:$0xff]  ;;  %v5335_v7 = vld [vmem:[#allocation19_spill] sm:$0xff] }
 0x168   :  { %v1767_v36 = vadd.f32 3.0, %v1703_v39  ;;  %v1768_v43 = vadd.f32 3.0, %v1704_v37  ;;  %v1030_v21 = vadd.f32 %v966_v25, %v901_v22  ;;  %v1223_v19 = vmul.f32 %v3013_v32, %v5329_v47  ;;  %5334 = vst [vmem:[#allocation52_spill] sm:$0xff] %v4512_v59 }
 0x169   :  { %v1158_v46 = vadd.f32 %v1094_v8, %v1029_v34  ;;  %v1224_v50 = vmul.f32 %v3013_v32, %v5330_v1  ;;  %v1284_v29 = vmul.f32 %v4500_v52, %v3018_v35  ;;  %v1285_v51 = vmul.f32 %v4504_v5, %v3018_v35 }
 0x16a   :  { %v1831_v0 = vmax.f32 %v1767_v36, 0.0  ;;  %v1832_v38 = vmax.f32 %v1768_v43, 0.0  ;;  %v1159_v23 = vadd.f32 %v1095_v54, %v1030_v21  ;;  %v1405_v6 = vmul.f32 %v4115_v44, %v5333_v20 }
 0x16b   :  { %v1344_v10 = vadd.f32 %v1284_v29, %v1223_v19  ;;  %v1345_v3 = vadd.f32 %v1285_v51, %v1224_v50  ;;  %v1406_v18 = vmul.f32 %v4115_v44, %v5335_v7  ;;  %v1525_v22 = vadd.f32 %v1158_v46, %v837_v9 }
 0x16c   :  { %v1895_v13 = vmin.f32 %v1831_v0, 6.0  ;;  %v1896_v25 = vmin.f32 %v1832_v38, 6.0  ;;  %v1526_v8 = vadd.f32 %v1159_v23, %v838_v24  ;;  %v242_v34 = vrot.slane %v4508_v28, 7 }
 0x16d   :  { %v1465_v5 = vadd.f32 %v1405_v6, %v1344_v10  ;;  %v1466_v36 = vadd.f32 %v1406_v18, %v1345_v3  ;;  %v243_v54 = vrot.slane %v4512_v59, 7  ;;  %v435_v43 = vrot.slane %v4508_v28, 1  ;;  %v5339_v18 = vld [vmem:[#allocation30_spill] sm:$0xff] }
 0x16e   :  { %v1959_v21 = vmul.f32 %v1895_v13, %v1703_v39  ;;  %v1960_v20 = vmul.f32 %v1896_v25, %v1704_v37  ;;  %v4520_v19 = vsel %vm196_vm0, 0.0, %v242_v34  ;;  %v436_v50 = vrot.slane %v4512_v59, 1 }
 0x16f   :  { %v1589_v29 = vadd.f32 %v1525_v22, %v1465_v5  ;;  %v1590_v9 = vadd.f32 %v1526_v8, %v1466_v36  ;;  %v4524_v46 = vsel %vm196_vm0, %v242_v34, %v243_v54  ;;  %v611_v24 = vmul.f32 %v3094_v45, %v5299_v27  ;;  %v5340_v36 = vld [vmem:[#allocation35_spill] sm:$0xff] }
 0x170   :  { %v2023_v51 = vmul.f32 0.16666667, %v1959_v21  ;;  %v2024_v0 = vmul.f32 0.16666667, %v1960_v20  ;;  %v4529_v38 = vsel %vm389_vm1, %v435_v43, %v436_v50  ;;  %v4532_v39 = vsel %vm389_vm1, %v436_v50, 0.0  ;;  %v5338_v20 = vld [vmem:[#allocation27_spill] sm:$0xff] }
 0x171   :  { %5336 = vst [vmem:[#allocation24_spill] sm:$0xff] %v4529_v38  ;;  %v1657_v37 = vadd.f32 %v4142_v60, %v1589_v29  ;;  %v1658_v23 = vadd.f32 %v4142_v60, %v1590_v9  ;;  %v612_v5 = vmul.f32 %v3094_v45, %v5300_v62  ;;  %v672_v6 = vmul.f32 %v3104_v49, %v5301_v40  ;;  %v5341_v54 = vld [vmem:[#allocation51_spill] sm:$0xff] }
 0x172   :  { %5337 = vst [vmem:[#allocation36_spill] sm:$0xff] %v4532_v39  ;;  %v2058_v10 = vpack.c.bf16 %v2024_v0, %v2023_v51  ;;  %v673_v27 = vmul.f32 %v3104_v49, %v5302_v11  ;;  %v793_v3 = vmul.f32 %v3112_v53, %v5338_v20  ;;  %v794_v22 = vmul.f32 %v3112_v53, %v5339_v18  ;;  %v5342_v43 = vld [vmem:[#allocation31_spill] sm:$0xff] }
 0x173   :  { %v1721_v13 = vadd.f32 3.0, %v1657_v37  ;;  %v1722_v25 = vadd.f32 3.0, %v1658_v23  ;;  %v732_v8 = vadd.f32 %v672_v6, %v611_v24  ;;  %v916_v34 = vmul.f32 %v2973_v17, %v4307_v57 }
 0x174   :  { %2282 = vmatmul.bf16.gmra.mxu3 %v2058_v10  ;;  %v733_v62 = vadd.f32 %v673_v27, %v612_v5  ;;  %v917_v40 = vmul.f32 %v2973_v17, %v5340_v36  ;;  %v981_v11 = vmul.f32 %v3007_v30, %v5341_v54  ;;  %v982_v21 = vmul.f32 %v3007_v30, %v5342_v43  ;;  %v5343_v10 = vld [vmem:[#allocation60_spill] sm:$0xff] }
 0x175   :  { %v1785_v50 = vmax.f32 %v1721_v13, 0.0  ;;  %v1786_v29 = vmax.f32 %v1722_v25, 0.0  ;;  %v853_v9 = vadd.f32 %v793_v3, %v732_v8  ;;  %v1110_v24 = vmul.f32 %v3010_v31, %v4316_v48 }
 0x176   :  { %v854_v51 = vadd.f32 %v794_v22, %v733_v62  ;;  %v1045_v0 = vadd.f32 %v981_v11, %v916_v34  ;;  %v1046_v6 = vadd.f32 %v982_v21, %v917_v40  ;;  %v1111_v5 = vmul.f32 %v3010_v31, %v5343_v10 }
 0x177   :  { %v1849_v27 = vmin.f32 %v1785_v50, 6.0  ;;  %v1850_v20 = vmin.f32 %v1786_v29, 6.0  ;;  %v1239_v18 = vmul.f32 %v3013_v32, %v4520_v19  ;;  %v1240_v43 = vmul.f32 %v3013_v32, %v4524_v46 }
 0x178   :  { %v1174_v13 = vadd.f32 %v1110_v24, %v1045_v0  ;;  %v1175_v25 = vadd.f32 %v1111_v5, %v1046_v6  ;;  %v1300_v3 = vmul.f32 %v3018_v35, %v4508_v28  ;;  %v1301_v22 = vmul.f32 %v3018_v35, %v4512_v59  ;;  %v5344_v6 = vld [vmem:[#allocation56_spill] sm:$0xff]  ;;  %v5345_v28 = vld [vmem:[#allocation38_spill] sm:$0xff] }
 0x179   :  { %v1913_v8 = vmul.f32 %v1849_v27, %v1657_v37  ;;  %v1914_v34 = vmul.f32 %v1850_v20, %v1658_v23  ;;  %v1421_v62 = vmul.f32 %v4115_v44, %v4529_v38  ;;  %v1422_v40 = vmul.f32 %v4115_v44, %v4532_v39  ;;  %v5346_v27 = vld [vmem:[#allocation26_spill] sm:$0xff]  ;;  %v5347_v38 = vld [vmem:[#allocation49_spill] sm:$0xff] }
 0x17a   :  { %v1360_v11 = vadd.f32 %v1300_v3, %v1239_v18  ;;  %v1361_v21 = vadd.f32 %v1301_v22, %v1240_v43  ;;  %v1541_v50 = vadd.f32 %v1174_v13, %v853_v9  ;;  %v1542_v29 = vadd.f32 %v1175_v25, %v854_v51  ;;  %v5348_v9 = vld [vmem:[#allocation57_spill] sm:$0xff]  ;;  %v5349_v13 = vld [vmem:[#allocation28_spill] sm:$0xff] }
 0x17b   :  { %v1977_v24 = vmul.f32 0.16666667, %v1913_v8  ;;  %v1978_v0 = vmul.f32 0.16666667, %v1914_v34  ;;  %v625_v5 = vmul.f32 %v3094_v45, %v5344_v6  ;;  %v626_v59 = vmul.f32 %v3094_v45, %v5345_v28  ;;  %v5350_v34 = vld [vmem:[#allocation41_spill] sm:$0xff]  ;;  %v5353_v6 = vld [vmem:[#allocation34_spill] sm:$0xff] }
 0x17c   :  { %v1481_v37 = vadd.f32 %v1421_v62, %v1360_v11  ;;  %v1482_v23 = vadd.f32 %v1422_v40, %v1361_v21  ;;  %v686_v20 = vmul.f32 %v3104_v49, %v5346_v27  ;;  %v687_v39 = vmul.f32 %v3104_v49, %v5347_v38  ;;  %v5351_v40 = vld [vmem:[#allocation61_spill] sm:$0xff]  ;;  %v5352_v11 = vld [vmem:[#allocation55_spill] sm:$0xff] }
 0x17d   :  { %v2035_v18 = vpack.c.bf16 %v1978_v0, %v1977_v24  ;;  %v807_v43 = vmul.f32 %v3112_v53, %v4134_v42  ;;  %v808_v51 = vmul.f32 %v3112_v53, %v5348_v9  ;;  %v932_v25 = vmul.f32 %v2973_v17, %v5349_v13 }
 0x17e   :  { %v1605_v3 = vadd.f32 %v1541_v50, %v1481_v37  ;;  %v1606_v28 = vadd.f32 %v1542_v29, %v1482_v23  ;;  %v746_v22 = vadd.f32 %v686_v20, %v625_v5  ;;  %v747_v8 = vadd.f32 %v687_v39, %v626_v59  ;;  %v5354_v37 = vld [vmem:[#allocation42_spill] sm:$0xff] }
 0x17f   :  { %2167 = vmatmul.bf16.gmra.mxu0 %v2035_v18  ;;  %v933_v62 = vmul.f32 %v2973_v17, %v5350_v34  ;;  %v997_v38 = vmul.f32 %v3007_v30, %v5351_v40  ;;  %v998_v42 = vmul.f32 %v3007_v30, %v5352_v11  ;;  %v1126_v21 = vmul.f32 %v3010_v31, %v4371_v14  ;;  %v5355_v18 = vld [vmem:[#allocation39_spill] sm:$0xff]  ;;  %v4600_v14 = vld [vmem:[#allocation2 + $0x170] sm:$0xff] }
 0x180   :  { %v1673_v24 = vadd.f32 %v4142_v60, %v1605_v3  ;;  %v1674_v50 = vadd.f32 %v4142_v60, %v1606_v28  ;;  %v867_v29 = vadd.f32 %v807_v43, %v746_v22  ;;  %v868_v0 = vadd.f32 %v808_v51, %v747_v8  ;;  %5356 = vst [vmem:[#allocation54_spill] sm:$0xff] %v4600_v14  ;;  %v4604_v43 = vld [vmem:[#allocation2 + $0x1f0] sm:$0xff]  ;;  %v4606_v28 = vld [vmem:[#allocation2 + $0x178] sm:$0xff] }
 0x181   :  { %v1061_v59 = vadd.f32 %v997_v38, %v932_v25  ;;  %v1062_v39 = vadd.f32 %v998_v42, %v933_v62  ;;  %v1127_v5 = vmul.f32 %v3010_v31, %v5353_v6  ;;  %v1253_v23 = vmul.f32 %v3013_v32, %v5354_v37  ;;  %5357 = vst [vmem:[#allocation37_spill] sm:$0xff] %v4606_v28  ;;  %v5358_v8 = vld [vmem:[#allocation44_spill] sm:$0xff]  ;;  %v4612_v38 = vld [vmem:[#allocation2 + $0x1f8] sm:$0xff]  ;;  %v5360_v6 = vld [vmem:[#allocation46_spill] sm:$0xff] }
 0x182   :  { %v1737_v27 = vadd.f32 3.0, %v1673_v24  ;;  %v1738_v20 = vadd.f32 3.0, %v1674_v50  ;;  %v1254_v9 = vmul.f32 %v3013_v32, %v5355_v18  ;;  %v1314_v3 = vmul.f32 %v4600_v14, %v3018_v35  ;;  %5359 = vst [vmem:[#allocation23_spill] sm:$0xff] %v4612_v38 }
 0x183   :  { %v1190_v51 = vadd.f32 %v1126_v21, %v1061_v59  ;;  %v1191_v25 = vadd.f32 %v1127_v5, %v1062_v39  ;;  %v1315_v22 = vmul.f32 %v4606_v28, %v3018_v35  ;;  %v1435_v62 = vmul.f32 %v4115_v44, %v5358_v8 }
 0x184   :  { %v1801_v42 = vmax.f32 %v1737_v27, 0.0  ;;  %v1802_v18 = vmax.f32 %v1738_v20, 0.0  ;;  %v1374_v37 = vadd.f32 %v1314_v3, %v1253_v23  ;;  %v1436_v14 = vmul.f32 %v4115_v44, %v5360_v6 }
 0x185   :  { %v1375_v11 = vadd.f32 %v1315_v22, %v1254_v9  ;;  %v1557_v40 = vadd.f32 %v1190_v51, %v867_v29  ;;  %v1558_v21 = vadd.f32 %v1191_v25, %v868_v0  ;;  %v290_v59 = vrot.slane %v4604_v43, 7 }
 0x186   :  { %v1865_v39 = vmin.f32 %v1801_v42, 6.0  ;;  %v1866_v5 = vmin.f32 %v1802_v18, 6.0  ;;  %v1495_v34 = vadd.f32 %v1435_v62, %v1374_v37  ;;  %v291_v28 = vrot.slane %v4612_v38, 7 }
 0x187   :  { %v1496_v13 = vadd.f32 %v1436_v14, %v1375_v11  ;;  %v4619_v8 = vsel %vm196_vm0, 0.0, %v290_v59  ;;  %v483_v27 = vrot.slane %v4604_v43, 1  ;;  %v484_v23 = vrot.slane %v4612_v38, 1  ;;  %v5361_v14 = vld [vmem:[#allocation25_spill] sm:$0xff] }
 0x188   :  { %v1929_v20 = vmul.f32 %v1865_v39, %v1673_v24  ;;  %v1930_v44 = vmul.f32 %v1866_v5, %v1674_v50  ;;  %v1621_v9 = vadd.f32 %v1557_v40, %v1495_v34  ;;  %v4624_v29 = vsel %vm196_vm0, %v290_v59, %v291_v28  ;;  %v5362_v24 = vld [vmem:[#allocation59_spill] sm:$0xff]  ;;  %v5363_v28 = vld [vmem:[#allocation58_spill] sm:$0xff] }
 0x189   :  { %v1622_v0 = vadd.f32 %v1558_v21, %v1496_v13  ;;  %v4627_v18 = vsel %vm389_vm1, %v483_v27, %v484_v23  ;;  %v4630_v37 = vsel %vm389_vm1, %v484_v23, 0.0  ;;  %v641_v11 = vmul.f32 %v3094_v45, %v5361_v14  ;;  %v5364_v21 = vld [vmem:[#allocation50_spill] sm:$0xff] }
 0x18a   :  { %v1993_v3 = vmul.f32 0.16666667, %v1929_v20  ;;  %v1994_v51 = vmul.f32 0.16666667, %v1930_v44  ;;  %v1689_v25 = vadd.f32 %v4142_v60, %v1621_v9  ;;  %v642_v34 = vmul.f32 %v3094_v45, %v5362_v24  ;;  %v5365_v44 = vld [vmem:[#allocation13_spill] sm:$0xff] }
 0x18b   :  { %v1690_v40 = vadd.f32 %v4142_v60, %v1622_v0  ;;  %v702_v13 = vmul.f32 %v3104_v49, %v5327_v41  ;;  %v703_v50 = vmul.f32 %v3104_v49, %v5328_v33  ;;  %v823_v22 = vmul.f32 %v3112_v53, %v5363_v28 }
 0x18c   :  { %v2043_v62 = vpack.c.bf16 %v1994_v51, %v1993_v3  ;;  %v1753_v42 = vadd.f32 3.0, %v1689_v25  ;;  %v824_v59 = vmul.f32 %v3112_v53, %v5364_v21  ;;  %v948_v39 = vmul.f32 %v2973_v17, %v4419_v4 }
 0x18d   :  { %v1754_v5 = vadd.f32 3.0, %v1690_v40  ;;  %v762_v27 = vadd.f32 %v702_v13, %v641_v11  ;;  %v763_v60 = vadd.f32 %v703_v50, %v642_v34  ;;  %v949_v41 = vmul.f32 %v2973_v17, %v4424_v15 }
 0x18e   :  { %2207 = vmatmul.bf16.gmra.mxu1 %v2043_v62  ;;  %v1817_v23 = vmax.f32 %v1753_v42, 0.0  ;;  %v1013_v33 = vmul.f32 %v3007_v30, %v4408_v16  ;;  %v1014_v20 = vmul.f32 %v3007_v30, %v4412_v12  ;;  %v1142_v9 = vmul.f32 %v3010_v31, %v5365_v44 }
 0x18f   :  { %v1818_v0 = vmax.f32 %v1754_v5, 0.0  ;;  %v883_v14 = vadd.f32 %v823_v22, %v762_v27  ;;  %v884_v3 = vadd.f32 %v824_v59, %v763_v60  ;;  %v1143_v11 = vmul.f32 %v3010_v31, %v4432_v61  ;;  %v4666_v5 = vld [vmem:[#allocation5 + $0x8] ss:$0 sm:$0xff] }
 0x190   :  { %v1881_v51 = vmin.f32 %v1817_v23, 6.0  ;;  %v1077_v24 = vadd.f32 %v1013_v33, %v948_v39  ;;  %v1078_v34 = vadd.f32 %v1014_v20, %v949_v41  ;;  %v1269_v13 = vmul.f32 %v3013_v32, %v4619_v8 }
 0x191   :  { %v1882_v50 = vmin.f32 %v1818_v0, 6.0  ;;  %v1270_v28 = vmul.f32 %v3013_v32, %v4624_v29  ;;  %v1330_v62 = vmul.f32 %v3018_v35, %v4604_v43  ;;  %v1331_v22 = vmul.f32 %v3018_v35, %v4612_v38 }
 0x192   :  { %v1945_v42 = vmul.f32 %v1881_v51, %v1689_v25  ;;  %v1206_v21 = vadd.f32 %v1142_v9, %v1077_v24  ;;  %v1207_v59 = vadd.f32 %v1143_v11, %v1078_v34  ;;  %v1451_v39 = vmul.f32 %v4666_v5, %v4627_v18 }
 0x193   :  { %v1946_v27 = vmul.f32 %v1882_v50, %v1690_v40  ;;  %v1390_v60 = vadd.f32 %v1330_v62, %v1269_v13  ;;  %v1391_v41 = vadd.f32 %v1331_v22, %v1270_v28  ;;  %v1452_v23 = vmul.f32 %v4666_v5, %v4630_v37  ;;  %v5367_v22 = vld [vmem:[#allocation18_spill] sm:$0xff] }
 0x194   :  { %v2009_v33 = vmul.f32 0.16666667, %v1945_v42  ;;  %v1573_v20 = vadd.f32 %v1206_v21, %v883_v14  ;;  %v1574_v0 = vadd.f32 %v1207_v59, %v884_v3  ;;  %v597_v38 = vmul.f32 %v3094_v45, %v4248_v26 }
 0x195   :  { %v2010_v25 = vmul.f32 0.16666667, %v1946_v27  ;;  %v1511_v9 = vadd.f32 %v1451_v39, %v1390_v60  ;;  %v1512_v11 = vadd.f32 %v1452_v23, %v1391_v41  ;;  %v598_v51 = vmul.f32 %v3094_v45, %v4245_v63  ;;  %v5368_v41 = vld [vmem:[#allocation17_spill] sm:$0xff] }
 0x196   :  { %v658_v40 = vmul.f32 %v3104_v49, %v4234_v56  ;;  %v659_v24 = vmul.f32 %v3104_v49, %v4236_v58  ;;  %v779_v34 = vmul.f32 %v3112_v53, %v4255_v55  ;;  %v780_v14 = vmul.f32 %v3112_v53, %v4258_v2  ;;  %v4693_v55 = vld [vmem:[%s4891_s2] ss:$0 sm:$0xff] }
 0x197   :  { %v2051_v3 = vpack.c.bf16 %v2010_v25, %v2009_v33  ;;  %v1637_v26 = vadd.f32 %v1573_v20, %v1511_v9  ;;  %v1638_v13 = vadd.f32 %v1574_v0, %v1512_v11  ;;  %v902_v50 = vmul.f32 %v2973_v17, %v5329_v47  ;;  %v5366_v47 = vld [vmem:[#allocation29_spill] sm:$0xff]  ;;  %v5369_v20 = vld [vmem:[#allocation16_spill] sm:$0xff]  ;;  %v2791_v25 = vld [vmem:[#allocation2 + $0x80] sm:$0xff] }
 0x198   :  { %v718_v28 = vadd.f32 %v658_v40, %v597_v38  ;;  %v719_v63 = vadd.f32 %v659_v24, %v598_v51  ;;  %v903_v56 = vmul.f32 %v2973_v17, %v5330_v1  ;;  %v967_v58 = vmul.f32 %v4500_v52, %v3007_v30  ;;  %v2792_v11 = vld [vmem:[#allocation2 + $0x88] sm:$0xff] }
 0x199   :  { %2247 = vmatmul.bf16.gmra.mxu2 %v2051_v3  ;;  %v1705_v2 = vadd.f32 %v4693_v55, %v1637_v26  ;;  %v1706_v62 = vadd.f32 %v4693_v55, %v1638_v13  ;;  %v968_v38 = vmul.f32 %v5366_v47, %v3007_v30  ;;  %v1096_v42 = vmul.f32 %v3010_v31, %v5367_v22  ;;  %v5371_v13 = vld [vmem:[#allocation21_spill] sm:$0xff] }
 0x19a   :  { %v839_v1 = vadd.f32 %v779_v34, %v718_v28  ;;  %v840_v21 = vadd.f32 %v780_v14, %v719_v63  ;;  %v1031_v59 = vadd.f32 %v967_v58, %v902_v50  ;;  %v1097_v52 = vmul.f32 %v3010_v31, %v5335_v7  ;;  %v5370_v7 = vld [vmem:[#allocation20_spill] sm:$0xff] }
 0x19b   :  { %v1769_v39 = vadd.f32 3.0, %v1705_v2  ;;  %v1770_v27 = vadd.f32 3.0, %v1706_v62  ;;  %v1032_v60 = vadd.f32 %v968_v38, %v903_v56  ;;  %v1225_v23 = vmul.f32 %v3013_v32, %v5368_v41 }
 0x19c   :  { %v1160_v33 = vadd.f32 %v1096_v42, %v1031_v59  ;;  %v1226_v0 = vmul.f32 %v3013_v32, %v5369_v20  ;;  %v1286_v9 = vmul.f32 %v2791_v25, %v3018_v35  ;;  %v1287_v51 = vmul.f32 %v2792_v11, %v3018_v35  ;;  %v5373_v11 = vld [vmem:[#allocation53_spill] sm:$0xff] }
 0x19d   :  { %v1833_v40 = vmax.f32 %v1769_v39, 0.0  ;;  %v1834_v24 = vmax.f32 %v1770_v27, 0.0  ;;  %v1161_v34 = vadd.f32 %v1097_v52, %v1032_v60  ;;  %v1407_v14 = vmul.f32 %v4666_v5, %v5370_v7  ;;  %v5372_v27 = vld [vmem:[#allocation31_spill] sm:$0xff]  ;;  %v5375_v7 = vld [vmem:[#allocation24_spill] sm:$0xff] }
 0x19e   :  { %v1346_v3 = vadd.f32 %v1286_v9, %v1225_v23  ;;  %v1347_v26 = vadd.f32 %v1287_v51, %v1226_v0  ;;  %v1408_v50 = vmul.f32 %v4666_v5, %v5371_v13  ;;  %v1527_v28 = vadd.f32 %v1160_v33, %v839_v1 }
 0x19f   :  { %v1897_v63 = vmin.f32 %v1833_v40, 6.0  ;;  %v1898_v56 = vmin.f32 %v1834_v24, 6.0  ;;  %v1528_v58 = vadd.f32 %v1161_v34, %v840_v21  ;;  %v613_v47 = vmul.f32 %v3094_v45, %v4307_v57 }
 0x1a0   :  { %v1467_v38 = vadd.f32 %v1407_v14, %v1346_v3  ;;  %v1468_v22 = vadd.f32 %v1408_v50, %v1347_v26  ;;  %v614_v42 = vmul.f32 %v3094_v45, %v5340_v36  ;;  %v674_v59 = vmul.f32 %v3104_v49, %v5341_v54  ;;  %v5376_v14 = vld [vmem:[#allocation36_spill] sm:$0xff] }
 0x1a1   :  { %v1961_v52 = vmul.f32 %v1897_v63, %v1705_v2  ;;  %v1962_v39 = vmul.f32 %v1898_v56, %v1706_v62  ;;  %v675_v60 = vmul.f32 %v3104_v49, %v5372_v27  ;;  %v795_v1 = vmul.f32 %v3112_v53, %v4316_v48 }
 0x1a2   :  { %v1591_v21 = vadd.f32 %v1527_v28, %v1467_v38  ;;  %v1592_v41 = vadd.f32 %v1528_v58, %v1468_v22  ;;  %v734_v23 = vadd.f32 %v674_v59, %v613_v47  ;;  %v796_v57 = vmul.f32 %v3112_v53, %v5343_v10  ;;  %v5374_v10 = vld [vmem:[#allocation52_spill] sm:$0xff]  ;;  %v5378_v28 = vld [vmem:[#allocation41_spill] sm:$0xff]  ;;  %v5380_v22 = vld [vmem:[#allocation55_spill] sm:$0xff] }
 0x1a3   :  { %v2025_v33 = vmul.f32 0.16666667, %v1961_v52  ;;  %v2026_v20 = vmul.f32 0.16666667, %v1962_v39  ;;  %v735_v36 = vadd.f32 %v675_v60, %v614_v42  ;;  %v918_v54 = vmul.f32 %v2973_v17, %v4520_v19  ;;  %v5379_v47 = vld [vmem:[#allocation61_spill] sm:$0xff]  ;;  %v5382_v60 = vld [vmem:[#allocation34_spill] sm:$0xff] }
 0x1a4   :  { %v1659_v2 = vadd.f32 %v4693_v55, %v1591_v21  ;;  %v1660_v62 = vadd.f32 %v4693_v55, %v1592_v41  ;;  %v855_v0 = vadd.f32 %v795_v1, %v734_v23  ;;  %v919_v48 = vmul.f32 %v2973_v17, %v4524_v46  ;;  %v5377_v46 = vld [vmem:[#allocation28_spill] sm:$0xff]  ;;  %v5381_v39 = vld [vmem:[#allocation33_spill] sm:$0xff] }
 0x1a5   :  { %v2059_v25 = vpack.c.bf16 %v2026_v20, %v2025_v33  ;;  %v856_v9 = vadd.f32 %v796_v57, %v735_v36  ;;  %v983_v51 = vmul.f32 %v3007_v30, %v5373_v11  ;;  %v984_v40 = vmul.f32 %v3007_v30, %v5374_v10  ;;  %v5383_v36 = vld [vmem:[#allocation42_spill] sm:$0xff] }
 0x1a6   :  { %v1723_v24 = vadd.f32 3.0, %v1659_v2  ;;  %v1724_v34 = vadd.f32 3.0, %v1660_v62  ;;  %v1112_v19 = vmul.f32 %v3010_v31, %v5375_v7  ;;  %v1113_v3 = vmul.f32 %v3010_v31, %v5376_v14  ;;  %v5385_v7 = vld [vmem:[#allocation54_spill] sm:$0xff] }
 0x1a7   :  { %2287 = vmatmul.bf16.gmra.mxu3 %v2059_v25  ;;  %v1047_v26 = vadd.f32 %v983_v51, %v918_v54  ;;  %v1048_v13 = vadd.f32 %v984_v40, %v919_v48  ;;  %v627_v50 = vmul.f32 %v3094_v45, %v5377_v46  ;;  %v628_v63 = vmul.f32 %v3094_v45, %v5378_v28  ;;  %v5384_v48 = vld [vmem:[#allocation39_spill] sm:$0xff] }
 0x1a8   :  { %v1787_v56 = vmax.f32 %v1723_v24, 0.0  ;;  %v1788_v58 = vmax.f32 %v1724_v34, 0.0  ;;  %v688_v38 = vmul.f32 %v3104_v49, %v5379_v47  ;;  %v689_v42 = vmul.f32 %v3104_v49, %v5380_v22  ;;  %v5389_v47 = vld [vmem:[#allocation40_spill] sm:$0xff]  ;;  %v2793_v22 = vld [vmem:[#allocation2 + $0x180] sm:$0xff] }
 0x1a9   :  { %v1176_v59 = vadd.f32 %v1112_v19, %v1047_v26  ;;  %v1177_v52 = vadd.f32 %v1113_v3, %v1048_v13  ;;  %v809_v27 = vmul.f32 %v3112_v53, %v5381_v39  ;;  %v810_v1 = vmul.f32 %v3112_v53, %v5382_v60  ;;  %v5387_v26 = vld [vmem:[#allocation44_spill] sm:$0xff] }
 0x1aa   :  { %v1851_v21 = vmin.f32 %v1787_v56, 6.0  ;;  %v1852_v41 = vmin.f32 %v1788_v58, 6.0  ;;  %v748_v23 = vadd.f32 %v688_v38, %v627_v50  ;;  %v749_v57 = vadd.f32 %v689_v42, %v628_v63  ;;  %v5388_v56 = vld [vmem:[#allocation43_spill] sm:$0xff] }
 0x1ab   :  { %v1543_v33 = vadd.f32 %v1176_v59, %v855_v0  ;;  %v1544_v20 = vadd.f32 %v1177_v52, %v856_v9  ;;  %v934_v54 = vmul.f32 %v2973_v17, %v5383_v36  ;;  %v935_v25 = vmul.f32 %v2973_v17, %v5384_v48  ;;  %v5386_v0 = vld [vmem:[#allocation37_spill] sm:$0xff]  ;;  %v2138_v59 = vpop.f32.mrf.mxu0  ;;  %v2178_v52 = vpop.f32.mrf.mxu1 }
 0x1ac   :  { %v1915_v11 = vmul.f32 %v1851_v21, %v1659_v2  ;;  %v1916_v51 = vmul.f32 %v1852_v41, %v1660_v62  ;;  %v869_v10 = vadd.f32 %v809_v27, %v748_v23  ;;  %v870_v40 = vadd.f32 %v810_v1, %v749_v57  ;;  %v2218_v1 = vpop.f32.mrf.mxu2  ;;  %v2258_v21 = vpop.f32.mrf.mxu3  ;;  %v2794_v41 = vld [vmem:[#allocation2 + $0x188] sm:$0xff] }
 0x1ad   :  { %v1675_v24 = vadd.f32 %v4693_v55, %v1543_v33  ;;  %v1676_v34 = vadd.f32 %v4693_v55, %v1544_v20  ;;  %v999_v19 = vmul.f32 %v5385_v7, %v3007_v30  ;;  %v1000_v9 = vmul.f32 %v5386_v0, %v3007_v30  ;;  %v5390_v33 = vld [vmem:[#allocation45_spill] sm:$0xff] }
 0x1ae   :  { %v1979_v14 = vmul.f32 0.16666667, %v1915_v11  ;;  %v1980_v3 = vmul.f32 0.16666667, %v1916_v51  ;;  %v1128_v13 = vmul.f32 %v3010_v31, %v5387_v26  ;;  %v1129_v2 = vmul.f32 %v3010_v31, %v5360_v6 }
 0x1af   :  { %v1739_v62 = vadd.f32 3.0, %v1675_v24  ;;  %v1740_v46 = vadd.f32 3.0, %v1676_v34  ;;  %v1063_v50 = vadd.f32 %v999_v19, %v934_v54  ;;  %v1064_v28 = vadd.f32 %v1000_v9, %v935_v25 }
 0x1b0   :  { %v2036_v63 = vpack.c.bf16 %v1980_v3, %v1979_v14  ;;  %v1255_v58 = vmul.f32 %v3013_v32, %v5388_v56  ;;  %v1256_v38 = vmul.f32 %v3013_v32, %v5389_v47  ;;  %v1316_v42 = vmul.f32 %v2793_v22, %v3018_v35  ;;  %v5391_v32 = vld [vmem:[#allocation47_spill] sm:$0xff] }
 0x1b1   :  { %v1803_v39 = vmax.f32 %v1739_v62, 0.0  ;;  %v1804_v27 = vmax.f32 %v1740_v46, 0.0  ;;  %v1192_v60 = vadd.f32 %v1128_v13, %v1063_v50  ;;  %v1193_v6 = vadd.f32 %v1129_v2, %v1064_v28 }
 0x1b2   :  { %2172 = vmatmul.bf16.gmra.mxu0 %v2036_v63  ;;  %v1317_v23 = vmul.f32 %v2794_v41, %v3018_v35  ;;  %v1376_v57 = vadd.f32 %v1316_v42, %v1255_v58  ;;  %v1437_v20 = vmul.f32 %v4666_v5, %v5390_v33  ;;  %v1438_v36 = vmul.f32 %v4666_v5, %v5391_v32 }
 0x1b3   :  { %v1867_v54 = vmin.f32 %v1803_v39, 6.0  ;;  %v1868_v48 = vmin.f32 %v1804_v27, 6.0  ;;  %v1559_v25 = vadd.f32 %v1192_v60, %v869_v10  ;;  %v1560_v11 = vadd.f32 %v1193_v6, %v870_v40 }
 0x1b4   :  { %v1377_v51 = vadd.f32 %v1317_v23, %v1256_v38  ;;  %v1497_v7 = vadd.f32 %v1437_v20, %v1376_v57  ;;  %v643_v19 = vmul.f32 %v3094_v45, %v4419_v4  ;;  %v644_v0 = vmul.f32 %v3094_v45, %v4424_v15  ;;  %v4790_v15 = vld [vmem:[%s4893_s4] ss:$0 sm:$0xff]  ;;  %v4801_v50 = vpop.f32.mrf.mxu2  ;;  %v4803_v28 = vpop.f32.mrf.mxu3 }
 0x1b5   :  { %v1931_v35 = vmul.f32 %v1867_v54, %v1675_v24  ;;  %v1932_v9 = vmul.f32 %v1868_v48, %v1676_v34  ;;  %v704_v14 = vmul.f32 %v3104_v49, %v4408_v16  ;;  %v705_v5 = vmul.f32 %v3104_v49, %v4412_v12  ;;  %v2140_v24 = vpop.f32.mrf.mxu0 }
 0x1b6   :  { %v1498_v3 = vadd.f32 %v1438_v36, %v1377_v51  ;;  %v1623_v26 = vadd.f32 %v1559_v25, %v1497_v7  ;;  %v825_v10 = vmul.f32 %v3112_v53, %v5365_v44  ;;  %v826_v40 = vmul.f32 %v3112_v53, %v4432_v61  ;;  %v4797_v53 = vpop.f32.mrf.mxu1 }
 0x1b7   :  { %v1995_v4 = vmul.f32 0.16666667, %v1931_v35  ;;  %v1996_v13 = vmul.f32 0.16666667, %v1932_v9  ;;  %v764_v2 = vadd.f32 %v704_v14, %v643_v19  ;;  %v765_v45 = vadd.f32 %v705_v5, %v644_v0 }
 0x1b8   :  { %v1624_v16 = vadd.f32 %v1560_v11, %v1498_v3  ;;  %v1691_v49 = vadd.f32 %v4693_v55, %v1623_v26  ;;  %v950_v12 = vmul.f32 %v2973_v17, %v4619_v8  ;;  %v951_v44 = vmul.f32 %v2973_v17, %v4624_v29  ;;  %v5392_v8 = vld [vmem:[#allocation23_spill] sm:$0xff] }
 0x1b9   :  { %v2044_v61 = vpack.c.bf16 %v1996_v13, %v1995_v4  ;;  %v885_v34 = vadd.f32 %v825_v10, %v764_v2  ;;  %v886_v62 = vadd.f32 %v826_v40, %v765_v45  ;;  %v1015_v46 = vmul.f32 %v3007_v30, %v4604_v43 }
 0x1ba   :  { %v1692_v63 = vadd.f32 %v4693_v55, %v1624_v16  ;;  %v1755_v56 = vadd.f32 3.0, %v1691_v49  ;;  %v1016_v58 = vmul.f32 %v3007_v30, %v5392_v8  ;;  %v1144_v17 = vmul.f32 %v3010_v31, %v4627_v18 }
 0x1bb   :  { %2212 = vmatmul.bf16.gmra.mxu1 %v2044_v61  ;;  %v1079_v29 = vadd.f32 %v1015_v46, %v950_v12  ;;  %v1145_v47 = vmul.f32 %v3010_v31, %v4630_v37  ;;  %v2139_v43 = vadd.f32 %v4790_v15, %v2138_v59  ;;  %v2179_v38 = vadd.f32 %v4790_v15, %v2178_v52 }
 0x1bc   :  { %v1756_v22 = vadd.f32 3.0, %v1692_v63  ;;  %v1819_v42 = vmax.f32 %v1755_v56, 0.0  ;;  %v1080_v39 = vadd.f32 %v1016_v58, %v951_v44  ;;  %v2219_v27 = vadd.f32 %v4790_v15, %v2218_v1  ;;  %v4817_v19 = vpop.f32.mrf.mxu3 }
 0x1bd   :  { %v1208_v60 = vadd.f32 %v1144_v17, %v1079_v29  ;;  %v2298_v6 = vadd.f32 3.0, %v2139_v43  ;;  %v2314_v30 = vadd.f32 3.0, %v2179_v38  ;;  %v2259_v41 = vadd.f32 %v4790_v15, %v2258_v21  ;;  %v2143_v48 = vpop.f32.mrf.mxu0  ;;  %v2223_v21 = vpop.f32.mrf.mxu2 }
 0x1be   :  { %v1820_v18 = vmax.f32 %v1756_v22, 0.0  ;;  %v1883_v23 = vmin.f32 %v1819_v42, 6.0  ;;  %v1209_v57 = vadd.f32 %v1145_v47, %v1080_v39  ;;  %v2330_v33 = vadd.f32 3.0, %v2219_v27  ;;  %v2183_v25 = vpop.f32.mrf.mxu1 }
 0x1bf   :  { %v1575_v20 = vadd.f32 %v1208_v60, %v885_v34  ;;  %v2362_v31 = vmax.f32 %v2298_v6, 0.0  ;;  %v2378_v37 = vmax.f32 %v2314_v30, 0.0  ;;  %v2346_v59 = vadd.f32 3.0, %v2259_v41 }
 0x1c0   :  { %v1884_v32 = vmin.f32 %v1820_v18, 6.0  ;;  %v1947_v52 = vmul.f32 %v1883_v23, %v1691_v49  ;;  %v1576_v36 = vadd.f32 %v1209_v57, %v886_v62  ;;  %v2394_v54 = vmax.f32 %v2330_v33, 0.0 }
 0x1c1   :  { %v1707_v1 = vadd.f32 %v4693_v55, %v1575_v20  ;;  %v2426_v11 = vmin.f32 %v2362_v31, 6.0  ;;  %v2442_v51 = vmin.f32 %v2378_v37, 6.0  ;;  %v2410_v7 = vmax.f32 %v2346_v59, 0.0 }
 0x1c2   :  { %v1948_v0 = vmul.f32 %v1884_v32, %v1692_v63  ;;  %v2011_v35 = vmul.f32 0.16666667, %v1947_v52  ;;  %v1708_v9 = vadd.f32 %v4693_v55, %v1576_v36  ;;  %v2458_v14 = vmin.f32 %v2394_v54, 6.0 }
 0x1c3   :  { %v1771_v5 = vadd.f32 3.0, %v1707_v1  ;;  %v2490_v3 = vmul.f32 %v2426_v11, %v2139_v43  ;;  %v2506_v26 = vmul.f32 %v2442_v51, %v2179_v38  ;;  %v2474_v10 = vmin.f32 %v2410_v7, 6.0 }
 0x1c4   :  { %v2012_v40 = vmul.f32 0.16666667, %v1948_v0  ;;  %v1772_v4 = vadd.f32 3.0, %v1708_v9  ;;  %v2522_v13 = vmul.f32 %v2458_v14, %v2219_v27  ;;  %v2141_v2 = vadd.f32 %v4790_v15, %v2140_v24  ;;  %v2265_v39 = vpop.f32.mrf.mxu3 }
 0x1c5   :  { %v1835_v45 = vmax.f32 %v1771_v5, 0.0  ;;  %v2554_v16 = vmul.f32 0.16666667, %v2490_v3  ;;  %v2570_v49 = vmul.f32 0.16666667, %v2506_v26  ;;  %v2538_v12 = vmul.f32 %v2474_v10, %v2259_v41  ;;  %v2145_v29 = vpop.f32.mrf.mxu0  ;;  %v2225_v42 = vpop.f32.mrf.mxu2 }
 0x1c6   :  { %v2052_v44 = vpack.c.bf16 %v2012_v40, %v2011_v35  ;;  %v1836_v61 = vmax.f32 %v1772_v4, 0.0  ;;  %v2586_v34 = vmul.f32 0.16666667, %v2522_v13  ;;  %v2299_v62 = vadd.f32 3.0, %v2141_v2  ;;  %v2185_v47 = vpop.f32.mrf.mxu1 }
 0x1c7   :  { %v1899_v46 = vmin.f32 %v1835_v45, 6.0  ;;  %2618 = vst [vmem:[#allocation8] sm:$0xff] %v2554_v16  ;;  %v2602_v55 = vmul.f32 0.16666667, %v2538_v12  ;;  %v2181_v63 = vadd.f32 %v4790_v15, %v4797_v53  ;;  %v2221_v56 = vadd.f32 %v4790_v15, %v4801_v50 }
 0x1c8   :  { %2252 = vmatmul.bf16.gmra.mxu2 %v2052_v44  ;;  %v1900_v8 = vmin.f32 %v1836_v61, 6.0  ;;  %2634 = vst [vmem:[#allocation8 + $0x80] sm:$0xff] %v2570_v49  ;;  %v2363_v24 = vmax.f32 %v2299_v62, 0.0  ;;  %v2261_v58 = vadd.f32 %v4790_v15, %v4803_v28  ;;  %v2144_v17 = vadd.f32 %v4790_v15, %v2143_v48 }
 0x1c9   :  { %v1963_v43 = vmul.f32 %v1899_v46, %v1707_v1  ;;  %2650 = vst [vmem:[#allocation8 + $0x100] sm:$0xff] %v2586_v34  ;;  %v2315_v38 = vadd.f32 3.0, %v2181_v63  ;;  %v2331_v22 = vadd.f32 3.0, %v2221_v56  ;;  %v2184_v53 = vadd.f32 %v4790_v15, %v2183_v25 }
 0x1ca   :  { %v1964_v50 = vmul.f32 %v1900_v8, %v1708_v9  ;;  %2666 = vst [vmem:[#allocation8 + $0x180] sm:$0xff] %v2602_v55  ;;  %v2427_v27 = vmin.f32 %v2363_v24, 6.0  ;;  %v2347_v60 = vadd.f32 3.0, %v2261_v58  ;;  %v2300_v6 = vadd.f32 3.0, %v2144_v17 }
 0x1cb   :  { %v2027_v30 = vmul.f32 0.16666667, %v1963_v43  ;;  %v2379_v41 = vmax.f32 %v2315_v38, 0.0  ;;  %v2395_v28 = vmax.f32 %v2331_v22, 0.0  ;;  %v2316_v18 = vadd.f32 3.0, %v2184_v53 }
 0x1cc   :  { %v2028_v23 = vmul.f32 0.16666667, %v1964_v50  ;;  %v2491_v57 = vmul.f32 %v2427_v27, %v2141_v2  ;;  %v2411_v33 = vmax.f32 %v2347_v60, 0.0  ;;  %v2364_v20 = vmax.f32 %v2300_v6, 0.0  ;;  %v2268_v40 = vpop.f32.mrf.mxu3 }
 0x1cd   :  { %v2443_v31 = vmin.f32 %v2379_v41, 6.0  ;;  %v2459_v37 = vmin.f32 %v2395_v28, 6.0  ;;  %v2380_v59 = vmax.f32 %v2316_v18, 0.0  ;;  %v2224_v32 = vadd.f32 %v4790_v15, %v2223_v21  ;;  %v2148_v9 = vpop.f32.mrf.mxu0  ;;  %v2228_v10 = vpop.f32.mrf.mxu2 }
 0x1ce   :  { %v2060_v52 = vpack.c.bf16 %v2028_v23, %v2027_v30  ;;  %v2555_v36 = vmul.f32 0.16666667, %v2491_v57  ;;  %v2475_v54 = vmin.f32 %v2411_v33, 6.0  ;;  %v2428_v48 = vmin.f32 %v2364_v20, 6.0  ;;  %v2188_v14 = vpop.f32.mrf.mxu1 }
 0x1cf   :  { %v2507_v25 = vmul.f32 %v2443_v31, %v2181_v63  ;;  %v2523_v1 = vmul.f32 %v2459_v37, %v2221_v56  ;;  %v2444_v11 = vmin.f32 %v2380_v59, 6.0  ;;  %v2332_v51 = vadd.f32 3.0, %v2224_v32 }
 0x1d0   :  { %2292 = vmatmul.bf16.gmra.mxu3 %v2060_v52  ;;  %2619 = vst [vmem:[#allocation8 + $0x8] sm:$0xff] %v2555_v36  ;;  %v2539_v7 = vmul.f32 %v2475_v54, %v2261_v58  ;;  %v2492_v0 = vmul.f32 %v2428_v48, %v2144_v17  ;;  %v2264_v35 = vadd.f32 %v4790_v15, %v4817_v19 }
 0x1d1   :  { %v2571_v5 = vmul.f32 0.16666667, %v2507_v25  ;;  %v2587_v3 = vmul.f32 0.16666667, %v2523_v1  ;;  %v2508_v21 = vmul.f32 %v2444_v11, %v2184_v53  ;;  %v2396_v26 = vmax.f32 %v2332_v51, 0.0 }
 0x1d2   :  { %v2603_v4 = vmul.f32 0.16666667, %v2539_v7  ;;  %v2556_v13 = vmul.f32 0.16666667, %v2492_v0  ;;  %v2348_v2 = vadd.f32 3.0, %v2264_v35  ;;  %v2146_v45 = vadd.f32 %v4790_v15, %v2145_v29 }
 0x1d3   :  { %2635 = vst [vmem:[#allocation8 + $0x88] sm:$0xff] %v2571_v5  ;;  %v2572_v16 = vmul.f32 0.16666667, %v2508_v21  ;;  %v2460_v49 = vmin.f32 %v2396_v26, 6.0  ;;  %v2186_v12 = vadd.f32 %v4790_v15, %v2185_v47  ;;  %v2226_v19 = vadd.f32 %v4790_v15, %v2225_v42 }
 0x1d4   :  { %2651 = vst [vmem:[#allocation8 + $0x108] sm:$0xff] %v2587_v3  ;;  %v2412_v44 = vmax.f32 %v2348_v2, 0.0  ;;  %v2301_v61 = vadd.f32 3.0, %v2146_v45  ;;  %v2266_v34 = vadd.f32 %v4790_v15, %v2265_v39  ;;  %v2149_v62 = vadd.f32 %v4790_v15, %v2148_v9  ;;  %v2270_v18 = vpop.f32.mrf.mxu3 }
 0x1d5   :  { %2667 = vst [vmem:[#allocation8 + $0x188] sm:$0xff] %v2603_v4  ;;  %v2524_v46 = vmul.f32 %v2460_v49, %v2224_v32  ;;  %v2317_v55 = vadd.f32 3.0, %v2186_v12  ;;  %v2333_v63 = vadd.f32 3.0, %v2226_v19  ;;  %v2189_v56 = vadd.f32 %v4790_v15, %v2188_v14  ;;  %v2150_v50 = vpop.f32.mrf.mxu0  ;;  %v2230_v28 = vpop.f32.mrf.mxu2 }
 0x1d6   :  { %2620 = vst [vmem:[#allocation8 + $0x10] sm:$0xff] %v2556_v13  ;;  %v2476_v8 = vmin.f32 %v2412_v44, 6.0  ;;  %v2365_v24 = vmax.f32 %v2301_v61, 0.0  ;;  %v2349_v58 = vadd.f32 3.0, %v2266_v34  ;;  %v2302_v17 = vadd.f32 3.0, %v2149_v62  ;;  %v2190_v27 = vpop.f32.mrf.mxu1 }
 0x1d7   :  { %2636 = vst [vmem:[#allocation8 + $0x90] sm:$0xff] %v2572_v16  ;;  %v2588_v29 = vmul.f32 0.16666667, %v2524_v46  ;;  %v2381_v47 = vmax.f32 %v2317_v55, 0.0  ;;  %v2397_v43 = vmax.f32 %v2333_v63, 0.0  ;;  %v2318_v38 = vadd.f32 3.0, %v2189_v56 }
 0x1d8   :  { %v2540_v22 = vmul.f32 %v2476_v8, %v2264_v35  ;;  %v2429_v53 = vmin.f32 %v2365_v24, 6.0  ;;  %v2413_v42 = vmax.f32 %v2349_v58, 0.0  ;;  %v2366_v39 = vmax.f32 %v2302_v17, 0.0 }
 0x1d9   :  { %2652 = vst [vmem:[#allocation8 + $0x110] sm:$0xff] %v2588_v29  ;;  %v2445_v60 = vmin.f32 %v2381_v47, 6.0  ;;  %v2461_v6 = vmin.f32 %v2397_v43, 6.0  ;;  %v2382_v30 = vmax.f32 %v2318_v38, 0.0  ;;  %v2229_v41 = vadd.f32 %v4790_v15, %v2228_v10 }
 0x1da   :  { %v2604_v23 = vmul.f32 0.16666667, %v2540_v22  ;;  %v2493_v57 = vmul.f32 %v2429_v53, %v2146_v45  ;;  %v2477_v33 = vmin.f32 %v2413_v42, 6.0  ;;  %v2430_v20 = vmin.f32 %v2366_v39, 6.0 }
 0x1db   :  { %v2509_v31 = vmul.f32 %v2445_v60, %v2186_v12  ;;  %v2525_v37 = vmul.f32 %v2461_v6, %v2226_v19  ;;  %v2446_v59 = vmin.f32 %v2382_v30, 6.0  ;;  %v2334_v32 = vadd.f32 3.0, %v2229_v41 }
 0x1dc   :  { %2668 = vst [vmem:[#allocation8 + $0x190] sm:$0xff] %v2604_v23  ;;  %v2557_v52 = vmul.f32 0.16666667, %v2493_v57  ;;  %v2541_v36 = vmul.f32 %v2477_v33, %v2266_v34  ;;  %v2494_v54 = vmul.f32 %v2430_v20, %v2149_v62  ;;  %v2269_v48 = vadd.f32 %v4790_v15, %v2268_v40  ;;  %v2273_v19 = vpop.f32.mrf.mxu3 }
 0x1dd   :  { %v2573_v25 = vmul.f32 0.16666667, %v2509_v31  ;;  %v2589_v1 = vmul.f32 0.16666667, %v2525_v37  ;;  %v2510_v11 = vmul.f32 %v2446_v59, %v2189_v56  ;;  %v2398_v51 = vmax.f32 %v2334_v32, 0.0  ;;  %v2153_v4 = vpop.f32.mrf.mxu0  ;;  %v2233_v12 = vpop.f32.mrf.mxu2 }
 0x1de   :  { %2621 = vst [vmem:[#allocation8 + $0x18] sm:$0xff] %v2557_v52  ;;  %v2605_v7 = vmul.f32 0.16666667, %v2541_v36  ;;  %v2558_v0 = vmul.f32 0.16666667, %v2494_v54  ;;  %v2350_v35 = vadd.f32 3.0, %v2269_v48  ;;  %v2151_v9 = vadd.f32 %v4790_v15, %v2150_v50  ;;  %v2193_v13 = vpop.f32.mrf.mxu1 }
 0x1df   :  { %2637 = vst [vmem:[#allocation8 + $0x98] sm:$0xff] %v2573_v25  ;;  %v2574_v14 = vmul.f32 0.16666667, %v2510_v11  ;;  %v2462_v5 = vmin.f32 %v2398_v51, 6.0  ;;  %v2191_v3 = vadd.f32 %v4790_v15, %v2190_v27  ;;  %v2231_v21 = vadd.f32 %v4790_v15, %v2230_v28 }
 0x1e0   :  { %2653 = vst [vmem:[#allocation8 + $0x118] sm:$0xff] %v2589_v1  ;;  %v2414_v26 = vmax.f32 %v2350_v35, 0.0  ;;  %v2303_v10 = vadd.f32 3.0, %v2151_v9  ;;  %v2271_v40 = vadd.f32 %v4790_v15, %v2270_v18  ;;  %v2154_v49 = vadd.f32 %v4790_v15, %v2153_v4 }
 0x1e1   :  { %2669 = vst [vmem:[#allocation8 + $0x198] sm:$0xff] %v2605_v7  ;;  %v2526_v2 = vmul.f32 %v2462_v5, %v2229_v41  ;;  %v2319_v45 = vadd.f32 3.0, %v2191_v3  ;;  %v2335_v16 = vadd.f32 3.0, %v2231_v21  ;;  %v2194_v62 = vadd.f32 %v4790_v15, %v2193_v13 }
 0x1e2   :  { %2622 = vst [vmem:[#allocation8 + $0x20] sm:$0xff] %v2558_v0  ;;  %v2478_v44 = vmin.f32 %v2414_v26, 6.0  ;;  %v2367_v61 = vmax.f32 %v2303_v10, 0.0  ;;  %v2351_v34 = vadd.f32 3.0, %v2271_v40  ;;  %v2304_v56 = vadd.f32 3.0, %v2154_v49 }
 0x1e3   :  { %2638 = vst [vmem:[#allocation8 + $0xa0] sm:$0xff] %v2574_v14  ;;  %v2590_v46 = vmul.f32 0.16666667, %v2526_v2  ;;  %v2383_v55 = vmax.f32 %v2319_v45, 0.0  ;;  %v2399_v63 = vmax.f32 %v2335_v16, 0.0  ;;  %v2320_v17 = vadd.f32 3.0, %v2194_v62 }
 0x1e4   :  { %v2542_v8 = vmul.f32 %v2478_v44, %v2269_v48  ;;  %v2431_v24 = vmin.f32 %v2367_v61, 6.0  ;;  %v2415_v58 = vmax.f32 %v2351_v34, 0.0  ;;  %v2368_v43 = vmax.f32 %v2304_v56, 0.0  ;;  %v2275_v32 = vpop.f32.mrf.mxu3 }
 0x1e5   :  { %2654 = vst [vmem:[#allocation8 + $0x120] sm:$0xff] %v2590_v46  ;;  %v2447_v29 = vmin.f32 %v2383_v55, 6.0  ;;  %v2463_v47 = vmin.f32 %v2399_v63, 6.0  ;;  %v2234_v38 = vadd.f32 %v4790_v15, %v2233_v12  ;;  %v2384_v39 = vmax.f32 %v2320_v17, 0.0  ;;  %v2155_v23 = vpop.f32.mrf.mxu0  ;;  %v2235_v59 = vpop.f32.mrf.mxu2 }
 0x1e6   :  { %v2606_v22 = vmul.f32 0.16666667, %v2542_v8  ;;  %v2495_v53 = vmul.f32 %v2431_v24, %v2151_v9  ;;  %v2479_v42 = vmin.f32 %v2415_v58, 6.0  ;;  %v2432_v60 = vmin.f32 %v2368_v43, 6.0  ;;  %v2195_v57 = vpop.f32.mrf.mxu1 }
 0x1e7   :  { %v2511_v50 = vmul.f32 %v2447_v29, %v2191_v3  ;;  %v2527_v27 = vmul.f32 %v2463_v47, %v2231_v21  ;;  %v2336_v6 = vadd.f32 3.0, %v2234_v38  ;;  %v2448_v28 = vmin.f32 %v2384_v39, 6.0 }
 0x1e8   :  { %2670 = vst [vmem:[#allocation8 + $0x1a0] sm:$0xff] %v2606_v22  ;;  %v2559_v30 = vmul.f32 0.16666667, %v2495_v53  ;;  %v2543_v41 = vmul.f32 %v2479_v42, %v2271_v40  ;;  %v2274_v18 = vadd.f32 %v4790_v15, %v2273_v19  ;;  %v2496_v31 = vmul.f32 %v2432_v60, %v2154_v49 }
 0x1e9   :  { %v2575_v33 = vmul.f32 0.16666667, %v2511_v50  ;;  %v2591_v20 = vmul.f32 0.16666667, %v2527_v27  ;;  %v2400_v37 = vmax.f32 %v2336_v6, 0.0  ;;  %v2512_v36 = vmul.f32 %v2448_v28, %v2194_v62 }
 0x1ea   :  { %2623 = vst [vmem:[#allocation8 + $0x28] sm:$0xff] %v2559_v30  ;;  %v2607_v52 = vmul.f32 0.16666667, %v2543_v41  ;;  %v2352_v54 = vadd.f32 3.0, %v2274_v18  ;;  %v2156_v48 = vadd.f32 %v4790_v15, %v2155_v23  ;;  %v2560_v25 = vmul.f32 0.16666667, %v2496_v31 }
 0x1eb   :  { %2639 = vst [vmem:[#allocation8 + $0xa8] sm:$0xff] %v2575_v33  ;;  %v2464_v1 = vmin.f32 %v2400_v37, 6.0  ;;  %v2196_v11 = vadd.f32 %v4790_v15, %v2195_v57  ;;  %v2236_v51 = vadd.f32 %v4790_v15, %v2235_v59  ;;  %v2576_v7 = vmul.f32 0.16666667, %v2512_v36 }
 0x1ec   :  { %2655 = vst [vmem:[#allocation8 + $0x128] sm:$0xff] %v2591_v20  ;;  %v2416_v0 = vmax.f32 %v2352_v54, 0.0  ;;  %v2305_v35 = vadd.f32 3.0, %v2156_v48  ;;  %v2276_v9 = vadd.f32 %v4790_v15, %v2275_v32  ;;  %v2278_v46 = vpop.f32.mrf.mxu3 }
 0x1ed   :  { %2671 = vst [vmem:[#allocation8 + $0x1a8] sm:$0xff] %v2607_v52  ;;  %v2528_v14 = vmul.f32 %v2464_v1, %v2234_v38  ;;  %v2321_v5 = vadd.f32 3.0, %v2196_v11  ;;  %v2337_v3 = vadd.f32 3.0, %v2236_v51  ;;  %v2158_v49 = vpop.f32.mrf.mxu0  ;;  %v2238_v62 = vpop.f32.mrf.mxu2  ;;  %v2279_v22 = vadd.f32 %v4790_v15, %v2278_v46 }
 0x1ee   :  { %2624 = vst [vmem:[#allocation8 + $0x30] sm:$0xff] %v2560_v25  ;;  %v2480_v21 = vmin.f32 %v2416_v0, 6.0  ;;  %v2369_v26 = vmax.f32 %v2305_v35, 0.0  ;;  %v2353_v10 = vadd.f32 3.0, %v2276_v9  ;;  %v2198_v12 = vpop.f32.mrf.mxu1  ;;  %v2159_v61 = vadd.f32 %v4790_v15, %v2158_v49 }
 0x1ef   :  { %2640 = vst [vmem:[#allocation8 + $0xb0] sm:$0xff] %v2576_v7  ;;  %v2592_v40 = vmul.f32 0.16666667, %v2528_v14  ;;  %v2385_v4 = vmax.f32 %v2321_v5, 0.0  ;;  %v2401_v13 = vmax.f32 %v2337_v3, 0.0  ;;  %v2199_v34 = vadd.f32 %v4790_v15, %v2198_v12 }
 0x1f0   :  { %v2544_v2 = vmul.f32 %v2480_v21, %v2274_v18  ;;  %v2433_v45 = vmin.f32 %v2369_v26, 6.0  ;;  %v2417_v16 = vmax.f32 %v2353_v10, 0.0  ;;  %v2239_v8 = vadd.f32 %v4790_v15, %v2238_v62 }
 0x1f1   :  { %2656 = vst [vmem:[#allocation8 + $0x130] sm:$0xff] %v2592_v40  ;;  %v2449_v19 = vmin.f32 %v2385_v4, 6.0  ;;  %v2465_v44 = vmin.f32 %v2401_v13, 6.0  ;;  %v2306_v17 = vadd.f32 3.0, %v2159_v61  ;;  %v2322_v29 = vadd.f32 3.0, %v2199_v34 }
 0x1f2   :  { %v2608_v55 = vmul.f32 0.16666667, %v2544_v2  ;;  %v2497_v63 = vmul.f32 %v2433_v45, %v2156_v48  ;;  %v2481_v56 = vmin.f32 %v2417_v16, 6.0  ;;  %v2338_v38 = vadd.f32 3.0, %v2239_v8 }
 0x1f3   :  { %v2513_v24 = vmul.f32 %v2449_v19, %v2196_v11  ;;  %v2529_v58 = vmul.f32 %v2465_v44, %v2236_v51  ;;  %v2370_v39 = vmax.f32 %v2306_v17, 0.0  ;;  %v2386_v50 = vmax.f32 %v2322_v29, 0.0 }
 0x1f4   :  { %2672 = vst [vmem:[#allocation8 + $0x1b0] sm:$0xff] %v2608_v55  ;;  %v2561_v47 = vmul.f32 0.16666667, %v2497_v63  ;;  %v2545_v43 = vmul.f32 %v2481_v56, %v2276_v9  ;;  %v2402_v60 = vmax.f32 %v2338_v38, 0.0  ;;  %v2354_v6 = vadd.f32 3.0, %v2279_v22  ;;  %v2280_v32 = vpop.f32.mrf.mxu3 }
 0x1f5   :  { %v2577_v53 = vmul.f32 0.16666667, %v2513_v24  ;;  %v2593_v42 = vmul.f32 0.16666667, %v2529_v58  ;;  %v2434_v30 = vmin.f32 %v2370_v39, 6.0  ;;  %v2450_v41 = vmin.f32 %v2386_v50, 6.0  ;;  %v2160_v23 = vpop.f32.mrf.mxu0  ;;  %v2240_v59 = vpop.f32.mrf.mxu2 }
 0x1f6   :  { %2625 = vst [vmem:[#allocation8 + $0x38] sm:$0xff] %v2561_v47  ;;  %v2609_v27 = vmul.f32 0.16666667, %v2545_v43  ;;  %v2466_v28 = vmin.f32 %v2402_v60, 6.0  ;;  %v2418_v18 = vmax.f32 %v2354_v6, 0.0  ;;  %v2200_v57 = vpop.f32.mrf.mxu1  ;;  %v2161_v31 = vadd.f32 %v4790_v15, %v2160_v23 }
 0x1f7   :  { %2641 = vst [vmem:[#allocation8 + $0xb8] sm:$0xff] %v2577_v53  ;;  %v2498_v33 = vmul.f32 %v2434_v30, %v2159_v61  ;;  %v2514_v20 = vmul.f32 %v2450_v41, %v2199_v34  ;;  %v2201_v37 = vadd.f32 %v4790_v15, %v2200_v57  ;;  %v2241_v54 = vadd.f32 %v4790_v15, %v2240_v59 }
 0x1f8   :  { %2657 = vst [vmem:[#allocation8 + $0x138] sm:$0xff] %v2593_v42  ;;  %v2530_v52 = vmul.f32 %v2466_v28, %v2239_v8  ;;  %v2482_v36 = vmin.f32 %v2418_v18, 6.0  ;;  %v2281_v48 = vadd.f32 %v4790_v15, %v2280_v32  ;;  %v2307_v11 = vadd.f32 3.0, %v2161_v31 }
 0x1f9   :  { %2673 = vst [vmem:[#allocation8 + $0x1b8] sm:$0xff] %v2609_v27  ;;  %v2562_v25 = vmul.f32 0.16666667, %v2498_v33  ;;  %v2578_v1 = vmul.f32 0.16666667, %v2514_v20  ;;  %v2323_v51 = vadd.f32 3.0, %v2201_v37 }
 0x1fa   :  { %v2594_v7 = vmul.f32 0.16666667, %v2530_v52  ;;  %v2546_v0 = vmul.f32 %v2482_v36, %v2279_v22  ;;  %v2339_v35 = vadd.f32 3.0, %v2241_v54  ;;  %v2355_v9 = vadd.f32 3.0, %v2281_v48 }
 0x1fb   :  { %2626 = vst [vmem:[#allocation8 + $0x40] sm:$0xff] %v2562_v25  ;;  %v2371_v14 = vmax.f32 %v2307_v11, 0.0  ;;  %v2387_v5 = vmax.f32 %v2323_v51, 0.0 }
 0x1fc   :  { %2642 = vst [vmem:[#allocation8 + $0xc0] sm:$0xff] %v2578_v1  ;;  %v2610_v3 = vmul.f32 0.16666667, %v2546_v0  ;;  %v2403_v21 = vmax.f32 %v2339_v35, 0.0  ;;  %v2419_v26 = vmax.f32 %v2355_v9, 0.0  ;;  %v2283_v61 = vpop.f32.mrf.mxu3 }
 0x1fd   :  { %2658 = vst [vmem:[#allocation8 + $0x140] sm:$0xff] %v2594_v7  ;;  %v2435_v10 = vmin.f32 %v2371_v14, 6.0  ;;  %v2451_v40 = vmin.f32 %v2387_v5, 6.0  ;;  %v2163_v2 = vpop.f32.mrf.mxu0  ;;  %v2243_v44 = vpop.f32.mrf.mxu2  ;;  %v2284_v55 = vadd.f32 %v4790_v15, %v2283_v61 }
 0x1fe   :  { %2674 = vst [vmem:[#allocation8 + $0x1c0] sm:$0xff] %v2610_v3  ;;  %v2467_v4 = vmin.f32 %v2403_v21, 6.0  ;;  %v2483_v13 = vmin.f32 %v2419_v26, 6.0  ;;  %v2203_v45 = vpop.f32.mrf.mxu1  ;;  %v2164_v12 = vadd.f32 %v4790_v15, %v2163_v2  ;;  %v2244_v46 = vadd.f32 %v4790_v15, %v2243_v44 }
 0x1ff   :  { %v2499_v16 = vmul.f32 %v2435_v10, %v2161_v31  ;;  %v2515_v49 = vmul.f32 %v2451_v40, %v2201_v37  ;;  %v2204_v19 = vadd.f32 %v4790_v15, %v2203_v45  ;;  %v2356_v47 = vadd.f32 3.0, %v2284_v55 }
 0x200   :  { %v2531_v34 = vmul.f32 %v2467_v4, %v2241_v54  ;;  %v2547_v62 = vmul.f32 %v2483_v13, %v2281_v48  ;;  %v2308_v8 = vadd.f32 3.0, %v2164_v12  ;;  %v2340_v29 = vadd.f32 3.0, %v2244_v46 }
 0x201   :  { %v2563_v63 = vmul.f32 0.16666667, %v2499_v16  ;;  %v2579_v56 = vmul.f32 0.16666667, %v2515_v49  ;;  %v2324_v24 = vadd.f32 3.0, %v2204_v19  ;;  %v2420_v53 = vmax.f32 %v2356_v47, 0.0 }
 0x202   :  { %v2595_v58 = vmul.f32 0.16666667, %v2531_v34  ;;  %v2611_v17 = vmul.f32 0.16666667, %v2547_v62  ;;  %v2372_v43 = vmax.f32 %v2308_v8, 0.0  ;;  %v2404_v22 = vmax.f32 %v2340_v29, 0.0 }
 0x203   :  { %2627 = vst [vmem:[#allocation8 + $0x48] sm:$0xff] %v2563_v63  ;;  %v2388_v38 = vmax.f32 %v2324_v24, 0.0  ;;  %v2484_v27 = vmin.f32 %v2420_v53, 6.0 }
 0x204   :  { %2643 = vst [vmem:[#allocation8 + $0xc8] sm:$0xff] %v2579_v56  ;;  %v2436_v42 = vmin.f32 %v2372_v43, 6.0  ;;  %v2468_v50 = vmin.f32 %v2404_v22, 6.0  ;;  %v2285_v57 = vpop.f32.mrf.mxu3 }
 0x205   :  { %2659 = vst [vmem:[#allocation8 + $0x148] sm:$0xff] %v2595_v58  ;;  %v2452_v39 = vmin.f32 %v2388_v38, 6.0  ;;  %v2165_v60 = vpop.f32.mrf.mxu0  ;;  %v2245_v23 = vpop.f32.mrf.mxu2  ;;  %v2548_v20 = vmul.f32 %v2484_v27, %v2284_v55  ;;  %v2286_v37 = vadd.f32 %v4790_v15, %v2285_v57 }
 0x206   :  { %2675 = vst [vmem:[#allocation8 + $0x1c8] sm:$0xff] %v2611_v17  ;;  %v2205_v6 = vpop.f32.mrf.mxu1  ;;  %v2500_v30 = vmul.f32 %v2436_v42, %v2164_v12  ;;  %v2166_v28 = vadd.f32 %v4790_v15, %v2165_v60  ;;  %v2532_v33 = vmul.f32 %v2468_v50, %v2244_v46  ;;  %v2246_v31 = vadd.f32 %v4790_v15, %v2245_v23 }
 0x207   :  { %v2516_v41 = vmul.f32 %v2452_v39, %v2204_v19  ;;  %v2206_v18 = vadd.f32 %v4790_v15, %v2205_v6  ;;  %v2612_v48 = vmul.f32 0.16666667, %v2548_v20  ;;  %v2357_v1 = vadd.f32 3.0, %v2286_v37 }
 0x208   :  { %v2564_v59 = vmul.f32 0.16666667, %v2500_v30  ;;  %v2309_v52 = vadd.f32 3.0, %v2166_v28  ;;  %v2596_v54 = vmul.f32 0.16666667, %v2532_v33  ;;  %v2341_v25 = vadd.f32 3.0, %v2246_v31 }
 0x209   :  { %v2580_v32 = vmul.f32 0.16666667, %v2516_v41  ;;  %v2325_v36 = vadd.f32 3.0, %v2206_v18  ;;  %v2421_v0 = vmax.f32 %v2357_v1, 0.0  ;;  %2676 = vst [vmem:[#allocation8 + $0x1d0] sm:$0xff] %v2612_v48 }
 0x20a   :  { %2628 = vst [vmem:[#allocation8 + $0x50] sm:$0xff] %v2564_v59  ;;  %v2373_v11 = vmax.f32 %v2309_v52, 0.0  ;;  %v2405_v7 = vmax.f32 %v2341_v25, 0.0 }
 0x20b   :  { %v2389_v51 = vmax.f32 %v2325_v36, 0.0  ;;  %2644 = vst [vmem:[#allocation8 + $0xd0] sm:$0xff] %v2580_v32  ;;  %v2485_v5 = vmin.f32 %v2421_v0, 6.0 }
 0x20c   :  { %2660 = vst [vmem:[#allocation8 + $0x150] sm:$0xff] %v2596_v54  ;;  %v2437_v35 = vmin.f32 %v2373_v11, 6.0  ;;  %v2469_v14 = vmin.f32 %v2405_v7, 6.0 }
 0x20d   :  { %v2453_v9 = vmin.f32 %v2389_v51, 6.0  ;;  %v2168_v3 = vpop.f32.mrf.mxu0  ;;  %v2549_v2 = vmul.f32 %v2485_v5, %v2286_v37 }
 0x20e   :  { %v2208_v21 = vpop.f32.mrf.mxu1  ;;  %v2501_v26 = vmul.f32 %v2437_v35, %v2166_v28  ;;  %v2169_v40 = vadd.f32 %v4790_v15, %v2168_v3  ;;  %v2533_v13 = vmul.f32 %v2469_v14, %v2246_v31 }
 0x20f   :  { %v2517_v10 = vmul.f32 %v2453_v9, %v2206_v18  ;;  %v2209_v4 = vadd.f32 %v4790_v15, %v2208_v21  ;;  %v2613_v44 = vmul.f32 0.16666667, %v2549_v2 }
 0x210   :  { %v2565_v45 = vmul.f32 0.16666667, %v2501_v26  ;;  %v2310_v49 = vadd.f32 3.0, %v2169_v40  ;;  %v2597_v19 = vmul.f32 0.16666667, %v2533_v13 }
 0x211   :  { %v2581_v16 = vmul.f32 0.16666667, %v2517_v10  ;;  %v2326_v12 = vadd.f32 3.0, %v2209_v4  ;;  %2677 = vst [vmem:[#allocation8 + $0x1d8] sm:$0xff] %v2613_v44 }
 0x212   :  { %2629 = vst [vmem:[#allocation8 + $0x58] sm:$0xff] %v2565_v45  ;;  %v2374_v61 = vmax.f32 %v2310_v49, 0.0 }
 0x213   :  { %v2390_v34 = vmax.f32 %v2326_v12, 0.0  ;;  %2645 = vst [vmem:[#allocation8 + $0xd8] sm:$0xff] %v2581_v16 }
 0x214   :  { %2661 = vst [vmem:[#allocation8 + $0x158] sm:$0xff] %v2597_v19  ;;  %v2438_v62 = vmin.f32 %v2374_v61, 6.0 }
 0x215   :  { %v2454_v46 = vmin.f32 %v2390_v34, 6.0  ;;  %v2170_v55 = vpop.f32.mrf.mxu0 }
 0x216   :  { %v2210_v63 = vpop.f32.mrf.mxu1  ;;  %v2502_v56 = vmul.f32 %v2438_v62, %v2169_v40  ;;  %v2171_v24 = vadd.f32 %v4790_v15, %v2170_v55 }
 0x217   :  { %v2518_v8 = vmul.f32 %v2454_v46, %v2209_v4  ;;  %v2211_v58 = vadd.f32 %v4790_v15, %v2210_v63 }
 0x218   :  { %v2566_v17 = vmul.f32 0.16666667, %v2502_v56  ;;  %v2311_v47 = vadd.f32 3.0, %v2171_v24 }
 0x219   :  { %v2582_v29 = vmul.f32 0.16666667, %v2518_v8  ;;  %v2327_v43 = vadd.f32 3.0, %v2211_v58 }
 0x21a   :  { %2630 = vst [vmem:[#allocation8 + $0x60] sm:$0xff] %v2566_v17  ;;  %v2375_v53 = vmax.f32 %v2311_v47, 0.0 }
 0x21b   :  { %v2391_v42 = vmax.f32 %v2327_v43, 0.0  ;;  %2646 = vst [vmem:[#allocation8 + $0xe0] sm:$0xff] %v2582_v29 }
 0x21c   :  { %v2248_v38 = vpop.f32.mrf.mxu2  ;;  %v2439_v50 = vmin.f32 %v2375_v53, 6.0  ;;  %v2795_v53 = vld [vmem:[%s4893_s4] ss:$0 sm:$0xff]  ;;  %s2905_s4 = smov [#allocation8]  }
 0x21d   :  { %v2249_v22 = vadd.f32 %v4790_v15, %v2248_v38  ;;  %v2455_v27 = vmin.f32 %v2391_v42, 6.0  ;;  %s2686_s20 = sshll.u32 %s2905_s4, 4  ;;  %s2687_s20 = int_to_ptr.vmem [resolvable:$true] %s2686_s20 }
 0x21e   :  { %v2503_v6 = vmul.f32 %v2439_v50, %v2171_v24 }
 0x21f   :  { %v2342_v39 = vadd.f32 3.0, %v2249_v22  ;;  %v2519_v30 = vmul.f32 %v2455_v27, %v2211_v58 }
 0x220   :  { %v2567_v28 = vmul.f32 0.16666667, %v2503_v6 }
 0x221   :  { %v2406_v60 = vmax.f32 %v2342_v39, 0.0  ;;  %v2583_v18 = vmul.f32 0.16666667, %v2519_v30 }
 0x222   :  { %2631 = vst [vmem:[#allocation8 + $0x68] sm:$0xff] %v2567_v28 }
 0x223   :  { %v2470_v41 = vmin.f32 %v2406_v60, 6.0  ;;  %2647 = vst [vmem:[#allocation8 + $0xe8] sm:$0xff] %v2583_v18 }
 0x224   :  { %v2250_v23 = vpop.f32.mrf.mxu2 }
 0x225   :  { %v2534_v57 = vmul.f32 %v2470_v41, %v2249_v22  ;;  %v2251_v33 = vadd.f32 %v4790_v15, %v2250_v23 }
 0x227   :  { %v2598_v20 = vmul.f32 0.16666667, %v2534_v57  ;;  %v2343_v31 = vadd.f32 3.0, %v2251_v33 }
 0x229   :  { %2662 = vst [vmem:[#allocation8 + $0x160] sm:$0xff] %v2598_v20  ;;  %v2407_v37 = vmax.f32 %v2343_v31, 0.0 }
 0x22a   :  { %v2288_v59 = vpop.f32.mrf.mxu3 }
 0x22b   :  { %v2289_v32 = vadd.f32 %v4790_v15, %v2288_v59  ;;  %v2471_v52 = vmin.f32 %v2407_v37, 6.0 }
 0x22d   :  { %v2358_v36 = vadd.f32 3.0, %v2289_v32  ;;  %v2535_v54 = vmul.f32 %v2471_v52, %v2251_v33 }
 0x22f   :  { %v2422_v48 = vmax.f32 %v2358_v36, 0.0  ;;  %v2599_v25 = vmul.f32 0.16666667, %v2535_v54  ;;  %v2173_v1 = vpop.f32.mrf.mxu0 }
 0x230   :  { %v2174_v11 = vadd.f32 %v4790_v15, %v2173_v1 }
 0x231   :  { %v2486_v51 = vmin.f32 %v2422_v48, 6.0  ;;  %2663 = vst [vmem:[#allocation8 + $0x168] sm:$0xff] %v2599_v25 }
 0x232   :  { %v2290_v7 = vpop.f32.mrf.mxu3  ;;  %v2312_v0 = vadd.f32 3.0, %v2174_v11 }
 0x233   :  { %v2550_v35 = vmul.f32 %v2486_v51, %v2289_v32  ;;  %v2291_v9 = vadd.f32 %v4790_v15, %v2290_v7 }
 0x234   :  { %v2376_v14 = vmax.f32 %v2312_v0, 0.0 }
 0x235   :  { %v2614_v5 = vmul.f32 0.16666667, %v2550_v35  ;;  %v2359_v3 = vadd.f32 3.0, %v2291_v9 }
 0x236   :  { %v2440_v21 = vmin.f32 %v2376_v14, 6.0 }
 0x237   :  { %2678 = vst [vmem:[#allocation8 + $0x1e0] sm:$0xff] %v2614_v5  ;;  %v2423_v26 = vmax.f32 %v2359_v3, 0.0  ;;  %v2175_v10 = vpop.f32.mrf.mxu0 }
 0x238   :  { %v2504_v40 = vmul.f32 %v2440_v21, %v2174_v11  ;;  %v2213_v4 = vpop.f32.mrf.mxu1  ;;  %v2176_v13 = vadd.f32 %v4790_v15, %v2175_v10 }
 0x239   :  { %v2487_v2 = vmin.f32 %v2423_v26, 6.0  ;;  %v2214_v45 = vadd.f32 %v4790_v15, %v2213_v4 }
 0x23a   :  { %v2568_v16 = vmul.f32 0.16666667, %v2504_v40  ;;  %v2313_v49 = vadd.f32 3.0, %v2176_v13 }
 0x23b   :  { %v2551_v12 = vmul.f32 %v2487_v2, %v2291_v9  ;;  %v2328_v19 = vadd.f32 3.0, %v2214_v45 }
 0x23c   :  { %2632 = vst [vmem:[#allocation8 + $0x70] sm:$0xff] %v2568_v16  ;;  %v2377_v44 = vmax.f32 %v2313_v49, 0.0 }
 0x23d   :  { %v2615_v61 = vmul.f32 0.16666667, %v2551_v12  ;;  %v2392_v34 = vmax.f32 %v2328_v19, 0.0 }
 0x23e   :  { %v2441_v62 = vmin.f32 %v2377_v44, 6.0 }
 0x23f   :  { %2679 = vst [vmem:[#allocation8 + $0x1e8] sm:$0xff] %v2615_v61  ;;  %v2456_v46 = vmin.f32 %v2392_v34, 6.0 }
 0x240   :  { %v2505_v55 = vmul.f32 %v2441_v62, %v2176_v13  ;;  %v2215_v63 = vpop.f32.mrf.mxu1 }
 0x241   :  { %v2520_v56 = vmul.f32 %v2456_v46, %v2214_v45  ;;  %v2216_v8 = vadd.f32 %v4790_v15, %v2215_v63 }
 0x242   :  { %v2569_v24 = vmul.f32 0.16666667, %v2505_v55 }
 0x243   :  { %v2584_v58 = vmul.f32 0.16666667, %v2520_v56  ;;  %v2329_v17 = vadd.f32 3.0, %v2216_v8 }
 0x244   :  { %2633 = vst [vmem:[#allocation8 + $0x78] sm:$0xff] %v2569_v24 }
 0x245   :  { %2648 = vst [vmem:[#allocation8 + $0xf0] sm:$0xff] %v2584_v58  ;;  %v2393_v29 = vmax.f32 %v2329_v17, 0.0 }
 0x247   :  { %v2457_v47 = vmin.f32 %v2393_v29, 6.0 }
 0x249   :  { %v2521_v43 = vmul.f32 %v2457_v47, %v2216_v8 }
 0x24b   :  { %v2253_v38 = vpop.f32.mrf.mxu2  ;;  %v2585_v22 = vmul.f32 0.16666667, %v2521_v43 }
 0x24c   :  { %v2254_v42 = vadd.f32 %v2795_v53, %v2253_v38 }
 0x24d   :  { %2649 = vst [vmem:[#allocation8 + $0xf8] sm:$0xff] %v2585_v22 }
 0x24e   :  { %v2344_v39 = vadd.f32 3.0, %v2254_v42 }
 0x250   :  { %v2408_v50 = vmax.f32 %v2344_v39, 0.0 }
 0x252   :  { %v2472_v27 = vmin.f32 %v2408_v50, 6.0 }
 0x253   :  { %v2293_v15 = vpop.f32.mrf.mxu3  ;;  %v2255_v60 = vpop.f32.mrf.mxu2 }
 0x254   :  { %v2536_v6 = vmul.f32 %v2472_v27, %v2254_v42  ;;  %v2294_v30 = vadd.f32 %v2795_v53, %v2293_v15  ;;  %v2256_v41 = vadd.f32 %v2795_v53, %v2255_v60 }
 0x256   :  { %v2600_v28 = vmul.f32 0.16666667, %v2536_v6  ;;  %v2360_v18 = vadd.f32 3.0, %v2294_v30  ;;  %v2345_v23 = vadd.f32 3.0, %v2256_v41 }
 0x258   :  { %2664 = vst [vmem:[#allocation8 + $0x170] sm:$0xff] %v2600_v28  ;;  %v2424_v57 = vmax.f32 %v2360_v18, 0.0  ;;  %v2409_v33 = vmax.f32 %v2345_v23, 0.0 }
 0x25a   :  { %v2488_v20 = vmin.f32 %v2424_v57, 6.0  ;;  %v2473_v31 = vmin.f32 %v2409_v33, 6.0 }
 0x25b   :  { %v2295_v37 = vpop.f32.mrf.mxu3 }
 0x25c   :  { %v2552_v59 = vmul.f32 %v2488_v20, %v2294_v30  ;;  %v2537_v32 = vmul.f32 %v2473_v31, %v2256_v41  ;;  %v2296_v52 = vadd.f32 %v2795_v53, %v2295_v37 }
 0x25e   :  { %v2616_v36 = vmul.f32 0.16666667, %v2552_v59  ;;  %v2601_v54 = vmul.f32 0.16666667, %v2537_v32  ;;  %v2361_v48 = vadd.f32 3.0, %v2296_v52 }
 0x260   :  { %2680 = vst [vmem:[#allocation8 + $0x1f0] sm:$0xff] %v2616_v36  ;;  %v2425_v25 = vmax.f32 %v2361_v48, 0.0 }
 0x261   :  { %2665 = vst [vmem:[#allocation8 + $0x178] sm:$0xff] %v2601_v54 }
 0x262   :  { %v2489_v1 = vmin.f32 %v2425_v25, 6.0 }
 0x264   :  { %v2553_v11 = vmul.f32 %v2489_v1, %v2296_v52 }
 0x266   :  { %v2617_v51 = vmul.f32 0.16666667, %v2553_v11 }
 0x268   :  { %2681 = vst [vmem:[#allocation8 + $0x1f8] sm:$0xff] %v2617_v51 }
 0x269   :  { %2694 = dma.vmem_to_hbm [thread:$0]  %s2687_s20, 8192, %s2689_s23, [#allocation4], %s2899_s26, %s2899_s26, %s2900_s27  }
 0x26a   :  { %2896 = dma.done.wait [#allocation4], 8192  }
 0x26b   :  { %2897 = vsyncadd [#allocation4], 4294959104 }
 0x26c   :  { %2699 = vsyncpa [#allocation3], 1 }
 0x26d   :  { %2700 = vsyncpa [#allocation6], 1 }
 0x26e   :  { %2701 = vsyncpa [#allocation4], 1 }

</bundles_post_ra>
